<compile_context>
chip_gen: v5e
topology: v5e:2x2
jax: 0.10.0
libtpu: 0.0.40
codegen_flags: <defaults>
</compile_context>

<pallas_src>
import jax
import jax.numpy as jnp
from jax.experimental import pallas as pl
from jax.experimental.pallas import tpu as pltpu

C_IN = 32
C_OUT = 32
H = W = 28
K = 5
HO = WO = H - K + 1            # 24
SP = HO * WO                   # 576
TW = (HO - 1) * W + WO         # 668: "wide" conv-output width (row stride 28)
TWS = TW + (K - 1)             # 672: width of the stage-1/2 stacked slab
HID1 = 128
HID2 = 16
HID_PAD = 128                  # lane-pad the 16-wide hidden layer
O_DIM = 10                     # `o` of Solve(i, o); `i` is unused by forward


def solve_kernel(x_ref, wstk_ref, bc_ref, w1_ref, b1_ref,
                 w2_ref, b2_ref, w3_ref, b3_ref, out_ref,
                 xstk_ref, r_ref):
    # x_ref    : (32, 784)   raw input for this batch element, [ci, y*28+x]
    # wstk_ref : (160, 160)  conv weight, [kx*32+co, ky*32+ci]
    # xstk_ref : (160, 672)  scratch: [ky*32+ci, s] = x[ci, s + ky*28]
    # r_ref    : (160, 672)  scratch: per-kx partial sums over (ky, ci)

    # Stage 1: 5 ky-shifted copies of the input (only 4 unaligned lane shifts).
    for ky in range(K):
        xstk_ref[ky * C_IN:(ky + 1) * C_IN, :] = x_ref[:, ky * W:ky * W + TWS]

    # Stage 2: a single K=160 MXU matmul over (ky, ci).
    r_ref[...] = jnp.dot(wstk_ref[...], xstk_ref[...],
                         preferred_element_type=jnp.float32)

    # Stage 3: fold the kx axis with 5 shifted row-block slices.
    # acc is the conv output in "wide" layout [co, y*28+x]; columns with
    # x >= 24 are junk but get zero weights in w1_ref, so they never matter.
    acc = r_ref[0:C_OUT, 0:TW]
    for kx in range(1, K):
        acc = acc + r_ref[kx * C_OUT:(kx + 1) * C_OUT, kx:kx + TW]
    u = jnp.maximum(acc + bc_ref[...], 0.0)                  # relu(reshape(conv))

    h1 = jnp.dot(u, w1_ref[...], preferred_element_type=jnp.float32) + b1_ref[...]
    h1 = jnp.maximum(h1, 0.0)                                # relu(lay1)

    h2 = jnp.dot(h1, w2_ref[...], preferred_element_type=jnp.float32) + b2_ref[...]
    h2 = jnp.maximum(h2, 0.0)                                # relu(lay2); padded cols stay 0

    out_ref[...] = (jnp.dot(h2, w3_ref[...], preferred_element_type=jnp.float32)
                    + b3_ref[...])                           # lay3 (no relu)


def prepare_params(params):
    """One-time parameter prep (reshape / transpose / pad).  Not per-call."""
    wc, bc, w1, b1, w2, b2, w3, b3 = params
    # conv weight in the stacked layout used by stage 2: [kx*32+co, ky*32+ci]
    wstk = wc.transpose(3, 0, 2, 1).reshape(K * C_OUT, K * C_IN)   # (160, 160)
    bc2 = bc.reshape(C_OUT, 1)
    # lay1 weight in the "wide" spatial layout: col index y*28+x; x>=24 -> 0
    w1p = jnp.pad(w1.reshape(HID1, HO, WO), ((0, 0), (0, 0), (0, W - WO)))
    w1wt = w1p.reshape(HID1, HO * W)[:, :TW].T               # (668, 128)
    b1r = b1.reshape(1, HID1)
    # lay2 / lay3: pad the 16-wide hidden dim to 128 lanes with zeros
    w2tp = jnp.zeros((HID1, HID_PAD), jnp.float32).at[:, :HID2].set(w2.T)
    b2p = jnp.zeros((1, HID_PAD), jnp.float32).at[:, :HID2].set(b2)
    w3tp = jnp.zeros((HID_PAD, O_DIM), jnp.float32).at[:HID2, :].set(w3.T)
    b3r = b3.reshape(1, O_DIM)
    return (wstk, bc2, w1wt, b1r, w2tp, b2p, w3tp, b3r)


def solve_forward_batched(vs, prepped):
    """Batched forward: vs[b] has 32*28*28 elements; returns (B, 32, o).
    Weights DMA once (constant index_map) and stay VMEM-resident; the input
    stream pipelines per grid step; batch shards across v7x's 2 TCs."""
    B = vs.shape[0]
    xf = vs.reshape(B, C_IN, H * W)                          # torch's reshape, flattened
    const2 = lambda b: (0, 0)
    return pl.pallas_call(
        solve_kernel,
        out_shape=jax.ShapeDtypeStruct((B, C_OUT, O_DIM), jnp.float32),
        grid=(B,),
        in_specs=[
            pl.BlockSpec((None, C_IN, H * W), lambda b: (b, 0, 0)),   # input (streamed)
            pl.BlockSpec((K * C_OUT, K * C_IN), const2),              # conv W (resident)
            pl.BlockSpec((C_OUT, 1), const2),                         # conv b
            pl.BlockSpec((TW, HID1), const2),                         # lay1 W
            pl.BlockSpec((1, HID1), const2),                          # lay1 b
            pl.BlockSpec((HID1, HID_PAD), const2),                    # lay2 W (padded)
            pl.BlockSpec((1, HID_PAD), const2),                       # lay2 b (padded)
            pl.BlockSpec((HID_PAD, O_DIM), const2),                   # lay3 W (padded)
            pl.BlockSpec((1, O_DIM), const2),                         # lay3 b
        ],
        out_specs=pl.BlockSpec((None, C_OUT, O_DIM), lambda b: (b, 0, 0)),
        scratch_shapes=[pltpu.VMEM((K * C_IN, TWS), jnp.float32),
                        pltpu.VMEM((K * C_OUT, TWS), jnp.float32)],
        compiler_params=pltpu.CompilerParams(
            dimension_semantics=("parallel",)),
    )(xf, *prepped)


def solve_forward(v, prepped):
    """Single-sample forward matching the PyTorch module exactly: -> (32, o)."""
    return solve_forward_batched(v.reshape(1, C_IN, H * W), prepped)[0]


def reference_forward(v, params):
    # pure-JAX reference (correctness check only)
    wc, bc, w1, b1, w2, b2, w3, b3 = params
    x = v.reshape(1, C_IN, H, W)
    conv = jax.lax.conv_general_dilated(
        x, wc, window_strides=(1, 1), padding="VALID",
        dimension_numbers=("NCHW", "OIHW", "NCHW"))[0] + bc[:, None, None]
    u = jnp.maximum(conv.reshape(C_OUT, SP), 0.0)
    h1 = jnp.maximum(u @ w1.T + b1, 0.0)
    h2 = jnp.maximum(h1 @ w2.T + b2, 0.0)
    return h2 @ w3.T + b3


def init_params(key):
    ks = jax.random.split(key, 8)

    def unif(k, shape, fan_in):
        bound = 1.0 / jnp.sqrt(fan_in)
        return jax.random.uniform(k, shape, jnp.float32, -bound, bound)

    wc = unif(ks[0], (C_OUT, C_IN, K, K), C_IN * K * K)
    bc = unif(ks[1], (C_OUT,), C_IN * K * K)
    w1 = unif(ks[2], (HID1, SP), SP)
    b1 = unif(ks[3], (HID1,), SP)
    w2 = unif(ks[4], (HID2, HID1), HID1)
    b2 = unif(ks[5], (HID2,), HID1)
    w3 = unif(ks[6], (O_DIM, HID2), HID2)
    b3 = unif(ks[7], (O_DIM,), HID2)
    return (wc, bc, w1, b1, w2, b2, w3, b3)


if __name__ == "__main__":
    key = jax.random.PRNGKey(0)
    k_in, k_par = jax.random.split(key)

    # small batch to exercise the grid / weight-residency path; each element
    # is the module's fixed 32*28*28 input
    B = 4
    vs = jax.random.normal(k_in, (B, C_IN, H, W), jnp.float32)
    params = init_params(k_par)

    # one-time parameter prep (hoisted out of the per-call path)
    prepped = tuple(jax.block_until_ready(p) for p in prepare_params(params))

    fwd = jax.jit(solve_forward_batched)
    out = jax.block_until_ready(fwd(vs, prepped))
    assert out.shape == (B, C_OUT, O_DIM), out.shape
    for b in range(B):
        ref = reference_forward(vs[b], params)
        err = float(jnp.max(jnp.abs(out[b] - ref)))
        assert jnp.allclose(out[b], ref, atol=1e-3, rtol=1e-3), err

    # single-sample path (exact module semantics: one v -> (32, o))
    out1 = jax.block_until_ready(jax.jit(solve_forward)(vs[0], prepped))
    assert out1.shape == (C_OUT, O_DIM), out1.shape
    assert jnp.allclose(out1, out[0], atol=1e-5, rtol=1e-5)

    print("KERNEL_OK")
</pallas_src>

<mosaic_0001>
module attributes {stable_mosaic.version = 11 : i64} {
  func.func @solve_kernel(%arg0: i32, %arg1: memref<1x32x784xf32, #tpu.memory_space<vmem>>, %arg2: memref<160x160xf32, #tpu.memory_space<vmem>>, %arg3: memref<32x1xf32, #tpu.memory_space<vmem>>, %arg4: memref<668x128xf32, #tpu.memory_space<vmem>>, %arg5: memref<1x128xf32, #tpu.memory_space<vmem>>, %arg6: memref<128x128xf32, #tpu.memory_space<vmem>>, %arg7: memref<1x128xf32, #tpu.memory_space<vmem>>, %arg8: memref<128x10xf32, #tpu.memory_space<vmem>>, %arg9: memref<1x10xf32, #tpu.memory_space<vmem>>, %arg10: memref<1x32x10xf32, #tpu.memory_space<vmem>>, %arg11: memref<160x672xf32, #tpu.memory_space<vmem>>, %arg12: memref<160x672xf32, #tpu.memory_space<vmem>>) attributes {dimension_semantics = [#tpu.dimension_semantics<parallel>], iteration_bounds = array<i64: 4>, scalar_prefetch = 0 : i64, scratch_operands = 2 : i64, tpu.core_type = #tpu.core_type<tc>, window_params = [{transform_indices = @transform_0, window_bounds = array<i64: 1, 32, 784>}, {pipeline_mode = #tpu.pipeline_mode<synchronous>, transform_indices = @transform_1, window_bounds = array<i64: 160, 160>}, {pipeline_mode = #tpu.pipeline_mode<synchronous>, transform_indices = @transform_2, window_bounds = array<i64: 32, 1>}, {pipeline_mode = #tpu.pipeline_mode<synchronous>, transform_indices = @transform_3, window_bounds = array<i64: 668, 128>}, {pipeline_mode = #tpu.pipeline_mode<synchronous>, transform_indices = @transform_4, window_bounds = array<i64: 1, 128>}, {pipeline_mode = #tpu.pipeline_mode<synchronous>, transform_indices = @transform_5, window_bounds = array<i64: 128, 128>}, {pipeline_mode = #tpu.pipeline_mode<synchronous>, transform_indices = @transform_6, window_bounds = array<i64: 1, 128>}, {pipeline_mode = #tpu.pipeline_mode<synchronous>, transform_indices = @transform_7, window_bounds = array<i64: 128, 10>}, {pipeline_mode = #tpu.pipeline_mode<synchronous>, transform_indices = @transform_8, window_bounds = array<i64: 1, 10>}, {transform_indices = @transform_9, window_bounds = array<i64: 1, 32, 10>}]} {
    %c0 = arith.constant 0 : index
    %c0_0 = arith.constant 0 : index
    %c0_1 = arith.constant 0 : index
    %0 = vector.load %arg1[%c0, %c0_0, %c0_1] : memref<1x32x784xf32, #tpu.memory_space<vmem>>, vector<1x32x672xf32>
    %1 = vector.shape_cast %0 : vector<1x32x672xf32> to vector<32x672xf32>
    %c0_2 = arith.constant 0 : index
    %c0_3 = arith.constant 0 : index
    %2 = vector.load %arg11[%c0_2, %c0_3] : memref<160x672xf32, #tpu.memory_space<vmem>>, vector<32x672xf32>
    tpu.vector_store %arg11[%c0_2, %c0_3], %1 {strides = array<i32>} : memref<160x672xf32, #tpu.memory_space<vmem>>, vector<32x672xf32>,
    %c0_4 = arith.constant 0 : index
    %c0_5 = arith.constant 0 : index
    %c28 = arith.constant 28 : index
    %3 = vector.load %arg1[%c0_4, %c0_5, %c28] : memref<1x32x784xf32, #tpu.memory_space<vmem>>, vector<1x32x672xf32>
    %4 = vector.shape_cast %3 : vector<1x32x672xf32> to vector<32x672xf32>
    %c32 = arith.constant 32 : index
    %c0_6 = arith.constant 0 : index
    %5 = vector.load %arg11[%c32, %c0_6] : memref<160x672xf32, #tpu.memory_space<vmem>>, vector<32x672xf32>
    tpu.vector_store %arg11[%c32, %c0_6], %4 {strides = array<i32>} : memref<160x672xf32, #tpu.memory_space<vmem>>, vector<32x672xf32>,
    %c0_7 = arith.constant 0 : index
    %c0_8 = arith.constant 0 : index
    %c56 = arith.constant 56 : index
    %6 = vector.load %arg1[%c0_7, %c0_8, %c56] : memref<1x32x784xf32, #tpu.memory_space<vmem>>, vector<1x32x672xf32>
    %7 = vector.shape_cast %6 : vector<1x32x672xf32> to vector<32x672xf32>
    %c64 = arith.constant 64 : index
    %c0_9 = arith.constant 0 : index
    %8 = vector.load %arg11[%c64, %c0_9] : memref<160x672xf32, #tpu.memory_space<vmem>>, vector<32x672xf32>
    tpu.vector_store %arg11[%c64, %c0_9], %7 {strides = array<i32>} : memref<160x672xf32, #tpu.memory_space<vmem>>, vector<32x672xf32>,
    %c0_10 = arith.constant 0 : index
    %c0_11 = arith.constant 0 : index
    %c84 = arith.constant 84 : index
    %9 = vector.load %arg1[%c0_10, %c0_11, %c84] : memref<1x32x784xf32, #tpu.memory_space<vmem>>, vector<1x32x672xf32>
    %10 = vector.shape_cast %9 : vector<1x32x672xf32> to vector<32x672xf32>
    %c96 = arith.constant 96 : index
    %c0_12 = arith.constant 0 : index
    %11 = vector.load %arg11[%c96, %c0_12] : memref<160x672xf32, #tpu.memory_space<vmem>>, vector<32x672xf32>
    tpu.vector_store %arg11[%c96, %c0_12], %10 {strides = array<i32>} : memref<160x672xf32, #tpu.memory_space<vmem>>, vector<32x672xf32>,
    %c0_13 = arith.constant 0 : index
    %c0_14 = arith.constant 0 : index
    %c112 = arith.constant 112 : index
    %12 = vector.load %arg1[%c0_13, %c0_14, %c112] : memref<1x32x784xf32, #tpu.memory_space<vmem>>, vector<1x32x672xf32>
    %13 = vector.shape_cast %12 : vector<1x32x672xf32> to vector<32x672xf32>
    %c128 = arith.constant 128 : index
    %c0_15 = arith.constant 0 : index
    %14 = vector.load %arg11[%c128, %c0_15] : memref<160x672xf32, #tpu.memory_space<vmem>>, vector<32x672xf32>
    tpu.vector_store %arg11[%c128, %c0_15], %13 {strides = array<i32>} : memref<160x672xf32, #tpu.memory_space<vmem>>, vector<32x672xf32>,
    %c0_16 = arith.constant 0 : index
    %c0_17 = arith.constant 0 : index
    %15 = vector.load %arg2[%c0_16, %c0_17] : memref<160x160xf32, #tpu.memory_space<vmem>>, vector<160x160xf32>
    %c0_18 = arith.constant 0 : index
    %c0_19 = arith.constant 0 : index
    %16 = vector.load %arg11[%c0_18, %c0_19] : memref<160x672xf32, #tpu.memory_space<vmem>>, vector<160x672xf32>
    %cst = arith.constant dense<0.000000e+00> : vector<160x672xf32>
    %17 = tpu.matmul %15, %16, %cst {dimension_numbers = #tpu.dot_dimension_numbers<[1], [0], [0], [1], [0, 0, 1, 1], [], []>} : vector<160x160xf32>, vector<160x672xf32>, vector<160x672xf32> -> vector<160x672xf32>
    %c0_20 = arith.constant 0 : index
    %c0_21 = arith.constant 0 : index
    %18 = vector.load %arg12[%c0_20, %c0_21] : memref<160x672xf32, #tpu.memory_space<vmem>>, vector<160x672xf32>
    tpu.vector_store %arg12[%c0_20, %c0_21], %17 {strides = array<i32>} : memref<160x672xf32, #tpu.memory_space<vmem>>, vector<160x672xf32>,
    %c0_22 = arith.constant 0 : index
    %c0_23 = arith.constant 0 : index
    %19 = vector.load %arg12[%c0_22, %c0_23] : memref<160x672xf32, #tpu.memory_space<vmem>>, vector<32x668xf32>
    %c32_24 = arith.constant 32 : index
    %c1 = arith.constant 1 : index
    %20 = vector.load %arg12[%c32_24, %c1] : memref<160x672xf32, #tpu.memory_space<vmem>>, vector<32x668xf32>
    %21 = arith.addf %19, %20 : vector<32x668xf32>
    %c64_25 = arith.constant 64 : index
    %c2 = arith.constant 2 : index
    %22 = vector.load %arg12[%c64_25, %c2] : memref<160x672xf32, #tpu.memory_space<vmem>>, vector<32x668xf32>
    %23 = arith.addf %21, %22 : vector<32x668xf32>
    %c96_26 = arith.constant 96 : index
    %c3 = arith.constant 3 : index
    %24 = vector.load %arg12[%c96_26, %c3] : memref<160x672xf32, #tpu.memory_space<vmem>>, vector<32x668xf32>
    %25 = arith.addf %23, %24 : vector<32x668xf32>
    %c128_27 = arith.constant 128 : index
    %c4 = arith.constant 4 : index
    %26 = vector.load %arg12[%c128_27, %c4] : memref<160x672xf32, #tpu.memory_space<vmem>>, vector<32x668xf32>
    %27 = arith.addf %25, %26 : vector<32x668xf32>
    %c0_28 = arith.constant 0 : index
    %c0_29 = arith.constant 0 : index
    %28 = vector.load %arg3[%c0_28, %c0_29] : memref<32x1xf32, #tpu.memory_space<vmem>>, vector<32x1xf32>
    %29 = vector.broadcast %28 : vector<32x1xf32> to vector<32x668xf32>
    %30 = arith.addf %27, %29 : vector<32x668xf32>
    %cst_30 = arith.constant 0.000000e+00 : f32
    %31 = vector.broadcast %cst_30 : f32 to vector<32x668xf32>
    %32 = arith.maximumf %30, %31 : vector<32x668xf32>
    %c0_31 = arith.constant 0 : index
    %c0_32 = arith.constant 0 : index
    %33 = vector.load %arg4[%c0_31, %c0_32] : memref<668x128xf32, #tpu.memory_space<vmem>>, vector<668x128xf32>
    %cst_33 = arith.constant dense<0.000000e+00> : vector<32x128xf32>
    %34 = tpu.matmul %32, %33, %cst_33 {dimension_numbers = #tpu.dot_dimension_numbers<[1], [0], [0], [1], [0, 0, 1, 1], [], []>} : vector<32x668xf32>, vector<668x128xf32>, vector<32x128xf32> -> vector<32x128xf32>
    %c0_34 = arith.constant 0 : index
    %c0_35 = arith.constant 0 : index
    %35 = vector.load %arg5[%c0_34, %c0_35] : memref<1x128xf32, #tpu.memory_space<vmem>>, vector<1x128xf32>
    %36 = vector.broadcast %35 : vector<1x128xf32> to vector<32x128xf32>
    %37 = arith.addf %34, %36 : vector<32x128xf32>
    %cst_36 = arith.constant 0.000000e+00 : f32
    %38 = vector.broadcast %cst_36 : f32 to vector<32x128xf32>
    %39 = arith.maximumf %37, %38 : vector<32x128xf32>
    %c0_37 = arith.constant 0 : index
    %c0_38 = arith.constant 0 : index
    %40 = vector.load %arg6[%c0_37, %c0_38] : memref<128x128xf32, #tpu.memory_space<vmem>>, vector<128x128xf32>
    %cst_39 = arith.constant dense<0.000000e+00> : vector<32x128xf32>
    %41 = tpu.matmul %39, %40, %cst_39 {dimension_numbers = #tpu.dot_dimension_numbers<[1], [0], [0], [1], [0, 0, 1, 1], [], []>} : vector<32x128xf32>, vector<128x128xf32>, vector<32x128xf32> -> vector<32x128xf32>
    %c0_40 = arith.constant 0 : index
    %c0_41 = arith.constant 0 : index
    %42 = vector.load %arg7[%c0_40, %c0_41] : memref<1x128xf32, #tpu.memory_space<vmem>>, vector<1x128xf32>
    %43 = vector.broadcast %42 : vector<1x128xf32> to vector<32x128xf32>
    %44 = arith.addf %41, %43 : vector<32x128xf32>
    %cst_42 = arith.constant 0.000000e+00 : f32
    %45 = vector.broadcast %cst_42 : f32 to vector<32x128xf32>
    %46 = arith.maximumf %44, %45 : vector<32x128xf32>
    %c0_43 = arith.constant 0 : index
    %c0_44 = arith.constant 0 : index
    %47 = vector.load %arg8[%c0_43, %c0_44] : memref<128x10xf32, #tpu.memory_space<vmem>>, vector<128x10xf32>
    %cst_45 = arith.constant dense<0.000000e+00> : vector<32x10xf32>
    %48 = tpu.matmul %46, %47, %cst_45 {dimension_numbers = #tpu.dot_dimension_numbers<[1], [0], [0], [1], [0, 0, 1, 1], [], []>} : vector<32x128xf32>, vector<128x10xf32>, vector<32x10xf32> -> vector<32x10xf32>
    %c0_46 = arith.constant 0 : index
    %c0_47 = arith.constant 0 : index
    %49 = vector.load %arg9[%c0_46, %c0_47] : memref<1x10xf32, #tpu.memory_space<vmem>>, vector<1x10xf32>
    %50 = vector.broadcast %49 : vector<1x10xf32> to vector<32x10xf32>
    %51 = arith.addf %48, %50 : vector<32x10xf32>
    %c0_48 = arith.constant 0 : index
    %c0_49 = arith.constant 0 : index
    %c0_50 = arith.constant 0 : index
    %52 = vector.load %arg10[%c0_48, %c0_49, %c0_50] : memref<1x32x10xf32, #tpu.memory_space<vmem>>, vector<1x32x10xf32>
    %53 = vector.shape_cast %52 : vector<1x32x10xf32> to vector<32x10xf32>
    %54 = vector.shape_cast %51 : vector<32x10xf32> to vector<1x32x10xf32>
    tpu.vector_store %arg10[%c0_48, %c0_49, %c0_50], %54 {strides = array<i32>} : memref<1x32x10xf32, #tpu.memory_space<vmem>>, vector<1x32x10xf32>,
    return
  }
  func.func @transform_0(%arg0: i32) -> (i32, i32, i32) {
    %c0_i32 = arith.constant 0 : i32
    %c0_i32_0 = arith.constant 0 : i32
    %c0_i32_1 = arith.constant 0 : i32
    return %arg0, %c0_i32, %c0_i32_0 : i32, i32, i32
  }
  func.func @transform_1(%arg0: i32) -> (i32, i32) {
    %c0_i32 = arith.constant 0 : i32
    %c0_i32_0 = arith.constant 0 : i32
    %c0_i32_1 = arith.constant 0 : i32
    return %c0_i32, %c0_i32_0 : i32, i32
  }
  func.func @transform_2(%arg0: i32) -> (i32, i32) {
    %c0_i32 = arith.constant 0 : i32
    %c0_i32_0 = arith.constant 0 : i32
    %c0_i32_1 = arith.constant 0 : i32
    return %c0_i32, %c0_i32_0 : i32, i32
  }
  func.func @transform_3(%arg0: i32) -> (i32, i32) {
    %c0_i32 = arith.constant 0 : i32
    %c0_i32_0 = arith.constant 0 : i32
    %c0_i32_1 = arith.constant 0 : i32
    return %c0_i32, %c0_i32_0 : i32, i32
  }
  func.func @transform_4(%arg0: i32) -> (i32, i32) {
    %c0_i32 = arith.constant 0 : i32
    %c0_i32_0 = arith.constant 0 : i32
    %c0_i32_1 = arith.constant 0 : i32
    return %c0_i32, %c0_i32_0 : i32, i32
  }
  func.func @transform_5(%arg0: i32) -> (i32, i32) {
    %c0_i32 = arith.constant 0 : i32
    %c0_i32_0 = arith.constant 0 : i32
    %c0_i32_1 = arith.constant 0 : i32
    return %c0_i32, %c0_i32_0 : i32, i32
  }
  func.func @transform_6(%arg0: i32) -> (i32, i32) {
    %c0_i32 = arith.constant 0 : i32
    %c0_i32_0 = arith.constant 0 : i32
    %c0_i32_1 = arith.constant 0 : i32
    return %c0_i32, %c0_i32_0 : i32, i32
  }
  func.func @transform_7(%arg0: i32) -> (i32, i32) {
    %c0_i32 = arith.constant 0 : i32
    %c0_i32_0 = arith.constant 0 : i32
    %c0_i32_1 = arith.constant 0 : i32
    return %c0_i32, %c0_i32_0 : i32, i32
  }
  func.func @transform_8(%arg0: i32) -> (i32, i32) {
    %c0_i32 = arith.constant 0 : i32
    %c0_i32_0 = arith.constant 0 : i32
    %c0_i32_1 = arith.constant 0 : i32
    return %c0_i32, %c0_i32_0 : i32, i32
  }
  func.func @transform_9(%arg0: i32) -> (i32, i32, i32) {
    %c0_i32 = arith.constant 0 : i32
    %c0_i32_0 = arith.constant 0 : i32
    %c0_i32_1 = arith.constant 0 : i32
    return %arg0, %c0_i32, %c0_i32_0 : i32, i32, i32
  }
}

</mosaic_0001>

<bundles_post_ra>
// kernel: solve_forward_batched.1
= control target key start
LH: loop header
LB: loop body
LE: loop exit
PB: predicated region body
PF: predicated region fallthrough
CT: control target
= control target key end

     0   :  { %s3820_s30 = smov 0   ;;  %s6174_s0 = inlined_call_operand.vmem [shape: f32[4,32,784], index: 0, kind: input, shape index: {}]   ;;  %s6175_s1 = inlined_call_operand.vmem [shape: f32[160,160], index: 1, kind: input, shape index: {}]   ;;  %s6176_s2 = inlined_call_operand.vmem [shape: f32[32,1], index: 2, kind: input, shape index: {}]   ;;  %s6177_s3 = inlined_call_operand.vmem [shape: f32[668,128], index: 3, kind: input, shape index: {}]   ;;  %s6178_s4 = inlined_call_operand.vmem [shape: f32[1,128], index: 4, kind: input, shape index: {}]   ;;  %s6179_s5 = inlined_call_operand.vmem [shape: f32[128,128], index: 5, kind: input, shape index: {}]   ;;  %s6180_s6 = inlined_call_operand.vmem [shape: f32[1,128], index: 6, kind: input, shape index: {}]   ;;  %s6181_s7 = inlined_call_operand.vmem [shape: f32[128,10], index: 7, kind: input, shape index: {}]   ;;  %s6182_s8 = inlined_call_operand.vmem [shape: f32[1,10], index: 8, kind: input, shape index: {}]   ;;  %s6183_s9 = inlined_call_operand.vmem [shape: f32[4,32,10], index: 9, kind: output, shape index: {}]  }
   0x1 LB: > { %s3527_s10 = sadd.s32 4294967295, %s3759_s30   ;;  %p3531_p0 = scmp.ge.s32.totalorder %s3759_s30, 1  ;;  %s3759_s30 = sphi %s3820_s30, %s19_s30  }
   0x2   : > { %p287_p1 = scmp.lt.s32.totalorder %s3759_s30, 5 }
   0x4   : > { %p288_p2 = pnand %p3531_p0, %p287_p1 }
   0x5   : > { %p323_p3 = scmp.lt.s32.totalorder (!%p288_p2), %s3527_s10, 3  ;;  %s3761_s15 = smov (!%p288_p2), 44  }
   0x6   : > { %291 = sbr.rel (%p288_p2) target bundleno = 1394 (0x572), region = 56  ;;  %s3762_s16 = smov (!%p288_p2), 16  }
   0x7   : > { %s3763_s17 = smov (!%p288_p2), 72   ;;  %s3764_s18 = smov (!%p288_p2), 100  }
   0x8   : > { %s3766_s22 = smov (!%p288_p2), 127   ;;  %s3767_s12 = smov (!%p288_p2), 126  }
   0xb   : > { %s6185_s10 = smov (!%p323_p3, %s3527_s10), 3  ;;  %vm808_vm0 = vcmask 359424   ;;  %vm989_vm1 = vcmask 130048   ;;  %vm643_vm2 = vcmask 588800   ;;  %vm362_vm3 = vcmask 261120   ;;  %v4062_v63 = vld [vmem:[%s6175_s1 + $0x8] sm:$0xff] }
   0xc   : > { %s3683_s11 = smul.u32 224, %s6185_s10  ;;  %vm478_vm4 = vcmask 818176   ;;  %vm2446_vm5 = vcmask 1039360   ;;  %vm2611_vm6 = vcmask 1031168   ;;  %vm2776_vm7 = vcmask 1022976  }
   0xd   : > { %vm2941_vm8 = vcmask 1014784   ;;  %vm3183_vm9 = vcmask 1043456   ;;  %vm3170_vm10 = vcmask 228352   ;;  %vm3467_vm11 = vcmask 80896  }
   0xe   : > { %s3834_s14 = scalar_lea.vmem %s6174_s0, %s3683_s11  ;;  %s3769_s11 = smov 124  }
   0xf   : > { %v732_v0 = vld [vmem:[%s3834_s14 + $0xb8] sm:$0xff]  ;;  %v3838_v1 = vld [vmem:[%s3834_s14 + $0xa8] sm:$0xff]  ;;  %v3841_v2 = vld [vmem:[%s3834_s14 + $0x70] sm:$0xff] }
  0x10   : > { %800 = vrot.lane.b32.xlu2 %v732_v0, %s3761_s15  ;;  %796 = vrot.lane.b32.xlu0 %v3838_v1, %s3761_s15  ;;  %v3849_v3 = vld [vmem:[%s3834_s14 + $0x38] sm:$0xff]  ;;  %v3852_v4 = vld [vmem:[%s3834_s14] sm:$0xff] }
  0x11   : > { %784 = vrot.lane.b32.xlu1 %v3841_v2, %s3761_s15  ;;  %v3855_v5 = vld [vmem:[%s3834_s14 + $0xb0] sm:$0xff]  ;;  %v3858_v6 = vld [vmem:[%s3834_s14 + $0x78] sm:$0xff]  ;;  %v3861_v7 = vld [vmem:[%s3834_s14 + $0x40] sm:$0xff] }
  0x12   : > { %v3864_v8 = vld [vmem:[%s3834_s14 + $0x8] sm:$0xff]  ;;  %v726_v9 = vld [vmem:[%s3834_s14 + $0x80] sm:$0xff]  ;;  %v714_v11 = vld [vmem:[%s3834_s14 + $0x10] sm:$0xff] }
  0x13   : > { %v720_v10 = vld [vmem:[%s3834_s14 + $0x48] sm:$0xff]  ;;  %v3955_v24 = vld [vmem:[%s3834_s14 + $0x50] sm:$0xff]  ;;  %v733_v25 = vld [vmem:[%s3834_s14 + $0xc0] sm:$0xff] }
  0x14   : > { %v3959_v26 = vld [vmem:[%s3834_s14 + $0x88] sm:$0xff]  ;;  %v3976_v33 = vld [vmem:[%s3834_s14 + $0x90] sm:$0xff]  ;;  %v3982_v35 = vld [vmem:[%s3834_s14 + $0x18] sm:$0xff] }
  0x15   : > { %v3979_v34 = vld [vmem:[%s3834_s14 + $0xc8] sm:$0xff]  ;;  %v3997_v41 = vld [vmem:[%s3834_s14 + $0x58] sm:$0xff]  ;;  %v4016_v47 = vld [vmem:[%s3834_s14 + $0x20] sm:$0xff] }
  0x18   : > { %798 = vrot.lane.b32.xlu0 %v3855_v5, %s3761_s15  ;;  %772 = vrot.lane.b32.xlu2 %v3849_v3, %s3761_s15 }
  0x19   : > { %786 = vrot.lane.b32.xlu1 %v3858_v6, %s3761_s15 }
  0x20   : > { %774 = vrot.lane.b32.xlu0 %v3861_v7, %s3761_s15  ;;  %977 = vrot.lane.b32.xlu2 %v3855_v5, %s3762_s16 }
  0x21   : > { %788 = vrot.lane.b32.xlu1 %v726_v9, %s3761_s15 }
  0x28   : > { %979 = vrot.lane.b32.xlu0 %v732_v0, %s3762_s16  ;;  %762 = vrot.lane.b32.xlu2 %v3864_v8, %s3761_s15 }
  0x29   : > { %760 = vrot.lane.b32.xlu1 %v3852_v4, %s3761_s15 }
  0x30   : > { %776 = vrot.lane.b32.xlu0 %v720_v10, %s3761_s15  ;;  %965 = vrot.lane.b32.xlu2 %v726_v9, %s3762_s16 }
  0x31   : > { %963 = vrot.lane.b32.xlu1 %v3858_v6, %s3762_s16 }
  0x38   : > { %764 = vrot.lane.b32.xlu2 %v714_v11, %s3761_s15  ;;  %631 = vrot.lane.b32.xlu0 %v3838_v1, %s3763_s17 }
  0x39   : > { %633 = vrot.lane.b32.xlu1 %v3855_v5, %s3763_s17 }
  0x40   : > { %949 = vrot.lane.b32.xlu0 %v3861_v7, %s3762_s16  ;;  %619 = vrot.lane.b32.xlu2 %v3841_v2, %s3763_s17 }
  0x41   : > { %951 = vrot.lane.b32.xlu1 %v720_v10, %s3762_s16 }
  0x48   : > { %621 = vrot.lane.b32.xlu0 %v3858_v6, %s3763_s17  ;;  %935 = vrot.lane.b32.xlu2 %v3864_v8, %s3762_s16 }
  0x49   : > { %635 = vrot.lane.b32.xlu1 %v732_v0, %s3763_s17 }
  0x50   : > { %937 = vrot.lane.b32.xlu0 %v714_v11, %s3762_s16  ;;  %609 = vrot.lane.b32.xlu2 %v3861_v7, %s3763_s17 }
  0x51   : > { %607 = vrot.lane.b32.xlu1 %v3849_v3, %s3763_s17 }
  0x58   : > { %623 = vrot.lane.b32.xlu0 %v726_v9, %s3763_s17  ;;  %597 = vrot.lane.b32.xlu2 %v3864_v8, %s3763_s17 }
  0x59   : > { %595 = vrot.lane.b32.xlu1 %v3852_v4, %s3763_s17 }
  0x60   : > { %611 = vrot.lane.b32.xlu0 %v720_v10, %s3763_s17  ;;  %468 = vrot.lane.b32.xlu2 %v3855_v5, %s3764_s18 }
  0x61   : > { %466 = vrot.lane.b32.xlu1 %v3838_v1, %s3764_s18 }
  0x68   : > { %599 = vrot.lane.b32.xlu0 %v714_v11, %s3763_s17  ;;  %456 = vrot.lane.b32.xlu2 %v3858_v6, %s3764_s18 }
  0x69   : > { %454 = vrot.lane.b32.xlu1 %v3841_v2, %s3764_s18 }
  0x6a   : > { %v3924_v12 = vpop.permute.xlu2 %800 }
  0x70   : > { %470 = vrot.lane.b32.xlu0 %v732_v0, %s3764_s18  ;;  %442 = vrot.lane.b32.xlu2 %v3849_v3, %s3764_s18 }
  0x71   : > { %975 = vrot.lane.b32.xlu1 %v3838_v1, %s3762_s16 }
  0x72   : > { %v773_v13 = vpop.permute.xlu2 %772 }
  0x78   : > { %444 = vrot.lane.b32.xlu0 %v3861_v7, %s3764_s18  ;;  %961 = vrot.lane.b32.xlu2 %v3841_v2, %s3762_s16 }
  0x79   : > { %458 = vrot.lane.b32.xlu1 %v726_v9, %s3764_s18 }
  0x7a   : > { %v3936_v14 = vpop.permute.xlu2 %977 }
  0x80   : > { %446 = vrot.lane.b32.xlu2 %v720_v10, %s3764_s18  ;;  %430 = vrot.lane.b32.xlu0 %v3852_v4, %s3764_s18 }
  0x81   : > { %432 = vrot.lane.b32.xlu1 %v3864_v8, %s3764_s18 }
  0x82   : > { %v797_v15 = vpop.permute.xlu0 %796  ;;  %v763_v16 = vpop.permute.xlu2 %762 }
  0x83   : > { %v785_v17 = vpop.permute.xlu1 %784 }
  0x88   : > { %933 = vrot.lane.b32.xlu2 %v3852_v4, %s3762_s16  ;;  %947 = vrot.lane.b32.xlu0 %v3849_v3, %s3762_s16 }
  0x89   : > { %434 = vrot.lane.b32.xlu1 %v714_v11, %s3764_s18 }
  0x8a   : > { %v799_v18 = vpop.permute.xlu0 %798  ;;  %v3948_v19 = vpop.permute.xlu2 %965 }
  0x8b   : > { %v824_v20 = vsel %vm808_vm0, %v797_v15, %v799_v18  ;;  %v825_v21 = vsel %vm808_vm0, %v799_v18, %v3924_v12  ;;  %v787_v22 = vpop.permute.xlu1 %786  ;;  %v4081_v15 = vld [vmem:[%s6175_s1 + $0x18] sm:$0xff] }
  0x8c   : > { %v819_v23 = vsel %vm808_vm0, %v785_v17, %v787_v22  ;;  %1282 = vmatpush.msra.mxu0 %v824_v20  ;;  %1436 = vmatpush.msra.mxu2 %v825_v21 }
  0x8e   : > { %1283 = vmatpush.msra.mxu0 %v819_v23 }
  0x90   : > { %778 = vrot.lane.b32.xlu2 %v3955_v24, %s3761_s15  ;;  %802 = vrot.lane.b32.xlu0 %v733_v25, %s3761_s15 }
  0x91   : > { %790 = vrot.lane.b32.xlu1 %v3959_v26, %s3761_s15 }
  0x92   : > { %v775_v27 = vpop.permute.xlu0 %774  ;;  %v3966_v28 = vpop.permute.xlu2 %764 }
  0x93   : > { %v3968_v29 = vpop.permute.xlu1 %788  ;;  %v814_v30 = vsel %vm808_vm0, %v773_v13, %v775_v27  ;;  %v810_v31 = vsel %vm808_vm0, %v763_v16, %v3966_v28 }
  0x94   : > { %v820_v32 = vsel %vm808_vm0, %v787_v22, %v3968_v29  ;;  %1284 = vmatpush.msra.mxu0 %v814_v30  ;;  %v4099_v22 = vld [vmem:[%s6175_s1 + $0x28] sm:$0xff] }
  0x95   : > { %1437 = vmatpush.msra.mxu2 %v820_v32 }
  0x98   : > { %792 = vrot.lane.b32.xlu2 %v3976_v33, %s3761_s15  ;;  %804 = vrot.lane.b32.xlu0 %v3979_v34, %s3761_s15 }
  0x99   : > { %766 = vrot.lane.b32.xlu1 %v3982_v35, %s3761_s15 }
  0x9a   : > { %v3990_v36 = vpop.permute.xlu0 %979  ;;  %v620_v37 = vpop.permute.xlu2 %619 }
  0x9b   : > { %v1009_v38 = vsel %vm989_vm1, %v3936_v14, %v3990_v36  ;;  %v761_v39 = vpop.permute.xlu1 %760 }
  0x9c   : > { %v809_v40 = vsel %vm808_vm0, %v761_v39, %v763_v16  ;;  %1525 = vmatpush.msra.mxu3 %v1009_v38  ;;  %v4144_v39 = vld [vmem:[%s6175_s1 + $0x48] sm:$0xff] }
  0x9d   : > { %1285 = vmatpush.msra.mxu0 %v809_v40 }
  0xa0   : > { %625 = vrot.lane.b32.xlu2 %v3959_v26, %s3763_s17  ;;  %637 = vrot.lane.b32.xlu0 %v733_v25, %s3763_s17 }
  0xa1   : > { %780 = vrot.lane.b32.xlu1 %v3997_v41, %s3761_s15 }
  0xa2   : > { %v4004_v42 = vpop.permute.xlu0 %776  ;;  %v4006_v43 = vpop.permute.xlu2 %935 }
  0xa3   : > { %v815_v44 = vsel %vm808_vm0, %v775_v27, %v4004_v42  ;;  %v4010_v45 = vpop.permute.xlu1 %963 }
  0xa4   : > { %v1003_v46 = vsel %vm989_vm1, %v4010_v45, %v3948_v19  ;;  %1438 = vmatpush.msra.mxu2 %v815_v44 }
  0xa5   : > { %1526 = vmatpush.msra.mxu3 %v1003_v46  ;;  %v4154_v46 = vld [vmem:[%s3834_s14 + $0x28] sm:$0xff] }
  0xa6   : > { %1439 = vmatpush.msra.mxu2 %v810_v31  ;;  %v4122_v31 = vld [vmem:[%s6175_s1 + $0x38] sm:$0xff] }
  0xa8   : > { %613 = vrot.lane.b32.xlu2 %v3955_v24, %s3763_s17  ;;  %981 = vrot.lane.b32.xlu0 %v733_v25, %s3762_s16 }
  0xa9   : > { %768 = vrot.lane.b32.xlu1 %v4016_v47, %s3761_s15 }
  0xaa   : > { %v632_v48 = vpop.permute.xlu0 %631  ;;  %v610_v49 = vpop.permute.xlu2 %609 }
  0xab   : > { %v634_v50 = vpop.permute.xlu1 %633 }
  0xac   : > { %v659_v51 = vsel %vm643_vm2, %v632_v48, %v634_v50  ;;  %v4160_v48 = vld [vmem:[%s3834_s14 + $0x60] sm:$0xff] }
  0xad   : > { %1286 = vmatpush.msra.mxu0 %v659_v51 }
  0xb0   : > { %601 = vrot.lane.b32.xlu2 %v3982_v35, %s3763_s17  ;;  %967 = vrot.lane.b32.xlu0 %v3959_v26, %s3762_s16 }
  0xb1   : > { %639 = vrot.lane.b32.xlu1 %v3979_v34, %s3763_s17 }
  0xb2   : > { %v4030_v52 = vpop.permute.xlu0 %949  ;;  %v598_v53 = vpop.permute.xlu2 %597 }
  0xb3   : > { %v4032_v54 = vpop.permute.xlu1 %951 }
  0xb4   : > { %v997_v55 = vsel %vm989_vm1, %v4030_v52, %v4032_v54 }
  0xb5   : > { %1527 = vmatpush.msra.mxu3 %v997_v55 }
  0xb8   : > { %472 = vrot.lane.b32.xlu2 %v733_v25, %s3764_s18  ;;  %953 = vrot.lane.b32.xlu0 %v3955_v24, %s3762_s16 }
  0xb9   : > { %627 = vrot.lane.b32.xlu1 %v3976_v33, %s3763_s17 }
  0xba   : > { %v622_v56 = vpop.permute.xlu0 %621  ;;  %v4042_v57 = vpop.permute.xlu2 %468 }
  0xbb   : > { %v4044_v58 = vpop.permute.xlu1 %635  ;;  %v654_v59 = vsel %vm643_vm2, %v620_v37, %v622_v56 }
  0xbc   : > { %v660_v60 = vsel %vm643_vm2, %v634_v50, %v4044_v58  ;;  %1287 = vmatpush.msra.mxu0 %v654_v59 }
  0xbd   : > { %1440 = vmatpush.msra.mxu2 %v660_v60 }
  0xc0   : > { %460 = vrot.lane.b32.xlu2 %v3959_v26, %s3764_s18  ;;  %939 = vrot.lane.b32.xlu0 %v3982_v35, %s3762_s16 }
  0xc1   : > { %615 = vrot.lane.b32.xlu1 %v3997_v41, %s3763_s17 }
  0xc2   : > { %v4055_v61 = vpop.permute.xlu0 %937  ;;  %v4057_v62 = vpop.permute.xlu2 %456 }
  0xc3   : > { %v991_v0 = vsel %vm989_vm1, %v4006_v43, %v4055_v61  ;;  %v608_v9 = vpop.permute.xlu1 %607 }
  0xc4   : > { %v649_v10 = vsel %vm643_vm2, %v608_v9, %v610_v49  ;;  %1528 = vmatpush.msra.mxu3 %v991_v0 }
  0xc5   : > { %1288 = vmatpush.msra.mxu0 %v649_v10  ;;  %3555 = vmatmul.msk.f32.vlgmr.msra.gmra.mxu3 %vm362_vm3, %v4062_v63 }
  0xc8   : > { %474 = vrot.lane.b32.xlu2 %v3979_v34, %s3764_s18  ;;  %603 = vrot.lane.b32.xlu0 %v4016_v47, %s3763_s17 }
  0xc9   : > { %448 = vrot.lane.b32.xlu1 %v3955_v24, %s3764_s18 }
  0xca   : > { %v4076_v11 = vpop.permute.xlu0 %623  ;;  %v443_v13 = vpop.permute.xlu2 %442 }
  0xcb   : > { %v655_v16 = vsel %vm643_vm2, %v622_v56, %v4076_v11  ;;  %v596_v17 = vpop.permute.xlu1 %595 }
  0xcc   : > { %v644_v18 = vsel %vm643_vm2, %v596_v17, %v598_v53  ;;  %1441 = vmatpush.msra.mxu2 %v655_v16  ;;  %v4224_v16 = vld [vmem:[%s6175_s1] sm:$0xff] }
  0xcd   : > { %1289 = vmatpush.msra.mxu0 %v644_v18  ;;  %3556 = vmatmul.msk.f32.gmra.mxu3 %vm362_vm3, %v4081_v15 }
  0xd0   : > { %450 = vrot.lane.b32.xlu2 %v3997_v41, %s3764_s18  ;;  %436 = vrot.lane.b32.xlu0 %v3982_v35, %s3764_s18 }
  0xd1   : > { %462 = vrot.lane.b32.xlu1 %v3976_v33, %s3764_s18 }
  0xd2   : > { %v4094_v20 = vpop.permute.xlu0 %611  ;;  %v962_v21 = vpop.permute.xlu2 %961 }
  0xd3   : > { %v650_v23 = vsel %vm643_vm2, %v610_v49, %v4094_v20  ;;  %v467_v24 = vpop.permute.xlu1 %466  ;;  %v1002_v25 = vsel %vm989_vm1, %v962_v21, %v4010_v45  ;;  %v4172_v49 = vld [vmem:[%s6175_s1 + $0x58] sm:$0xff]  ;;  %v4261_v21 = vld [vmem:[%s6175_s1 + $0x10] sm:$0xff] }
  0xd4   : > { %v494_v26 = vsel %vm478_vm4, %v467_v24, %v4042_v57  ;;  %1442 = vmatpush.msra.mxu2 %v650_v23 }
  0xd5   : > { %1290 = vmatpush.msra.mxu0 %v494_v26  ;;  %3557 = vmatmul.msk.f32.gmra.mxu3 %vm362_vm3, %v4099_v22  ;;  %v4298_v26 = vld [vmem:[%s6175_s1 + $0x98] sm:$0xff] }
  0xd8   : > { %969 = vrot.lane.b32.xlu2 %v3976_v33, %s3762_s16  ;;  %438 = vrot.lane.b32.xlu0 %v4016_v47, %s3764_s18 }
  0xd9   : > { %983 = vrot.lane.b32.xlu1 %v3979_v34, %s3762_s16  ;;  %v4129_v34 = vld [vmem:[%s3834_s14 + $0xd0] sm:$0xff] }
  0xda   : > { %v4115_v27 = vpop.permute.xlu0 %599  ;;  %v4117_v30 = vpop.permute.xlu2 %446 }
  0xdb   : > { %v645_v32 = vsel %vm643_vm2, %v598_v53, %v4115_v27  ;;  %v455_v35 = vpop.permute.xlu1 %454 }
  0xdc   : > { %v489_v33 = vsel %vm478_vm4, %v455_v35, %v4057_v62  ;;  %1443 = vmatpush.msra.mxu2 %v645_v32 }
  0xdd   : > { %1291 = vmatpush.msra.mxu0 %v489_v33  ;;  %3558 = vmatmul.msk.f32.gmra.mxu3 %vm362_vm3, %v4122_v31 }
  0xe0   : > { %806 = vrot.lane.b32.xlu2 %v4129_v34, %s3761_s15  ;;  %955 = vrot.lane.b32.xlu0 %v3997_v41, %s3762_s16 }
  0xe1   : > { %941 = vrot.lane.b32.xlu1 %v4016_v47, %s3762_s16  ;;  %v729_v47 = vld [vmem:[%s3834_s14 + $0x98] sm:$0xff] }
  0xe2   : > { %v4139_v37 = vpop.permute.xlu0 %470  ;;  %v934_v38 = vpop.permute.xlu2 %933 }
  0xe3   : > { %v495_v40 = vsel %vm478_vm4, %v4042_v57, %v4139_v37  ;;  %v976_v44 = vpop.permute.xlu1 %975  ;;  %v990_v45 = vsel %vm989_vm1, %v934_v38, %v4006_v43  ;;  %v4320_v38 = vld [vmem:[%s6175_s1 + $0x30] sm:$0xff] }
  0xe4   : > { %v1008_v41 = vsel %vm989_vm1, %v976_v44, %v3936_v14  ;;  %1444 = vmatpush.msra.mxu2 %v495_v40 }
  0xe5   : > { %1371 = vmatpush.msra.mxu1 %v1008_v41  ;;  %3559 = vmatmul.msk.f32.gmra.mxu3 %vm362_vm3, %v4144_v39 }
  0xe7   : > { %1372 = vmatpush.msra.mxu1 %v1002_v25  ;;  %v4293_v25 = vld [vmem:[%s6175_s1 + $0x20] sm:$0xff] }
  0xe8   : > { %770 = vrot.lane.b32.xlu2 %v4154_v46, %s3761_s15  ;;  %794 = vrot.lane.b32.xlu0 %v729_v47, %s3761_s15 }
  0xe9   : > { %782 = vrot.lane.b32.xlu1 %v4160_v48, %s3761_s15 }
  0xea   : > { %v445_v14 = vpop.permute.xlu0 %444  ;;  %v4167_v43 = vpop.permute.xlu2 %778 }
  0xeb   : > { %v4174_v50 = vpop.permute.xlu1 %458  ;;  %v484_v51 = vsel %vm478_vm4, %v443_v13, %v445_v14  ;;  %v485_v53 = vsel %vm478_vm4, %v445_v14, %v4117_v30  ;;  %v816_v56 = vsel %vm808_vm0, %v4004_v42, %v4167_v43  ;;  %v4197_v42 = vld [vmem:[%s6175_s1 + $0x68] sm:$0xff] }
  0xec   : > { %v490_v55 = vsel %vm478_vm4, %v4057_v62, %v4174_v50  ;;  %1292 = vmatpush.msra.mxu0 %v484_v51 }
  0xed   : > { %1445 = vmatpush.msra.mxu2 %v490_v55  ;;  %3560 = vmatmul.msk.f32.gmra.mxu3 %vm362_vm3, %v4172_v49  ;;  %v4377_v55 = vld [vmem:[%s6175_s1 + $0x50] sm:$0xff] }
  0xef   : > { %1446 = vmatpush.msra.mxu2 %v485_v53 }
  0xf0   : > { %617 = vrot.lane.b32.xlu2 %v4160_v48, %s3763_s17  ;;  %641 = vrot.lane.b32.xlu0 %v4129_v34, %s3763_s17 }
  0xf1   : > { %629 = vrot.lane.b32.xlu1 %v729_v47, %s3763_s17 }
  0xf2   : > { %v4192_v57 = vpop.permute.xlu2 %792  ;;  %v431_v59 = vpop.permute.xlu0 %430 }
  0xf3   : > { %v433_v60 = vpop.permute.xlu1 %432 }
  0xf4   : > { %v479_v62 = vsel %vm478_vm4, %v431_v59, %v433_v60 }
  0xf5   : > { %1293 = vmatpush.msra.mxu0 %v479_v62  ;;  %3561 = vmatmul.msk.f32.gmra.mxu3 %vm362_vm3, %v4197_v42 }
  0xf7   : > { %1294 = vmatpush.msra.mxu0 %v3838_v1 }
  0xf8   : > { %464 = vrot.lane.b32.xlu2 %v729_v47, %s3764_s18  ;;  %605 = vrot.lane.b32.xlu0 %v4154_v46, %s3763_s17 }
  0xf9   : > { %476 = vrot.lane.b32.xlu1 %v4129_v34, %s3764_s18  ;;  %1295 = vmatpush.msra.mxu0 %v3841_v2 }
  0xfa   : > { %v4209_v0 = vpop.permute.xlu2 %625  ;;  %v948_v9 = vpop.permute.xlu0 %947 }
  0xfb   : > { %v4214_v10 = vsel %vm643_vm2, %v4076_v11, %v4209_v0  ;;  %v4216_v13 = vpop.permute.xlu1 %434  ;;  %v996_v1 = vsel %vm989_vm1, %v948_v9, %v4030_v52  ;;  %1296 = vmatpush.msra.mxu0 %v3849_v3  ;;  %v4232_v11 = vld [vmem:[%s6175_s1 + $0x78] sm:$0xff] }
  0xfc   : > { %v480_v2 = vsel %vm478_vm4, %v433_v60, %v4216_v13  ;;  %1373 = vmatpush.msra.mxu1 %v996_v1  ;;  %v4410_v1 = vld [vmem:[%s6175_s1 + $0xd8] sm:$0xff] }
  0xfd   : > { %1447 = vmatpush.msra.mxu2 %v480_v2  ;;  %1297 = vmatpush.msra.mxu0 %v3852_v4  ;;  %v353_v2 = vld [vmem:[%s3834_s14 + $0xb8] sm:$0xff] }
  0xfe   : > { %1374 = vmatpush.msra.mxu1 %v990_v45  ;;  %1298 = vmatmul.f32.vlgmr.msra.gmra.mxu0 %v4224_v16 }
  0xff   : > { %1448 = vmatpush.msra.mxu2 %v3855_v5  ;;  %3535 = vmatmul.msk.f32.vlgmr.msra.gmra.mxu1 %vm362_vm3, %v4062_v63 }
 0x100   : > { %985 = vrot.lane.b32.xlu0 %v4129_v34, %s3762_s16  ;;  %3562 = vmatmul.msk.f32.gmra.mxu3 %vm362_vm3, %v4232_v11 }
 0x101   : > { %452 = vrot.lane.b32.xlu1 %v4160_v48, %s3764_s18  ;;  %1449 = vmatpush.msra.mxu2 %v3858_v6 }
 0x102   : > { %v4245_v3 = vpop.permute.xlu2 %613  ;;  %v803_v4 = vpop.permute.xlu0 %802  ;;  %971 = vrot.lane.b32.xlu2 %v729_v47, %s3762_s16  ;;  %v4351_v47 = vld [vmem:[%s6175_s1 + $0x40] sm:$0xff] }
 0x103   : > { %v651_v5 = vsel %vm643_vm2, %v4094_v20, %v4245_v3  ;;  %v791_v52 = vpop.permute.xlu1 %790  ;;  %v826_v17 = vsel %vm808_vm0, %v3924_v12, %v803_v4  ;;  %1450 = vmatpush.msra.mxu2 %v3861_v7  ;;  %v4267_v12 = vld [vmem:[%s6175_s1 + $0x88] sm:$0xff] }
 0x104   : > { %v821_v18 = vsel %vm808_vm0, %v3968_v29, %v791_v52  ;;  %v822_v6 = vsel %vm808_vm0, %v791_v52, %v4192_v57  ;;  %1590 = vmatpush.msrb.mxu1 %v826_v17 }
 0x105   : > { %1451 = vmatpush.msra.mxu2 %v3864_v8 }
 0x106   : > { %1452 = vmatmul.f32.vlgmr.msra.gmra.mxu2 %v4224_v16  ;;  %1591 = vmatpush.msrb.mxu1 %v821_v18 }
 0x107   : > { %1301 = vmatmul.f32.gmra.mxu0 %v4261_v21  ;;  %3536 = vmatmul.msk.f32.gmra.mxu1 %vm362_vm3, %v4081_v15 }
 0x108   : > { %1592 = vmatpush.msrb.mxu1 %v816_v56  ;;  %3563 = vmatmul.msk.f32.gmra.mxu3 %vm362_vm3, %v4267_v12  ;;  %v4382_v56 = vld [vmem:[%s6175_s1 + $0xc8] sm:$0xff] }
 0x109   : > { %440 = vrot.lane.b32.xlu0 %v4154_v46, %s3764_s18  ;;  %957 = vrot.lane.b32.xlu1 %v4160_v48, %s3762_s16  ;;  %v4356_v48 = vld [vmem:[%s6175_s1 + $0xb8] sm:$0xff]  ;;  %s3768_s18 = smov 125  }
 0x10a   : > { %v4279_v7 = vpop.permute.xlu2 %601  ;;  %v4281_v8 = vpop.permute.xlu0 %804 }
 0x10b   : > { %v646_v29 = vsel %vm643_vm2, %v4115_v27, %v4279_v7  ;;  %v767_v20 = vpop.permute.xlu1 %766  ;;  %v827_v23 = vsel %vm808_vm0, %v803_v4, %v4281_v8 }
 0x10c   : > { %v811_v24 = vsel %vm808_vm0, %v3966_v28, %v767_v20  ;;  %1744 = vmatpush.msrb.mxu0 %v827_v23 }
 0x10d   : > { %1593 = vmatpush.msrb.mxu1 %v811_v24 }
 0x10e   : > { %1455 = vmatmul.f32.gmra.mxu2 %v4261_v21  ;;  %1745 = vmatpush.msrb.mxu0 %v822_v6  ;;  %v4436_v6 = vld [vmem:[%s6175_s1 + $0x70] sm:$0xff] }
 0x10f   : > { %1304 = vmatmul.f32.gmra.mxu0 %v4293_v25  ;;  %3537 = vmatmul.msk.f32.gmra.mxu1 %vm362_vm3, %v4099_v22 }
 0x110   : > { %3564 = vmatmul.msk.f32.gmra.mxu3 %vm362_vm3, %v4298_v26 }
 0x111   : > { %943 = vrot.lane.b32.xlu0 %v4154_v46, %s3762_s16 }
 0x112   : > { %v473_v28 = vpop.permute.xlu2 %472  ;;  %v638_v27 = vpop.permute.xlu0 %637 }
 0x113   : > { %v496_v32 = vsel %vm478_vm4, %v4139_v37, %v473_v28  ;;  %v4310_v35 = vpop.permute.xlu1 %780  ;;  %v661_v33 = vsel %vm643_vm2, %v4044_v58, %v638_v27  ;;  %v4325_v37 = vld [vmem:[%s6175_s1 + $0xa8] sm:$0xff] }
 0x114   : > { %v817_v34 = vsel %vm808_vm0, %v4167_v43, %v4310_v35  ;;  %1594 = vmatpush.msrb.mxu1 %v661_v33 }
 0x115   : > { %1746 = vmatpush.msrb.mxu0 %v817_v34  ;;  %v4466_v34 = vld [vmem:[%s6175_s1 + $0x80] sm:$0xff] }
 0x116   : > { %1458 = vmatmul.f32.gmra.mxu2 %v4293_v25  ;;  %1595 = vmatpush.msrb.mxu1 %v4214_v10  ;;  %v4405_v10 = vld [vmem:[%s6175_s1 + $0x60] sm:$0xff] }
 0x117   : > { %1307 = vmatmul.f32.gmra.mxu0 %v4320_v38  ;;  %3538 = vmatmul.msk.f32.gmra.mxu1 %vm362_vm3, %v4122_v31 }
 0x118   : > { %1596 = vmatpush.msrb.mxu1 %v651_v5  ;;  %3565 = vmatmul.msk.f32.gmra.mxu3 %vm362_vm3, %v4325_v37 }
 0x11a   : > { %v4334_v58 = vpop.permute.xlu2 %460  ;;  %v4336_v40 = vpop.permute.xlu0 %981  ;;  %1597 = vmatpush.msrb.mxu1 %v646_v29  ;;  %v4441_v29 = vld [vmem:[%s6175_s1 + $0xe8] sm:$0xff] }
 0x11b   : > { %v491_v44 = vsel %vm478_vm4, %v4174_v50, %v4334_v58  ;;  %v4341_v45 = vpop.permute.xlu1 %768  ;;  %v1010_v41 = vsel %vm989_vm1, %v3990_v36, %v4336_v40 }
 0x11c   : > { %v812_v46 = vsel %vm808_vm0, %v767_v20, %v4341_v45  ;;  %1598 = vmatpush.msrb.mxu1 %v496_v32  ;;  %1679 = vmatpush.msrb.mxu3 %v1010_v41  ;;  %v341_v20 = vld [vmem:[%s3834_s14 + $0x48] sm:$0xff] }
 0x11d   : > { %1747 = vmatpush.msrb.mxu0 %v812_v46 }
 0x11e   : > { %1461 = vmatmul.f32.gmra.mxu2 %v4320_v38  ;;  %1599 = vmatpush.msrb.mxu1 %v491_v44 }
 0x11f   : > { %1310 = vmatmul.f32.gmra.mxu0 %v4351_v47  ;;  %3539 = vmatmul.msk.f32.gmra.mxu1 %vm362_vm3, %v4144_v39 }
 0x120   : > { %3566 = vmatmul.msk.f32.gmra.mxu3 %vm362_vm3, %v4356_v48 }
 0x122   : > { %v4364_v36 = vpop.permute.xlu2 %474  ;;  %v968_v14 = vpop.permute.xlu0 %967 }
 0x123   : > { %v497_v43 = vsel %vm478_vm4, %v473_v28, %v4364_v36  ;;  %v4368_v50 = vpop.permute.xlu1 %639  ;;  %v1004_v51 = vsel %vm989_vm1, %v3948_v19, %v968_v14 }
 0x124   : > { %v662_v53 = vsel %vm643_vm2, %v638_v27, %v4368_v50  ;;  %1680 = vmatpush.msrb.mxu3 %v1004_v51 }
 0x125   : > { %1748 = vmatpush.msrb.mxu0 %v662_v53 }
 0x126   : > { %1464 = vmatmul.f32.gmra.mxu2 %v4351_v47 }
 0x127   : > { %1313 = vmatmul.f32.gmra.mxu0 %v4377_v55  ;;  %3540 = vmatmul.msk.f32.gmra.mxu1 %vm362_vm3, %v4172_v49 }
 0x128   : > { %3567 = vmatmul.msk.f32.gmra.mxu3 %vm362_vm3, %v4382_v56 }
 0x12a   : > { %v4390_v19 = vpop.permute.xlu2 %450  ;;  %v4392_v59 = vpop.permute.xlu0 %953 }
 0x12b   : > { %v4394_v60 = vpop.permute.xlu1 %627  ;;  %v998_v62 = vsel %vm989_vm1, %v4032_v54, %v4392_v59  ;;  %v347_v54 = vld [vmem:[%s3834_s14 + $0x80] sm:$0xff] }
 0x12c   : > { %v657_v9 = vsel %vm643_vm2, %v4209_v0, %v4394_v60  ;;  %1681 = vmatpush.msrb.mxu3 %v998_v62 }
 0x12d   : > { %1749 = vmatpush.msrb.mxu0 %v657_v9 }
 0x12e   : > { %1467 = vmatmul.f32.gmra.mxu2 %v4377_v55 }
 0x12f   : > { %3541 = vmatmul.msk.f32.gmra.mxu1 %vm362_vm3, %v4197_v42  ;;  %1316 = vmatmul.f32.gmra.mxu0 %v4405_v10 }
 0x130   : > { %3568 = vmatmul.msk.f32.gmra.mxu3 %vm362_vm3, %v4410_v1 }
 0x132   : > { %v4420_v0 = vpop.permute.xlu2 %969  ;;  %v4422_v4 = vpop.permute.xlu0 %939 }
 0x133   : > { %v4426_v5 = vsel %vm989_vm1, %v968_v14, %v4420_v0  ;;  %v616_v52 = vpop.permute.xlu1 %615  ;;  %v992_v17 = vsel %vm989_vm1, %v4055_v61, %v4422_v4  ;;  %v335_v61 = vld [vmem:[%s3834_s14 + $0x10] sm:$0xff] }
 0x134   : > { %v652_v18 = vsel %vm643_vm2, %v4245_v3, %v616_v52  ;;  %1682 = vmatpush.msrb.mxu3 %v992_v17 }
 0x135   : > { %1750 = vmatpush.msrb.mxu0 %v652_v18 }
 0x136   : > { %1470 = vmatmul.f32.gmra.mxu2 %v4405_v10 }
 0x137   : > { %3542 = vmatmul.msk.f32.gmra.mxu1 %vm362_vm3, %v4232_v11  ;;  %1319 = vmatmul.f32.gmra.mxu0 %v4436_v6 }
 0x138   : > { %3569 = vmatmul.msk.f32.gmra.mxu3 %vm362_vm3, %v4441_v29 }
 0x13a   : > { %v807_v3 = vpop.permute.xlu2 %806  ;;  %v4451_v23 = vpop.permute.xlu0 %603 }
 0x13b   : > { %v828_v24 = vsel %vm808_vm0, %v4281_v8, %v807_v3  ;;  %876 = vst.msk [vmem:[#allocation2 + $0x2f8] sm:$0xff] %vm362_vm3, %v807_v3  ;;  %v449_v28 = vpop.permute.xlu1 %448  ;;  %v647_v27 = vsel %vm643_vm2, %v4279_v7, %v4451_v23  ;;  %v4471_v8 = vld [vmem:[%s6175_s1 + $0xf8] sm:$0xff]  ;;  %v4554_v3 = vld [vmem:[%s6175_s1 + $0xb0] sm:$0xff] }
 0x13c   : > { %v486_v32 = vsel %vm478_vm4, %v4117_v30, %v449_v28  ;;  %v487_v33 = vsel %vm478_vm4, %v449_v28, %v4390_v19  ;;  %1751 = vmatpush.msrb.mxu0 %v647_v27 }
 0x13d   : > { %1600 = vmatpush.msrb.mxu1 %v486_v32 }
 0x13e   : > { %1473 = vmatmul.f32.gmra.mxu2 %v4436_v6  ;;  %1752 = vmatpush.msrb.mxu0 %v497_v43  ;;  %v4491_v43 = vld [vmem:[%s6175_s1 + $0x90] sm:$0xff] }
 0x13f   : > { %3543 = vmatmul.msk.f32.gmra.mxu1 %vm362_vm3, %v4267_v12  ;;  %1322 = vmatmul.f32.gmra.mxu0 %v4466_v34 }
 0x140   : > { %3570 = vmatmul.msk.f32.gmra.mxu3 %vm362_vm3, %v4471_v8 }
 0x142   : > { %v771_v30 = vpop.permute.xlu2 %770  ;;  %v437_v7 = vpop.permute.xlu0 %436 }
 0x143   : > { %v4481_v44 = vsel %vm808_vm0, %v4341_v45, %v771_v30  ;;  %858 = vst.msk [vmem:[#allocation2 + $0x268] sm:$0xff] %vm362_vm3, %v771_v30  ;;  %v463_v41 = vpop.permute.xlu1 %462  ;;  %v481_v46 = vsel %vm478_vm4, %v4216_v13, %v437_v7  ;;  %v4497_v45 = vld [vmem:[%s6175_s1 + $0x108] sm:$0xff]  ;;  %v4580_v30 = vld [vmem:[%s6175_s1 + $0xc0] sm:$0xff] }
 0x144   : > { %v492_v14 = vsel %vm478_vm4, %v4334_v58, %v463_v41  ;;  %1601 = vmatpush.msrb.mxu1 %v481_v46 }
 0x145   : > { %1753 = vmatpush.msrb.mxu0 %v492_v14 }
 0x146   : > { %1476 = vmatmul.f32.gmra.mxu2 %v4466_v34  ;;  %1602 = vmatpush.msrb.mxu1 %v353_v2  ;;  %v4520_v2 = vld [vmem:[%s6175_s1 + $0xa0] sm:$0xff] }
 0x147   : > { %1754 = vmatpush.msrb.mxu0 %v487_v33  ;;  %3544 = vmatmul.msk.f32.gmra.mxu1 %vm362_vm3, %v4298_v26 }
 0x148   : > { %1603 = vmatpush.msrb.mxu1 %v347_v54  ;;  %1325 = vmatmul.f32.gmra.mxu0 %v4491_v43  ;;  %v4526_v54 = vld [vmem:[%s6175_s1 + $0x118] sm:$0xff] }
 0x149   : > { %3571 = vmatmul.msk.f32.gmra.mxu3 %vm362_vm3, %v4497_v45 }
 0x14a   : > { %v618_v13 = vpop.permute.xlu2 %617  ;;  %v4504_v58 = vpop.permute.xlu0 %438  ;;  %1604 = vmatpush.msrb.mxu1 %v341_v20 }
 0x14b   : > { %v4507_v51 = vsel %vm643_vm2, %v616_v52, %v618_v13  ;;  %699 = vst.msk [vmem:[#allocation2 + $0x1d8] sm:$0xff] %vm362_vm3, %v618_v13  ;;  %v4510_v53 = vpop.permute.xlu1 %983  ;;  %v482_v62 = vsel %vm478_vm4, %v437_v7, %v4504_v58  ;;  %v897_v52 = vld [vmem:[%s3834_s14 + $0xa0] sm:$0xff] }
 0x14c   : > { %v1011_v9 = vsel %vm989_vm1, %v4336_v40, %v4510_v53  ;;  %1605 = vmatpush.msrb.mxu1 %v335_v61  ;;  %1755 = vmatpush.msrb.mxu0 %v482_v62  ;;  %v890_v62 = vld [vmem:[%s3834_s14 + $0x68] sm:$0xff] }
 0x14d   : > { %1833 = vmatpush.msrb.mxu2 %v1011_v9  ;;  %3663 = vmatpush.msra.mxu3 %v1011_v9 }
 0x14e   : > { %1479 = vmatmul.f32.gmra.mxu2 %v4491_v43  ;;  %1898 = vmatpush.msra.mxu1 %v828_v24  ;;  %v4560_v24 = vld [vmem:[%s6175_s1 + $0x128] sm:$0xff] }
 0x14f   : > { %3545 = vmatmul.msk.f32.gmra.mxu1 %vm362_vm3, %v4325_v37  ;;  %1834 = vmatpush.msrb.mxu2 %v4426_v5 }
 0x150   : > { %1328 = vmatmul.f32.gmra.mxu0 %v4520_v2  ;;  %3664 = vmatpush.msra.mxu3 %v4426_v5 }
 0x151   : > { %3572 = vmatmul.msk.f32.gmra.mxu3 %vm362_vm3, %v4526_v54  ;;  %973 = vrot.lane.b32.xlu1 %v897_v52, %s3762_s16 }
 0x152   : > { %v465_v40 = vpop.permute.xlu2 %464  ;;  %v4537_v17 = vpop.permute.xlu0 %955 }
 0x153   : > { %v4540_v18 = vsel %vm478_vm4, %v463_v41, %v465_v40  ;;  %540 = vst.msk [vmem:[#allocation2 + $0x148] sm:$0xff] %vm362_vm3, %v465_v40  ;;  %v4543_v20 = vpop.permute.xlu1 %941  ;;  %v999_v61 = vsel %vm989_vm1, %v4392_v59, %v4537_v17  ;;  %v4562_v59 = vpop.f32.mrf.mxu3 }
 0x154   : > { %v993_v5 = vsel %vm989_vm1, %v4422_v4, %v4543_v20  ;;  %3665 = vmatpush.msra.mxu3 %v999_v61  ;;  %1835 = vmatpush.msrb.mxu2 %v999_v61  ;;  %v3765_v61 = vmov 0  }
 0x155   : > { %3701 = vset.pattern.permute.xlu2 %v3765_v61  ;;  %3702 = vset.pattern.permute.xlu0 %v3765_v61  ;;  %v336_v61 = vld [vmem:[%s3834_s14 + $0x18] sm:$0xff] }
 0x156   : > { %1482 = vmatmul.f32.gmra.mxu2 %v4520_v2  ;;  %3666 = vmatpush.msra.mxu3 %v993_v5 }
 0x157   : > { %3546 = vmatmul.msk.f32.gmra.mxu1 %vm362_vm3, %v4356_v48  ;;  %1836 = vmatpush.msrb.mxu2 %v993_v5 }
 0x158   : > { %1331 = vmatmul.f32.gmra.mxu0 %v4554_v3 }
 0x159   : > { %3573 = vmatmul.msk.f32.gmra.mxu3 %vm362_vm3, %v4560_v24 }
 0x15a   : > { %v795_v4 = vpop.permute.xlu0 %794 }
 0x15b   : > { %v783_v28 = vpop.permute.xlu1 %782  ;;  %v823_v27 = vsel %vm808_vm0, %v4192_v57, %v795_v4  ;;  %870 = vst.msk [vmem:[#allocation2 + $0x2c8] sm:$0xff] %vm362_vm3, %v795_v4  ;;  %v904_v57 = vld [vmem:[%s3834_s14 + $0xd8] sm:$0xff]  ;;  %v4594_v41 = vpop.f32.mrf.mxu3 }
 0x15c   : > { %v818_v32 = vsel %vm808_vm0, %v4310_v35, %v783_v28  ;;  %864 = vst.msk [vmem:[#allocation2 + $0x298] sm:$0xff] %vm362_vm3, %v783_v28  ;;  %1899 = vmatpush.msra.mxu1 %v823_v27  ;;  %v4575_v33 = vpop.permute.xlu2 %971  ;;  %v4590_v35 = vld [vmem:[%s6175_s1 + $0x138] sm:$0xff]  ;;  %987 = vrot.lane.b32.xlu2 %v904_v57, %s3762_s16 }
 0x15d   : > { %v1006_v7 = vsel %vm989_vm1, %v4420_v0, %v4575_v33 }
 0x15e   : > { %1485 = vmatmul.f32.gmra.mxu2 %v4554_v3  ;;  %1900 = vmatpush.msra.mxu1 %v818_v32 }
 0x15f   : > { %3547 = vmatmul.msk.f32.gmra.mxu1 %vm362_vm3, %v4382_v56 }
 0x160   : > { %1901 = vmatpush.msra.mxu1 %v4481_v44  ;;  %1334 = vmatmul.f32.gmra.mxu0 %v4580_v30  ;;  %v4610_v44 = vld [vmem:[%s6175_s1 + $0xd0] sm:$0xff] }
 0x161   : > { %3574 = vmatmul.msk.f32.gmra.mxu3 %vm362_vm3, %v4590_v35 }
 0x162   : > { %v642_v0 = vpop.permute.xlu0 %641 }
 0x163   : > { %v630_v46 = vpop.permute.xlu1 %629  ;;  %v663_v14 = vsel %vm643_vm2, %v4368_v50, %v642_v0  ;;  %711 = vst.msk [vmem:[#allocation2 + $0x238] sm:$0xff] %vm362_vm3, %v642_v0  ;;  %v4616_v50 = vpop.f32.mrf.mxu3 }
 0x164   : > { %v658_v13 = vsel %vm643_vm2, %v4394_v60, %v630_v46  ;;  %705 = vst.msk [vmem:[#allocation2 + $0x208] sm:$0xff] %vm362_vm3, %v630_v46  ;;  %1902 = vmatpush.msra.mxu1 %v663_v14  ;;  %959 = vrot.lane.b32.xlu2 %v890_v62, %s3762_s16  ;;  %v4680_v14 = vld [vmem:[%s6175_s1 + $0x100] sm:$0xff] }
 0x166   : > { %1488 = vmatmul.f32.gmra.mxu2 %v4580_v30  ;;  %1903 = vmatpush.msra.mxu1 %v658_v13  ;;  %v354_v13 = vld [vmem:[%s3834_s14 + $0xc0] sm:$0xff] }
 0x167   : > { %3548 = vmatmul.msk.f32.gmra.mxu1 %vm362_vm3, %v4410_v1  ;;  %1756 = vmatpush.msrb.mxu0 %v354_v13  ;;  %v4739_v13 = vld [vmem:[%s6175_s1 + $0x130] sm:$0xff] }
 0x168   : > { %1904 = vmatpush.msra.mxu1 %v4507_v51  ;;  %1337 = vmatmul.f32.gmra.mxu0 %v4610_v44  ;;  %v4632_v51 = vld [vmem:[%s6175_s1 + $0xe0] sm:$0xff] }
 0x169   : > { %3575 = vmatmul.msk.f32.vlgmr.msrb.gmra.mxu3 %vm362_vm3, %v4062_v63  ;;  %v3010_v63 = vld [vmem:[%s6176_s2] sm:$0xff] }
 0x16a   : > { %v606_v60 = vpop.permute.xlu0 %605 }
 0x16b   : > { %v477_v9 = vpop.permute.xlu1 %476  ;;  %v648_v52 = vsel %vm643_vm2, %v4451_v23, %v606_v60  ;;  %693 = vst.msk [vmem:[#allocation2 + $0x1a8] sm:$0xff] %vm362_vm3, %v606_v60  ;;  %v348_v60 = vld [vmem:[%s3834_s14 + $0x88] sm:$0xff] }
 0x16c   : > { %v498_v40 = vsel %vm478_vm4, %v4364_v36, %v477_v9  ;;  %546 = vst.msk [vmem:[#allocation2 + $0x178] sm:$0xff] %vm362_vm3, %v477_v9  ;;  %1905 = vmatpush.msra.mxu1 %v648_v52  ;;  %v4640_v36 = vpop.f32.mrf.mxu3  ;;  %3016 = vperm.xlu2 %3701, %v3010_v63   ;;  %v342_v9 = vld [vmem:[%s3834_s14 + $0x50] sm:$0xff] }
 0x16d   : > { %1757 = vmatpush.msrb.mxu0 %v348_v60 }
 0x16e   : > { %1491 = vmatmul.f32.gmra.mxu2 %v4610_v44  ;;  %1906 = vmatpush.msra.mxu1 %v498_v40 }
 0x16f   : > { %3549 = vmatmul.msk.f32.gmra.mxu1 %vm362_vm3, %v4441_v29  ;;  %1758 = vmatpush.msrb.mxu0 %v342_v9 }
 0x170   : > { %1907 = vmatpush.msra.mxu1 %v4540_v18  ;;  %1340 = vmatmul.f32.gmra.mxu0 %v4632_v51  ;;  %v4657_v18 = vld [vmem:[%s6175_s1 + $0xf0] sm:$0xff] }
 0x171   : > { %3576 = vmatmul.msk.f32.gmra.mxu3 %vm362_vm3, %v4081_v15  ;;  %v3012_v15 = vld [vmem:[%s6176_s2 + $0x10] sm:$0xff]  ;;  %1759 = vmatpush.msrb.mxu0 %v336_v61 }
 0x172   : > { %v4646_v23 = vpop.permute.xlu0 %985 }
 0x173   : > { %v453_v5 = vpop.permute.xlu1 %452  ;;  %v1012_v4 = vsel %vm989_vm1, %v4510_v53, %v4646_v23  ;;  %v883_v53 = vld [vmem:[%s3834_s14 + $0x30] sm:$0xff] }
 0x174   : > { %v488_v28 = vsel %vm478_vm4, %v4390_v19, %v453_v5  ;;  %534 = vst.msk [vmem:[#allocation2 + $0x118] sm:$0xff] %vm362_vm3, %v453_v5  ;;  %1987 = vmatpush.msrb.mxu3 %v1012_v4  ;;  %v4665_v19 = vpop.f32.mrf.mxu3  ;;  %3026 = vperm.xlu2 %3701, %v3012_v15   ;;  %v4706_v5 = vld [vmem:[%s6175_s1 + $0x110] sm:$0xff] }
 0x175   : > { %1908 = vmatpush.msra.mxu1 %v488_v28  ;;  %945 = vrot.lane.b32.xlu0 %v883_v53, %s3762_s16 }
 0x176   : > { %1494 = vmatmul.f32.gmra.mxu2 %v4632_v51  ;;  %1988 = vmatpush.msrb.mxu3 %v1006_v7 }
 0x177   : > { %3550 = vmatmul.msk.f32.gmra.mxu1 %vm362_vm3, %v4471_v8 }
 0x178   : > { %1343 = vmatmul.f32.gmra.mxu0 %v4657_v18 }
 0x179   : > { %3577 = vmatmul.msk.f32.gmra.mxu3 %vm362_vm3, %v4099_v22 }
 0x17b   : > { %v1299_v27 = vpop.f32.mrf.mxu0  ;;  %v441_v32 = vpop.permute.xlu0 %440 }
 0x17c   : > { %v1376_v57 = vpop.f32.mrf.mxu1  ;;  %v483_v7 = vsel %vm478_vm4, %v4504_v58, %v441_v32  ;;  %528 = vst.msk [vmem:[#allocation2 + $0xe8] sm:$0xff] %vm362_vm3, %v441_v32  ;;  %v4675_v0 = vpop.permute.xlu1 %957  ;;  %v3013_v58 = vld [vmem:[%s6176_s2 + $0x18] sm:$0xff] }
 0x17d   : > { %v1377_v46 = vadd.f32 %v1376_v57, %v1299_v27  ;;  %v1000_v22 = vsel %vm989_vm1, %v4537_v17, %v4675_v0  ;;  %1909 = vmatpush.msra.mxu1 %v483_v7  ;;  %v4692_v62 = vpop.f32.mrf.mxu3  ;;  %3031 = vperm.xlu2 %3701, %v3013_v58   ;;  %v3011_v17 = vld [vmem:[%s6176_s2 + $0x8] sm:$0xff] }
 0x17e   : > { %1497 = vmatmul.f32.gmra.mxu2 %v4657_v18  ;;  %1989 = vmatpush.msrb.mxu3 %v1000_v22 }
 0x17f   : > { %2206 = vst [vmem:[#allocation3] sm:$0xff] %v1377_v46  ;;  %3551 = vmatmul.msk.f32.gmra.mxu1 %vm362_vm3, %v4497_v45  ;;  %3021 = vperm.xlu0 %3702, %v3011_v17  }
 0x180   : > { %1346 = vmatmul.f32.gmra.mxu0 %v4680_v14 }
 0x181   : > { %3578 = vmatmul.msk.f32.gmra.mxu3 %vm362_vm3, %v4122_v31 }
 0x183   : > { %v4708_v4 = vpop.permute.xlu0 %943 }
 0x184   : > { %v1302_v52 = vpop.f32.mrf.mxu0  ;;  %v1379_v40 = vpop.f32.mrf.mxu1  ;;  %v994_v31 = vsel %vm989_vm1, %v4543_v20, %v4708_v4  ;;  %v4725_v20 = vld [vmem:[%s6175_s1 + $0x120] sm:$0xff] }
 0x185   : > { %v1380_v63 = vadd.f32 %v1379_v40, %v1302_v52  ;;  %v4716_v28 = vpop.f32.mrf.mxu3  ;;  %1990 = vmatpush.msrb.mxu3 %v994_v31  ;;  %v1197_v31 = vld [vmem:[#allocation2 + $0x2f8] sm:$0xff] }
 0x186   : > { %1500 = vmatmul.f32.gmra.mxu2 %v4680_v14  ;;  %2052 = vmatpush.msra.mxu0 %v1197_v31 }
 0x187   : > { %2212 = vst [vmem:[#allocation3 + $0x30] sm:$0xff] %v1380_v63  ;;  %3552 = vmatmul.msk.f32.gmra.mxu1 %vm362_vm3, %v4526_v54 }
 0x188   : > { %1349 = vmatmul.f32.gmra.mxu0 %v4706_v5 }
 0x189   : > { %v1453_v15 = vpop.f32.mrf.mxu2  ;;  %3579 = vmatmul.msk.f32.gmra.mxu3 %vm362_vm3, %v4144_v39 }
 0x18a   : > { %v1531_v53 = vadd.f32 %v4562_v59, %v1453_v15 }
 0x18c   : > { %2207 = vst [vmem:[#allocation3 + $0x8] sm:$0xff] %v1531_v53  ;;  %v1305_v27 = vpop.f32.mrf.mxu0  ;;  %v1382_v32 = vpop.f32.mrf.mxu1  ;;  %v4762_v53 = vld [vmem:[%s6175_s1 + $0x8] sm:$0xff] }
 0x18d   : > { %v1383_v57 = vadd.f32 %v1382_v32, %v1305_v27  ;;  %v4730_v7 = vpop.f32.mrf.mxu3 }
 0x18e   : > { %1503 = vmatmul.f32.gmra.mxu2 %v4706_v5 }
 0x18f   : > { %2218 = vst [vmem:[#allocation3 + $0x60] sm:$0xff] %v1383_v57  ;;  %3553 = vmatmul.msk.f32.gmra.mxu1 %vm362_vm3, %v4560_v24 }
 0x190   : > { %1352 = vmatmul.f32.gmra.mxu0 %v4725_v20 }
 0x191   : > { %v1456_v39 = vpop.f32.mrf.mxu2  ;;  %3580 = vmatmul.msk.f32.gmra.mxu3 %vm362_vm3, %v4172_v49 }
 0x192   : > { %v1534_v59 = vadd.f32 %v4594_v41, %v1456_v39  ;;  %v1185_v39 = vld [vmem:[#allocation2 + $0x298] sm:$0xff] }
 0x194   : > { %2213 = vst [vmem:[#allocation3 + $0x38] sm:$0xff] %v1534_v59  ;;  %v1308_v46 = vpop.f32.mrf.mxu0  ;;  %v1385_v22 = vpop.f32.mrf.mxu1  ;;  %v1179_v59 = vld [vmem:[#allocation2 + $0x268] sm:$0xff] }
 0x195   : > { %v1386_v58 = vadd.f32 %v1385_v22, %v1308_v46  ;;  %v4744_v60 = vpop.f32.mrf.mxu3  ;;  %v4778_v22 = vld [vmem:[%s6175_s1 + $0x18] sm:$0xff] }
 0x196   : > { %1506 = vmatmul.f32.gmra.mxu2 %v4725_v20 }
 0x197   : > { %2224 = vst [vmem:[#allocation3 + $0x90] sm:$0xff] %v1386_v58  ;;  %3554 = vmatmul.msk.f32.gmra.mxu1 %vm362_vm3, %v4590_v35 }
 0x198   : > { %1355 = vmatmul.f32.gmra.mxu0 %v4739_v13 }
 0x199   : > { %v1459_v49 = vpop.f32.mrf.mxu2  ;;  %3581 = vmatmul.msk.f32.gmra.mxu3 %vm362_vm3, %v4197_v42 }
 0x19a   : > { %v1537_v41 = vadd.f32 %v4616_v50, %v1459_v49 }
 0x19c   : > { %2219 = vst [vmem:[#allocation3 + $0x68] sm:$0xff] %v1537_v41  ;;  %v1311_v17 = vpop.f32.mrf.mxu0  ;;  %v1388_v9 = vpop.f32.mrf.mxu1 }
 0x19d   : > { %v1389_v52 = vadd.f32 %v1388_v9, %v1311_v17  ;;  %v4753_v40 = vpop.f32.mrf.mxu3  ;;  %v1167_v17 = vld [vmem:[#allocation2 + $0x208] sm:$0xff]  ;;  %v1161_v9 = vld [vmem:[#allocation2 + $0x1d8] sm:$0xff] }
 0x19e   : > { %1509 = vmatmul.f32.gmra.mxu2 %v4739_v13 }
 0x19f   : > { %1606 = vmatmul.f32.vlgmr.msrb.gmra.mxu1 %v4224_v16  ;;  %2398 = vrot.lane.b32.xlu2 %v1389_v52, %s3766_s22 }
 0x1a0   : > { %1760 = vmatmul.f32.vlgmr.msrb.gmra.mxu0 %v4224_v16 }
 0x1a1   : > { %v1462_v61 = vpop.f32.mrf.mxu2  ;;  %3582 = vmatmul.msk.f32.gmra.mxu3 %vm362_vm3, %v4232_v11  ;;  %v1191_v11 = vld [vmem:[#allocation2 + $0x2c8] sm:$0xff] }
 0x1a2   : > { %v1540_v42 = vadd.f32 %v4640_v36, %v1462_v61  ;;  %2053 = vmatpush.msra.mxu0 %v1191_v11  ;;  %v4793_v61 = vld [vmem:[%s6175_s1 + $0x28] sm:$0xff] }
 0x1a3   : > { %v1143_v11 = vld [vmem:[#allocation2 + $0x148] sm:$0xff] }
 0x1a4   : > { %2225 = vst [vmem:[#allocation3 + $0x98] sm:$0xff] %v1540_v42  ;;  %v1314_v50 = vpop.f32.mrf.mxu0  ;;  %v1391_v63 = vpop.f32.mrf.mxu1  ;;  %2054 = vmatpush.msra.mxu0 %v1185_v39 }
 0x1a5   : > { %v1392_v15 = vadd.f32 %v1391_v63, %v1314_v50  ;;  %v4768_v16 = vpop.f32.mrf.mxu3 }
 0x1a6   : > { %3595 = vmatmul.msk.f32.vlgmr.msrb.gmra.mxu2 %vm362_vm3, %v4762_v53  ;;  %2055 = vmatpush.msra.mxu0 %v1179_v59 }
 0x1a7   : > { %1609 = vmatmul.f32.gmra.mxu1 %v4261_v21  ;;  %2410 = vrot.lane.b32.xlu0 %v1392_v15, %s3766_s22 }
 0x1a8   : > { %1763 = vmatmul.f32.gmra.mxu0 %v4261_v21 }
 0x1a9   : > { %v1465_v36 = vpop.f32.mrf.mxu2  ;;  %3583 = vmatmul.msk.f32.gmra.mxu3 %vm362_vm3, %v4267_v12  ;;  %v1173_v12 = vld [vmem:[#allocation2 + $0x238] sm:$0xff] }
 0x1aa   : > { %v1543_v27 = vadd.f32 %v4665_v19, %v1465_v36  ;;  %2056 = vmatpush.msra.mxu0 %v1173_v12 }
 0x1ac   : > { %v1394_v32 = vpop.f32.mrf.mxu1  ;;  %v1317_v57 = vpop.f32.mrf.mxu0  ;;  %2400 = vrot.lane.b32.xlu1 %v1543_v27, %s3766_s22  ;;  %2057 = vmatpush.msra.mxu0 %v1167_v17 }
 0x1ad   : > { %v1395_v46 = vadd.f32 %v1394_v32, %v1317_v57  ;;  %v4783_v21 = vpop.f32.mrf.mxu3 }
 0x1ae   : > { %3596 = vmatmul.msk.f32.gmra.mxu2 %vm362_vm3, %v4778_v22  ;;  %2058 = vmatpush.msra.mxu0 %v1161_v9 }
 0x1af   : > { %1612 = vmatmul.f32.gmra.mxu1 %v4293_v25 }
 0x1b0   : > { %1766 = vmatmul.f32.gmra.mxu0 %v4293_v25 }
 0x1b1   : > { %v1468_v19 = vpop.f32.mrf.mxu2  ;;  %3584 = vmatmul.msk.f32.gmra.mxu3 %vm362_vm3, %v4298_v26  ;;  %v1155_v26 = vld [vmem:[#allocation2 + $0x1a8] sm:$0xff] }
 0x1b2   : > { %v1546_v58 = vadd.f32 %v4692_v62, %v1468_v19  ;;  %2059 = vmatpush.msra.mxu0 %v1155_v26 }
 0x1b4   : > { %v1397_v49 = vpop.f32.mrf.mxu1  ;;  %v1320_v41 = vpop.f32.mrf.mxu0  ;;  %2412 = vrot.lane.b32.xlu2 %v1546_v58, %s3766_s22 }
 0x1b5   : > { %v1398_v52 = vadd.f32 %v1397_v49, %v1320_v41  ;;  %v4798_v25 = vpop.f32.mrf.mxu3 }
 0x1b6   : > { %3597 = vmatmul.msk.f32.gmra.mxu2 %vm362_vm3, %v4793_v61  ;;  %v988_v42 = vpop.permute.xlu2 %987 }
 0x1b7   : > { %1615 = vmatmul.f32.gmra.mxu1 %v4320_v38  ;;  %v1013_v63 = vsel %vm989_vm1, %v4646_v23, %v988_v42 }
 0x1b8   : > { %1769 = vmatmul.f32.gmra.mxu0 %v4320_v38  ;;  %1061 = vst.msk [vmem:[#allocation2 + $0x3b8] sm:$0xff] %vm362_vm3, %v1013_v63  ;;  %v1149_v38 = vld [vmem:[#allocation2 + $0x178] sm:$0xff] }
 0x1b9   : > { %v1471_v62 = vpop.f32.mrf.mxu2  ;;  %3585 = vmatmul.msk.f32.gmra.mxu3 %vm362_vm3, %v4325_v37  ;;  %2060 = vmatpush.msra.mxu0 %v1149_v38  ;;  %v4812_v37 = vld [vmem:[%s6175_s1 + $0x38] sm:$0xff] }
 0x1ba   : > { %v1549_v50 = vadd.f32 %v4716_v28, %v1471_v62  ;;  %v4865_v62 = vld [vmem:[%s6175_s1 + $0x68] sm:$0xff] }
 0x1bb   : > { %2061 = vmatpush.msra.mxu0 %v1143_v11  ;;  %v1137_v11 = vld [vmem:[#allocation2 + $0x118] sm:$0xff] }
 0x1bc   : > { %v1400_v31 = vpop.f32.mrf.mxu1  ;;  %v1323_v15 = vpop.f32.mrf.mxu0  ;;  %2424 = vrot.lane.b32.xlu0 %v1549_v50, %s3766_s22  ;;  %2422 = vrot.lane.b32.xlu2 %v1395_v46, %s3766_s22 }
 0x1bd   : > { %v1401_v36 = vadd.f32 %v1400_v31, %v1323_v15  ;;  %v4817_v23 = vpop.f32.mrf.mxu3  ;;  %v4882_v31 = vld [vmem:[%s6175_s1 + $0x78] sm:$0xff]  ;;  %2062 = vmatpush.msra.mxu0 %v1137_v11  ;;  %v4998_v11 = vld [vmem:[%s6175_s1 + $0xe8] sm:$0xff] }
 0x1be   : > { %3598 = vmatmul.msk.f32.gmra.mxu2 %vm362_vm3, %v4812_v37  ;;  %v960_v19 = vpop.permute.xlu2 %959 }
 0x1bf   : > { %1618 = vmatmul.f32.gmra.mxu1 %v4351_v47  ;;  %v1221_v59 = vld [vmem:[#allocation2 + $0x3b8] sm:$0xff]  ;;  %v1001_v41 = vsel %vm989_vm1, %v4675_v0, %v960_v19 }
 0x1c0   : > { %1772 = vmatmul.f32.gmra.mxu0 %v4351_v47  ;;  %2141 = vmatpush.msra.mxu2 %v1221_v59  ;;  %v4830_v47 = vld [vmem:[%s6175_s1 + $0x48] sm:$0xff]  ;;  %1049 = vst.msk [vmem:[#allocation2 + $0x358] sm:$0xff] %vm362_vm3, %v1001_v41 }
 0x1c1   : > { %v1474_v28 = vpop.f32.mrf.mxu2  ;;  %3586 = vmatmul.msk.f32.gmra.mxu3 %vm362_vm3, %v4356_v48 }
 0x1c2   : > { %v1552_v27 = vadd.f32 %v4730_v7, %v1474_v28  ;;  %v4898_v28 = vld [vmem:[%s6175_s1 + $0x88] sm:$0xff] }
 0x1c3   : > { %v974_v32 = vpop.permute.xlu1 %973 }
 0x1c4   : > { %v1403_v57 = vpop.f32.mrf.mxu1  ;;  %2434 = vrot.lane.b32.xlu2 %v1398_v52, %s3766_s22  ;;  %v1007_v39 = vsel %vm989_vm1, %v4575_v33, %v974_v32 }
 0x1c5   : > { %v1326_v46 = vpop.f32.mrf.mxu0  ;;  %1055 = vst.msk [vmem:[#allocation2 + $0x388] sm:$0xff] %vm362_vm3, %v1007_v39  ;;  %v4835_v7 = vpop.f32.mrf.mxu3 }
 0x1c6   : > { %3599 = vmatmul.msk.f32.gmra.mxu2 %vm362_vm3, %v4830_v47  ;;  %v1404_v48 = vadd.f32 %v1403_v57, %v1326_v46 }
 0x1c7   : > { %1621 = vmatmul.f32.gmra.mxu1 %v4377_v55  ;;  %v1209_v57 = vld [vmem:[#allocation2 + $0x358] sm:$0xff] }
 0x1c8   : > { %1775 = vmatmul.f32.gmra.mxu0 %v4377_v55  ;;  %v4849_v55 = vld [vmem:[%s6175_s1 + $0x58] sm:$0xff] }
 0x1c9   : > { %v1477_v33 = vpop.f32.mrf.mxu2  ;;  %3587 = vmatmul.msk.f32.gmra.mxu3 %vm362_vm3, %v4382_v56 }
 0x1ca   : > { %v1555_v12 = vadd.f32 %v4744_v60, %v1477_v33 }
 0x1cc   : > { %v1406_v58 = vpop.f32.mrf.mxu1  ;;  %2565 = vrot.lane.b32.xlu0 %v1555_v12, %s3767_s12  ;;  %2436 = vrot.lane.b32.xlu2 %v1552_v27, %s3766_s22  ;;  %v1215_v49 = vld [vmem:[#allocation2 + $0x388] sm:$0xff] }
 0x1cd   : > { %v1329_v17 = vpop.f32.mrf.mxu0  ;;  %2142 = vmatpush.msra.mxu2 %v1215_v49  ;;  %v4854_v60 = vpop.f32.mrf.mxu3 }
 0x1ce   : > { %3600 = vmatmul.msk.f32.gmra.mxu2 %vm362_vm3, %v4849_v55  ;;  %v1407_v56 = vadd.f32 %v1406_v58, %v1329_v17  ;;  %v4949_v17 = vld [vmem:[%s6175_s1 + $0xb8] sm:$0xff] }
 0x1cf   : > { %1624 = vmatmul.f32.gmra.mxu1 %v4405_v10  ;;  %2143 = vmatpush.msra.mxu2 %v1209_v57  ;;  %v355_v57 = vld [vmem:[%s3834_s14 + $0xc8] sm:$0xff] }
 0x1d0   : > { %1778 = vmatmul.f32.gmra.mxu0 %v4405_v10  ;;  %1910 = vmatpush.msra.mxu1 %v355_v57 }
 0x1d1   : > { %v1480_v0 = vpop.f32.mrf.mxu2  ;;  %3588 = vmatmul.msk.f32.gmra.mxu3 %vm362_vm3, %v4410_v1 }
 0x1d2   : > { %v1558_v9 = vadd.f32 %v4753_v40, %v1480_v0 }
 0x1d4   : > { %v1409_v52 = vpop.f32.mrf.mxu1  ;;  %2575 = vrot.lane.b32.xlu0 %v1404_v48, %s3767_s12  ;;  %2563 = vrot.lane.b32.xlu2 %v1401_v36, %s3767_s12 }
 0x1d5   : > { %v1332_v26 = vpop.f32.mrf.mxu0  ;;  %v4870_v1 = vpop.f32.mrf.mxu3 }
 0x1d6   : > { %3601 = vmatmul.msk.f32.gmra.mxu2 %vm362_vm3, %v4865_v62  ;;  %v1410_v10 = vadd.f32 %v1409_v52, %v1332_v26  ;;  %v4965_v26 = vld [vmem:[%s6175_s1 + $0xc8] sm:$0xff] }
 0x1d7   : > { %1627 = vmatmul.f32.gmra.mxu1 %v4436_v6 }
 0x1d8   : > { %1781 = vmatmul.f32.gmra.mxu0 %v4436_v6 }
 0x1d9   : > { %v1483_v40 = vpop.f32.mrf.mxu2  ;;  %3589 = vmatmul.msk.f32.gmra.mxu3 %vm362_vm3, %v4441_v29 }
 0x1da   : > { %v1561_v42 = vadd.f32 %v4768_v16, %v1483_v40 }
 0x1dc   : > { %v1412_v50 = vpop.f32.mrf.mxu1  ;;  %2589 = vrot.lane.b32.xlu1 %v1561_v42, %s3767_s12  ;;  %2577 = vrot.lane.b32.xlu0 %v1558_v9, %s3767_s12 }
 0x1dd   : > { %v1335_v63 = vpop.f32.mrf.mxu0  ;;  %2587 = vrot.lane.b32.xlu2 %v1407_v56, %s3767_s12  ;;  %v4887_v29 = vpop.f32.mrf.mxu3 }
 0x1de   : > { %3602 = vmatmul.msk.f32.gmra.mxu2 %vm362_vm3, %v4882_v31  ;;  %v1413_v6 = vadd.f32 %v1412_v50, %v1335_v63  ;;  %v1131_v63 = vld [vmem:[#allocation2 + $0xe8] sm:$0xff] }
 0x1df   : > { %1630 = vmatmul.f32.gmra.mxu1 %v4466_v34  ;;  %2063 = vmatpush.msra.mxu0 %v1131_v63 }
 0x1e0   : > { %1784 = vmatmul.f32.gmra.mxu0 %v4466_v34 }
 0x1e1   : > { %v1486_v16 = vpop.f32.mrf.mxu2  ;;  %3590 = vmatmul.msk.f32.gmra.mxu3 %vm362_vm3, %v4471_v8 }
 0x1e2   : > { %v1564_v15 = vadd.f32 %v4783_v21, %v1486_v16 }
 0x1e4   : > { %v1415_v38 = vpop.f32.mrf.mxu1  ;;  %2601 = vrot.lane.b32.xlu0 %v1564_v15, %s3767_s12  ;;  %2599 = vrot.lane.b32.xlu1 %v1410_v10, %s3767_s12 }
 0x1e5   : > { %v1338_v36 = vpop.f32.mrf.mxu0  ;;  %v4903_v8 = vpop.f32.mrf.mxu3 }
 0x1e6   : > { %3603 = vmatmul.msk.f32.gmra.mxu2 %vm362_vm3, %v4898_v28  ;;  %v1416_v34 = vadd.f32 %v1415_v38, %v1338_v36  ;;  %v356_v36 = vld [vmem:[%s3834_s14 + $0xd0] sm:$0xff] }
 0x1e7   : > { %1633 = vmatmul.f32.gmra.mxu1 %v4491_v43  ;;  %v946_v48 = vpop.permute.xlu0 %945  ;;  %381 = vst.msk [vmem:[#allocation2 + $0xb8] sm:$0xff] %vm362_vm3, %v356_v36 }
 0x1e8   : > { %1787 = vmatmul.f32.gmra.mxu0 %v4491_v43  ;;  %2740 = vrot.lane.b32.xlu2 %v1416_v34, %s3768_s18  ;;  %v4915_v43 = vld [vmem:[%s6175_s1 + $0x98] sm:$0xff]  ;;  %v995_v12 = vsel %vm989_vm1, %v4708_v4, %v946_v48 }
 0x1e9   : > { %v1489_v21 = vpop.f32.mrf.mxu2  ;;  %3591 = vmatmul.msk.f32.gmra.mxu3 %vm362_vm3, %v4497_v45  ;;  %1043 = vst.msk [vmem:[#allocation2 + $0x328] sm:$0xff] %vm362_vm3, %v995_v12  ;;  %v5022_v48 = vld [vmem:[%s6175_s1 + $0xf8] sm:$0xff] }
 0x1ea   : > { %v1567_v27 = vadd.f32 %v4798_v25, %v1489_v21  ;;  %v350_v21 = vld [vmem:[%s3834_s14 + $0x98] sm:$0xff] }
 0x1eb   : > { %375 = vst.msk [vmem:[#allocation2 + $0x88] sm:$0xff] %vm362_vm3, %v350_v21 }
 0x1ec   : > { %v1418_v32 = vpop.f32.mrf.mxu1  ;;  %2730 = vrot.lane.b32.xlu0 %v1567_v27, %s3768_s18  ;;  %2728 = vrot.lane.b32.xlu1 %v1413_v6, %s3768_s18  ;;  %v4981_v6 = vld [vmem:[%s6175_s1 + $0xd8] sm:$0xff] }
 0x1ed   : > { %v1341_v39 = vpop.f32.mrf.mxu0  ;;  %v4920_v45 = vpop.f32.mrf.mxu3 }
 0x1ee   : > { %3604 = vmatmul.msk.f32.gmra.mxu2 %vm362_vm3, %v4915_v43  ;;  %v1419_v59 = vadd.f32 %v1418_v32, %v1341_v39  ;;  %v344_v39 = vld [vmem:[%s3834_s14 + $0x60] sm:$0xff] }
 0x1ef   : > { %1636 = vmatmul.f32.gmra.mxu1 %v4520_v2  ;;  %369 = vst.msk [vmem:[#allocation2 + $0x58] sm:$0xff] %vm362_vm3, %v344_v39 }
 0x1f0   : > { %1790 = vmatmul.f32.gmra.mxu0 %v4520_v2  ;;  %v4933_v2 = vld [vmem:[%s6175_s1 + $0xa8] sm:$0xff] }
 0x1f1   : > { %v1492_v25 = vpop.f32.mrf.mxu2  ;;  %3592 = vmatmul.msk.f32.gmra.mxu3 %vm362_vm3, %v4526_v54 }
 0x1f2   : > { %v1570_v46 = vadd.f32 %v4817_v23, %v1492_v25 }
 0x1f4   : > { %v1421_v33 = vpop.f32.mrf.mxu1  ;;  %2742 = vrot.lane.b32.xlu1 %v1570_v46, %s3768_s18 }
 0x1f5   : > { %v1344_v19 = vpop.f32.mrf.mxu0  ;;  %v4938_v23 = vpop.f32.mrf.mxu3 }
 0x1f6   : > { %3605 = vmatmul.msk.f32.gmra.mxu2 %vm362_vm3, %v4933_v2  ;;  %v1422_v54 = vadd.f32 %v1421_v33, %v1344_v19  ;;  %v1125_v33 = vld [vmem:[#allocation2 + $0xb8] sm:$0xff]  ;;  %v337_v19 = vld [vmem:[%s3834_s14 + $0x20] sm:$0xff] }
 0x1f7   : > { %1639 = vmatmul.f32.gmra.mxu1 %v4554_v3  ;;  %2064 = vmatpush.msra.mxu0 %v1125_v33 }
 0x1f8   : > { %1793 = vmatmul.f32.gmra.mxu0 %v4554_v3 }
 0x1f9   : > { %v1495_v58 = vpop.f32.mrf.mxu2  ;;  %3593 = vmatmul.msk.f32.gmra.mxu3 %vm362_vm3, %v4560_v24 }
 0x1fa   : > { %v1573_v4 = vadd.f32 %v4835_v7, %v1495_v58 }
 0x1fc   : > { %v1424_v49 = vpop.f32.mrf.mxu1  ;;  %2754 = vrot.lane.b32.xlu0 %v1573_v4, %s3768_s18  ;;  %2752 = vrot.lane.b32.xlu1 %v1419_v59, %s3768_s18 }
 0x1fd   : > { %v1347_v41 = vpop.f32.mrf.mxu0  ;;  %v4954_v56 = vpop.f32.mrf.mxu3 }
 0x1fe   : > { %3606 = vmatmul.msk.f32.gmra.mxu2 %vm362_vm3, %v4949_v17  ;;  %v1425_v3 = vadd.f32 %v1424_v49, %v1347_v41 }
 0x1ff   : > { %1642 = vmatmul.f32.gmra.mxu1 %v4580_v30 }
 0x200   : > { %1796 = vmatmul.f32.gmra.mxu0 %v4580_v30  ;;  %2893 = vrot.lane.b32.xlu2 %v1425_v3, %s3769_s11 }
 0x201   : > { %v1498_v7 = vpop.f32.mrf.mxu2  ;;  %3594 = vmatmul.msk.f32.gmra.mxu3 %vm362_vm3, %v4590_v35 }
 0x202   : > { %v1576_v0 = vadd.f32 %v4854_v60, %v1498_v7  ;;  %v1113_v7 = vld [vmem:[#allocation2 + $0x58] sm:$0xff] }
 0x204   : > { %v1427_v9 = vpop.f32.mrf.mxu1  ;;  %2764 = vrot.lane.b32.xlu0 %v1422_v54, %s3768_s18  ;;  %v338_v54 = vld [vmem:[%s3834_s14 + $0x28] sm:$0xff] }
 0x205   : > { %v1350_v52 = vpop.f32.mrf.mxu0  ;;  %v4970_v10 = vpop.f32.mrf.mxu3  ;;  %363 = vst.msk [vmem:[#allocation2 + $0x28] sm:$0xff] %vm362_vm3, %v338_v54 }
 0x206   : > { %3607 = vmatmul.msk.f32.gmra.mxu2 %vm362_vm3, %v4965_v26  ;;  %v1428_v30 = vadd.f32 %v1427_v9, %v1350_v52 }
 0x207   : > { %1645 = vmatmul.f32.gmra.mxu1 %v4610_v44 }
 0x208   : > { %1799 = vmatmul.f32.gmra.mxu0 %v4610_v44  ;;  %2905 = vrot.lane.b32.xlu1 %v1428_v30, %s3769_s11 }
 0x209   : > { %v1501_v60 = vpop.f32.mrf.mxu2  ;;  %3614 = vmatmul.msk.f32.vlgmr.msra.gmra.mxu3 %vm362_vm3, %v4590_v35 }
 0x20a   : > { %v1579_v40 = vadd.f32 %v4870_v1, %v1501_v60 }
 0x20c   : > { %v1430_v42 = vpop.f32.mrf.mxu1  ;;  %2766 = vrot.lane.b32.xlu0 %v1576_v0, %s3768_s18  ;;  %v1107_v9 = vld [vmem:[#allocation2 + $0x28] sm:$0xff] }
 0x20d   : > { %v1353_v50 = vpop.f32.mrf.mxu0  ;;  %v4986_v35 = vpop.f32.mrf.mxu3 }
 0x20e   : > { %3608 = vmatmul.msk.f32.gmra.mxu2 %vm362_vm3, %v4981_v6  ;;  %v1431_v44 = vadd.f32 %v1430_v42, %v1353_v50 }
 0x20f   : > { %1648 = vmatmul.f32.gmra.mxu1 %v4632_v51 }
 0x210   : > { %1802 = vmatmul.f32.gmra.mxu0 %v4632_v51  ;;  %2917 = vrot.lane.b32.xlu2 %v1431_v44, %s3769_s11 }
 0x211   : > { %v1504_v1 = vpop.f32.mrf.mxu2  ;;  %3615 = vmatmul.msk.f32.vlgmr.msrb.gmra.mxu3 %vm362_vm3, %v4762_v53 }
 0x212   : > { %v1582_v16 = vadd.f32 %v4887_v29, %v1504_v1  ;;  %v1203_v29 = vld [vmem:[#allocation2 + $0x328] sm:$0xff] }
 0x213   : > { %2144 = vmatpush.msra.mxu2 %v1203_v29 }
 0x214   : > { %v1433_v15 = vpop.f32.mrf.mxu1  ;;  %2895 = vrot.lane.b32.xlu0 %v1579_v40, %s3769_s11  ;;  %2907 = vrot.lane.b32.xlu1 %v1582_v16, %s3769_s11  ;;  %v5055_v40 = vld [vmem:[%s6175_s1 + $0x118] sm:$0xff] }
 0x215   : > { %v1356_v38 = vpop.f32.mrf.mxu0  ;;  %v5004_v34 = vpop.f32.mrf.mxu3 }
 0x216   : > { %3609 = vmatmul.msk.f32.gmra.mxu2 %vm362_vm3, %v4998_v11  ;;  %v1434_v51 = vadd.f32 %v1433_v15, %v1356_v38 }
 0x217   : > { %1651 = vmatmul.f32.gmra.mxu1 %v4657_v18 }
 0x218   : > { %1805 = vmatmul.f32.gmra.mxu0 %v4657_v18  ;;  %2929 = vrot.lane.b32.xlu2 %v1434_v51, %s3769_s11  ;;  %v349_v18 = vld [vmem:[%s3834_s14 + $0x90] sm:$0xff] }
 0x219   : > { %v1507_v27 = vpop.f32.mrf.mxu2  ;;  %3616 = vmatmul.msk.f32.gmra.mxu3 %vm362_vm3, %v4778_v22  ;;  %1911 = vmatpush.msra.mxu1 %v349_v18 }
 0x21a   : > { %v1585_v32 = vadd.f32 %v4903_v8, %v1507_v27  ;;  %v343_v8 = vld [vmem:[%s3834_s14 + $0x58] sm:$0xff]  ;;  %s3662_s14 = sshll.u32 %s6185_s10, 5 }
 0x21b   : > { %1912 = vmatpush.msra.mxu1 %v343_v8  ;;  %s332_s26 = scalar_lea.vmem %s6183_s9, %s3662_s14 }
 0x21c   : > { %v1607_v59 = vpop.f32.mrf.mxu1  ;;  %2919 = vrot.lane.b32.xlu0 %v1585_v32, %s3769_s11 }
 0x21d   : > { %v1685_v25 = vadd.f32 %v4938_v23, %v1607_v59  ;;  %v1761_v46 = vpop.f32.mrf.mxu0  ;;  %v5029_v12 = vpop.f32.mrf.mxu3  ;;  %v1119_v23 = vld [vmem:[#allocation2 + $0x88] sm:$0xff]  ;;  %1913 = vmatpush.msra.mxu1 %v337_v19 }
 0x21e   : > { %3610 = vmatmul.msk.f32.gmra.mxu2 %vm362_vm3, %v5022_v48  ;;  %2065 = vmatpush.msra.mxu0 %v1119_v23 }
 0x21f   : > { %2208 = vst [vmem:[#allocation3 + $0x10] sm:$0xff] %v1685_v25  ;;  %1654 = vmatmul.f32.gmra.mxu1 %v4680_v14 }
 0x220   : > { %1808 = vmatmul.f32.gmra.mxu0 %v4680_v14  ;;  %v5043_v14 = vld [vmem:[%s6175_s1 + $0x108] sm:$0xff] }
 0x221   : > { %v1510_v58 = vpop.f32.mrf.mxu2  ;;  %3617 = vmatmul.msk.f32.gmra.mxu3 %vm362_vm3, %v4793_v61  ;;  %2066 = vmatpush.msra.mxu0 %v1113_v7 }
 0x222   : > { %v1588_v4 = vadd.f32 %v4920_v45, %v1510_v58 }
 0x223   : > { %2067 = vmatpush.msra.mxu0 %v1107_v9 }
 0x224   : > { %v1610_v49 = vpop.f32.mrf.mxu1  ;;  %2931 = vrot.lane.b32.xlu2 %v1588_v4, %s3769_s11 }
 0x225   : > { %v1688_v41 = vadd.f32 %v4954_v56, %v1610_v49  ;;  %v1764_v3 = vpop.f32.mrf.mxu0  ;;  %v1702_v45 = vpop.f32.mrf.mxu3 }
 0x226   : > { %3611 = vmatmul.msk.f32.gmra.mxu2 %vm362_vm3, %v5043_v14 }
 0x227   : > { %2214 = vst [vmem:[#allocation3 + $0x40] sm:$0xff] %v1688_v41  ;;  %1657 = vmatmul.f32.gmra.mxu1 %v4706_v5 }
 0x228   : > { %1811 = vmatmul.f32.gmra.mxu0 %v4706_v5 }
 0x229   : > { %v1838_v0 = vpop.f32.mrf.mxu2  ;;  %3618 = vmatmul.msk.f32.gmra.mxu3 %vm362_vm3, %v4812_v37 }
 0x22a   : > { %v1839_v56 = vadd.f32 %v1838_v0, %v1761_v46  ;;  %v5117_v0 = vpop.permute.xlu2 %3016 }
 0x22c   : > { %2209 = vst [vmem:[#allocation3 + $0x18] sm:$0xff] %v1839_v56  ;;  %v1613_v52 = vpop.f32.mrf.mxu1 }
 0x22d   : > { %v1691_v30 = vadd.f32 %v4970_v10, %v1613_v52  ;;  %v1767_v60 = vpop.f32.mrf.mxu0  ;;  %v1705_v5 = vpop.f32.mrf.mxu3 }
 0x22e   : > { %3612 = vmatmul.msk.f32.gmra.mxu2 %vm362_vm3, %v5055_v40  ;;  %v5121_v52 = vpop.permute.xlu0 %3021 }
 0x22f   : > { %2220 = vst [vmem:[#allocation3 + $0x70] sm:$0xff] %v1691_v30  ;;  %1660 = vmatmul.f32.gmra.mxu1 %v4725_v20  ;;  %v3729_v30 = vld [vmem:[%s6175_s1 + $0x50] sm:$0xff] }
 0x230   : > { %1814 = vmatmul.f32.gmra.mxu0 %v4725_v20 }
 0x231   : > { %v1841_v42 = vpop.f32.mrf.mxu2  ;;  %3619 = vmatmul.msk.f32.gmra.mxu3 %vm362_vm3, %v4830_v47 }
 0x232   : > { %v1842_v10 = vadd.f32 %v1841_v42, %v1764_v3 }
 0x234   : > { %2215 = vst [vmem:[#allocation3 + $0x48] sm:$0xff] %v1842_v10  ;;  %v1616_v50 = vpop.f32.mrf.mxu1 }
 0x235   : > { %v1694_v63 = vadd.f32 %v4986_v35, %v1616_v50  ;;  %v1770_v44 = vpop.f32.mrf.mxu0  ;;  %v1708_v1 = vpop.f32.mrf.mxu3 }
 0x236   : > { %3613 = vmatmul.msk.f32.gmra.mxu2 %vm362_vm3, %v4560_v24  ;;  %v3724_v24 = vld [vmem:[%s6175_s1] sm:$0xff] }
 0x237   : > { %2226 = vst [vmem:[#allocation3 + $0xa0] sm:$0xff] %v1694_v63  ;;  %1663 = vmatmul.f32.gmra.mxu1 %v4739_v13  ;;  %v5131_v63 = vpop.permute.xlu2 %3026 }
 0x238   : > { %1817 = vmatmul.f32.gmra.mxu0 %v4739_v13 }
 0x239   : > { %v1844_v20 = vpop.f32.mrf.mxu2  ;;  %3620 = vmatmul.msk.f32.gmra.mxu3 %vm362_vm3, %v4849_v55 }
 0x23a   : > { %v1845_v16 = vadd.f32 %v1844_v20, %v1767_v60  ;;  %v5142_v20 = vpop.permute.xlu0 %2410 }
 0x23c   : > { %2221 = vst [vmem:[#allocation3 + $0x78] sm:$0xff] %v1845_v16  ;;  %v1619_v15 = vpop.f32.mrf.mxu1 }
 0x23d   : > { %v1697_v38 = vadd.f32 %v5004_v34, %v1619_v15  ;;  %v1773_v35 = vpop.f32.mrf.mxu0  ;;  %v1711_v13 = vpop.f32.mrf.mxu3 }
 0x23e   : > { %3635 = vmatmul.msk.f32.vlgmr.msra.gmra.mxu2 %vm362_vm3, %v4762_v53  ;;  %v3725_v53 = vld [vmem:[%s6175_s1 + $0x10] sm:$0xff] }
 0x23f   : > { %1914 = vmatmul.f32.vlgmr.msra.gmra.mxu1 %v3724_v24  ;;  %2402 = vrot.lane.b32.xlu2 %v1697_v38, %s3766_s22 }
 0x240   : > { %2068 = vmatmul.f32.vlgmr.msra.gmra.mxu0 %v3724_v24  ;;  %v3731_v24 = vld [vmem:[%s6175_s1 + $0x70] sm:$0xff] }
 0x241   : > { %v1847_v51 = vpop.f32.mrf.mxu2  ;;  %3621 = vmatmul.msk.f32.gmra.mxu3 %vm362_vm3, %v4865_v62 }
 0x242   : > { %v1848_v36 = vadd.f32 %v1847_v51, %v1770_v44  ;;  %v3730_v44 = vld [vmem:[%s6175_s1 + $0x60] sm:$0xff]  ;;  %v5156_v51 = vpop.permute.xlu2 %3031 }
 0x244   : > { %2227 = vst [vmem:[#allocation3 + $0xa8] sm:$0xff] %v1848_v36  ;;  %v1622_v29 = vpop.f32.mrf.mxu1  ;;  %v5159_v36 = vpop.permute.xlu0 %2424 }
 0x245   : > { %v1700_v34 = vadd.f32 %v5029_v12, %v1622_v29  ;;  %v1776_v21 = vpop.f32.mrf.mxu0  ;;  %v1714_v27 = vpop.f32.mrf.mxu3 }
 0x246   : > { %3636 = vmatmul.msk.f32.gmra.mxu2 %vm362_vm3, %v4778_v22  ;;  %v3726_v22 = vld [vmem:[%s6175_s1 + $0x20] sm:$0xff] }
 0x247   : > { %1917 = vmatmul.f32.gmra.mxu1 %v3725_v53  ;;  %2414 = vrot.lane.b32.xlu0 %v1700_v34, %s3766_s22 }
 0x248   : > { %2071 = vmatmul.f32.gmra.mxu0 %v3725_v53 }
 0x249   : > { %v1850_v32 = vpop.f32.mrf.mxu2  ;;  %3622 = vmatmul.msk.f32.gmra.mxu3 %vm362_vm3, %v4882_v31 }
 0x24a   : > { %v1851_v57 = vadd.f32 %v1850_v32, %v1773_v35  ;;  %v3732_v32 = vld [vmem:[%s6175_s1 + $0x80] sm:$0xff] }
 0x24c   : > { %v1625_v39 = vpop.f32.mrf.mxu1 }
 0x24d   : > { %v1703_v59 = vadd.f32 %v1702_v45, %v1625_v39  ;;  %v1779_v18 = vpop.f32.mrf.mxu0  ;;  %v1717_v25 = vpop.f32.mrf.mxu3 }
 0x24e   : > { %3637 = vmatmul.msk.f32.gmra.mxu2 %vm362_vm3, %v4793_v61  ;;  %v3727_v61 = vld [vmem:[%s6175_s1 + $0x30] sm:$0xff]  ;;  %v5176_v39 = vpop.permute.xlu0 %2565 }
 0x24f   : > { %1920 = vmatmul.f32.gmra.mxu1 %v3726_v22  ;;  %2426 = vrot.lane.b32.xlu1 %v1703_v59, %s3766_s22 }
 0x250   : > { %2074 = vmatmul.f32.gmra.mxu0 %v3726_v22 }
 0x251   : > { %v1853_v46 = vpop.f32.mrf.mxu2  ;;  %3623 = vmatmul.msk.f32.gmra.mxu3 %vm362_vm3, %v4898_v28 }
 0x252   : > { %v1854_v8 = vadd.f32 %v1853_v46, %v1776_v21 }
 0x254   : > { %v1628_v33 = vpop.f32.mrf.mxu1 }
 0x255   : > { %v1706_v12 = vadd.f32 %v1705_v5, %v1628_v33  ;;  %v1782_v19 = vpop.f32.mrf.mxu0  ;;  %v5102_v54 = vpop.f32.mrf.mxu3  ;;  %v3733_v33 = vld [vmem:[%s6175_s1 + $0x90] sm:$0xff] }
 0x256   : > { %3638 = vmatmul.msk.f32.gmra.mxu2 %vm362_vm3, %v4812_v37  ;;  %v3728_v37 = vld [vmem:[%s6175_s1 + $0x40] sm:$0xff] }
 0x257   : > { %1923 = vmatmul.f32.gmra.mxu1 %v3727_v61  ;;  %2438 = vrot.lane.b32.xlu0 %v1706_v12, %s3766_s22 }
 0x258   : > { %2077 = vmatmul.f32.gmra.mxu0 %v3727_v61 }
 0x259   : > { %v1856_v23 = vpop.f32.mrf.mxu2  ;;  %3624 = vmatmul.msk.f32.gmra.mxu3 %vm362_vm3, %v4915_v43 }
 0x25a   : > { %v1857_v58 = vadd.f32 %v1856_v23, %v1779_v18  ;;  %v5180_v18 = vpop.permute.xlu2 %2398 }
 0x25c   : > { %v1631_v4 = vpop.f32.mrf.mxu1 }
 0x25d   : > { %v1709_v49 = vadd.f32 %v1708_v1, %v1631_v4  ;;  %v1785_v41 = vpop.f32.mrf.mxu0  ;;  %v5112_v3 = vpop.f32.mrf.mxu3 }
 0x25e   : > { %3639 = vmatmul.msk.f32.gmra.mxu2 %vm362_vm3, %v4830_v47 }
 0x25f   : > { %1926 = vmatmul.f32.gmra.mxu1 %v3728_v37  ;;  %2567 = vrot.lane.b32.xlu1 %v1709_v49, %s3767_s12  ;;  %v3734_v49 = vld [vmem:[%s6175_s1 + $0xa0] sm:$0xff] }
 0x260   : > { %2080 = vmatmul.f32.gmra.mxu0 %v3728_v37  ;;  %2404 = vrot.lane.b32.xlu0 %v1851_v57, %s3766_s22 }
 0x261   : > { %v1859_v7 = vpop.f32.mrf.mxu2  ;;  %3625 = vmatmul.msk.f32.gmra.mxu3 %vm362_vm3, %v4933_v2 }
 0x262   : > { %v1860_v45 = vadd.f32 %v1859_v7, %v1782_v19  ;;  %v5196_v61 = vpop.permute.xlu2 %2412 }
 0x264   : > { %v1634_v47 = vpop.f32.mrf.mxu1 }
 0x265   : > { %v1712_v9 = vadd.f32 %v1711_v13, %v1634_v47  ;;  %v1788_v56 = vpop.f32.mrf.mxu0  ;;  %v5127_v60 = vpop.f32.mrf.mxu3 }
 0x266   : > { %3640 = vmatmul.msk.f32.gmra.mxu2 %vm362_vm3, %v4849_v55 }
 0x267   : > { %1929 = vmatmul.f32.gmra.mxu1 %v3729_v30  ;;  %2416 = vrot.lane.b32.xlu1 %v1854_v8, %s3766_s22 }
 0x268   : > { %2083 = vmatmul.f32.gmra.mxu0 %v3729_v30  ;;  %v3735_v30 = vld [vmem:[%s6175_s1 + $0xb0] sm:$0xff] }
 0x269   : > { %v1862_v5 = vpop.f32.mrf.mxu2  ;;  %3626 = vmatmul.msk.f32.gmra.mxu3 %vm362_vm3, %v4949_v17 }
 0x26a   : > { %v1863_v42 = vadd.f32 %v1862_v5, %v1785_v41 }
 0x26c   : > { %v1637_v10 = vpop.f32.mrf.mxu1 }
 0x26d   : > { %v1715_v50 = vadd.f32 %v1714_v27, %v1637_v10  ;;  %v1791_v55 = vpop.f32.mrf.mxu0  ;;  %v5139_v1 = vpop.f32.mrf.mxu3 }
 0x26e   : > { %3641 = vmatmul.msk.f32.gmra.mxu2 %vm362_vm3, %v4865_v62  ;;  %v5168_v27 = vpop.permute.xlu1 %2400 }
 0x26f   : > { %1932 = vmatmul.f32.gmra.mxu1 %v3730_v44  ;;  %2579 = vrot.lane.b32.xlu1 %v1712_v9, %s3767_s12 }
 0x270   : > { %2086 = vmatmul.f32.gmra.mxu0 %v3730_v44  ;;  %2591 = vrot.lane.b32.xlu2 %v1715_v50, %s3767_s12 }
 0x271   : > { %v1865_v16 = vpop.f32.mrf.mxu2  ;;  %3627 = vmatmul.msk.f32.gmra.mxu3 %vm362_vm3, %v4965_v26 }
 0x272   : > { %v5146_v15 = vadd.f32 %v1865_v16, %v1788_v56  ;;  %v3736_v16 = vld [vmem:[%s6175_s1 + $0xc0] sm:$0xff] }
 0x274   : > { %v1640_v62 = vpop.f32.mrf.mxu1 }
 0x275   : > { %v1718_v38 = vadd.f32 %v1717_v25, %v1640_v62  ;;  %v1794_v35 = vpop.f32.mrf.mxu0  ;;  %v5154_v13 = vpop.f32.mrf.mxu3 }
 0x276   : > { %3642 = vmatmul.msk.f32.gmra.mxu2 %vm362_vm3, %v4882_v31  ;;  %v5185_v8 = vpop.permute.xlu1 %2589 }
 0x277   : > { %1935 = vmatmul.f32.gmra.mxu1 %v3731_v24  ;;  %2428 = vrot.lane.b32.xlu1 %v1857_v58, %s3766_s22 }
 0x278   : > { %2089 = vmatmul.f32.gmra.mxu0 %v3731_v24  ;;  %2569 = vrot.lane.b32.xlu2 %v1863_v42, %s3767_s12 }
 0x279   : > { %v1868_v29 = vpop.f32.mrf.mxu2  ;;  %3628 = vmatmul.msk.f32.gmra.mxu3 %vm362_vm3, %v4981_v6 }
 0x27a   : > { %v5163_v31 = vadd.f32 %v1868_v29, %v1791_v55 }
 0x27c   : > { %v1643_v34 = vpop.f32.mrf.mxu1 }
 0x27d   : > { %v1721_v21 = vadd.f32 %v5102_v54, %v1643_v34  ;;  %v1797_v53 = vpop.f32.mrf.mxu0  ;;  %v5174_v57 = vpop.f32.mrf.mxu3 }
 0x27e   : > { %3643 = vmatmul.msk.f32.gmra.mxu2 %vm362_vm3, %v4898_v28  ;;  %v5200_v54 = vpop.permute.xlu0 %2575  ;;  %v5211_v37 = vpop.permute.xlu1 %2599 }
 0x27f   : > { %1938 = vmatmul.f32.gmra.mxu1 %v3732_v32  ;;  %2440 = vrot.lane.b32.xlu1 %v1860_v45, %s3766_s22  ;;  %v5217_v45 = vpop.permute.xlu2 %2422 }
 0x280   : > { %2092 = vmatmul.f32.gmra.mxu0 %v3732_v32 }
 0x281   : > { %v1871_v59 = vpop.f32.mrf.mxu2  ;;  %3629 = vmatmul.msk.f32.gmra.mxu3 %vm362_vm3, %v4998_v11 }
 0x282   : > { %v1872_v28 = vadd.f32 %v1871_v59, %v1794_v35  ;;  %v3097_v35 = vld [vmem:[%s6177_s3 + $0x78] sm:$0xff] }
 0x283   : > { %3187 = vmatpush.msrb.mxu1 %v3097_v35  ;;  %v3088_v35 = vld [vmem:[%s6177_s3 + $0x30] sm:$0xff] }
 0x284   : > { %2275 = vst [vmem:[#allocation3 + $0x228] sm:$0xff] %v1872_v28  ;;  %v1646_v22 = vpop.f32.mrf.mxu1 }
 0x285   : > { %v1724_v25 = vadd.f32 %v5112_v3, %v1646_v22  ;;  %v1800_v46 = vpop.f32.mrf.mxu0  ;;  %v5191_v12 = vpop.f32.mrf.mxu3  ;;  %v5293_v22 = vld [vmem:[%s6175_s1 + $0x138] sm:$0xff] }
 0x286   : > { %3644 = vmatmul.msk.f32.gmra.mxu2 %vm362_vm3, %v4915_v43  ;;  %v5219_v47 = vpop.permute.xlu0 %2577  ;;  %v5235_v10 = vpop.permute.xlu1 %2728 }
 0x287   : > { %1941 = vmatmul.f32.gmra.mxu1 %v3733_v33  ;;  %2603 = vrot.lane.b32.xlu1 %v1718_v38, %s3767_s12  ;;  %v5240_v44 = vpop.permute.xlu2 %2434  ;;  %v5256_v38 = vld [vmem:[%s6175_s1 + $0x128] sm:$0xff] }
 0x288   : > { %2095 = vmatmul.f32.gmra.mxu0 %v3733_v33  ;;  %2744 = vrot.lane.b32.xlu2 %v1724_v25, %s3768_s18 }
 0x289   : > { %v1874_v19 = vpop.f32.mrf.mxu2  ;;  %3630 = vmatmul.msk.f32.gmra.mxu3 %vm362_vm3, %v5022_v48 }
 0x28a   : > { %v5198_v43 = vadd.f32 %v1874_v19, %v1797_v53  ;;  %v3738_v53 = vld [vmem:[%s6175_s1 + $0xd0] sm:$0xff] }
 0x28c   : > { %v1649_v23 = vpop.f32.mrf.mxu1 }
 0x28d   : > { %v1727_v58 = vadd.f32 %v5127_v60, %v1649_v23  ;;  %v1803_v4 = vpop.f32.mrf.mxu0  ;;  %v5209_v41 = vpop.f32.mrf.mxu3 }
 0x28e   : > { %3645 = vmatmul.msk.f32.gmra.mxu2 %vm362_vm3, %v4933_v2  ;;  %v5268_v29 = vpop.permute.xlu1 %2742 }
 0x28f   : > { %1944 = vmatmul.f32.gmra.mxu1 %v3734_v49  ;;  %2732 = vrot.lane.b32.xlu1 %v1721_v21, %s3768_s18  ;;  %v3095_v21 = vld [vmem:[%s6177_s3 + $0x68] sm:$0xff]  ;;  %v5282_v59 = vpop.permute.xlu2 %2436 }
 0x290   : > { %2098 = vmatmul.f32.gmra.mxu0 %v3734_v49  ;;  %v3740_v49 = vld [vmem:[%s6175_s1 + $0xe0] sm:$0xff] }
 0x291   : > { %v1877_v3 = vpop.f32.mrf.mxu2  ;;  %3631 = vmatmul.msk.f32.gmra.mxu3 %vm362_vm3, %v5043_v14 }
 0x292   : > { %v5215_v7 = vadd.f32 %v1877_v3, %v1800_v46  ;;  %v3093_v46 = vld [vmem:[%s6177_s3 + $0x58] sm:$0xff]  ;;  %v3091_v3 = vld [vmem:[%s6177_s3 + $0x48] sm:$0xff] }
 0x294   : > { %v1652_v2 = vpop.f32.mrf.mxu1 }
 0x295   : > { %v1730_v9 = vadd.f32 %v5139_v1, %v1652_v2  ;;  %v1806_v56 = vpop.f32.mrf.mxu0  ;;  %v5229_v60 = vpop.f32.mrf.mxu3 }
 0x296   : > { %3646 = vmatmul.msk.f32.gmra.mxu2 %vm362_vm3, %v4949_v17  ;;  %v5244_v1 = vpop.permute.xlu0 %2601 }
 0x297   : > { %1947 = vmatmul.f32.gmra.mxu1 %v3735_v30  ;;  %2581 = vrot.lane.b32.xlu1 %v5146_v15, %s3767_s12 }
 0x298   : > { %2101 = vmatmul.f32.gmra.mxu0 %v3735_v30  ;;  %v5324_v30 = vpop.permute.xlu2 %2563 }
 0x299   : > { %v1880_v5 = vpop.f32.mrf.mxu2  ;;  %3632 = vmatmul.msk.f32.gmra.mxu3 %vm362_vm3, %v5055_v40 }
 0x29a   : > { %v5233_v42 = vadd.f32 %v1880_v5, %v1803_v4  ;;  %v5308_v4 = vpop.permute.xlu1 %2752 }
 0x29c   : > { %v1655_v17 = vpop.f32.mrf.mxu1 }
 0x29d   : > { %v5238_v50 = vadd.f32 %v5154_v13, %v1655_v17  ;;  %v1809_v55 = vpop.f32.mrf.mxu0  ;;  %v5251_v15 = vpop.f32.mrf.mxu3  ;;  %v3096_v13 = vld [vmem:[%s6177_s3 + $0x70] sm:$0xff] }
 0x29e   : > { %3647 = vmatmul.msk.f32.gmra.mxu2 %vm362_vm3, %v4965_v26  ;;  %3188 = vmatpush.msrb.mxu1 %v3096_v13  ;;  %v3741_v13 = vld [vmem:[%s6175_s1 + $0xf0] sm:$0xff] }
 0x29f   : > { %1950 = vmatmul.f32.gmra.mxu1 %v3736_v16  ;;  %2593 = vrot.lane.b32.xlu1 %v5163_v31, %s3767_s12 }
 0x2a0   : > { %2104 = vmatmul.f32.gmra.mxu0 %v3736_v16  ;;  %3189 = vmatpush.msrb.mxu1 %v3095_v21 }
 0x2a1   : > { %v1883_v62 = vpop.f32.mrf.mxu2  ;;  %3633 = vmatmul.msk.f32.gmra.mxu3 %vm362_vm3, %v5256_v38 }
 0x2a2   : > { %v5260_v26 = vadd.f32 %v1883_v62, %v1806_v56  ;;  %v3090_v56 = vld [vmem:[%s6177_s3 + $0x40] sm:$0xff] }
 0x2a4   : > { %v1658_v24 = vpop.f32.mrf.mxu1 }
 0x2a5   : > { %v1736_v31 = vadd.f32 %v5174_v57, %v1658_v24  ;;  %v1812_v34 = vpop.f32.mrf.mxu0  ;;  %v5280_v32 = vpop.f32.mrf.mxu3 }
 0x2a6   : > { %3648 = vmatmul.msk.f32.gmra.mxu2 %vm362_vm3, %v4981_v6  ;;  %v3094_v6 = vld [vmem:[%s6177_s3 + $0x60] sm:$0xff]  ;;  %v5288_v57 = vpop.permute.xlu0 %2730  ;;  %v5340_v24 = vpop.permute.xlu1 %2905 }
 0x2a7   : > { %1953 = vmatmul.f32.gmra.mxu1 %v3738_v53  ;;  %2756 = vrot.lane.b32.xlu1 %v1727_v58, %s3768_s18  ;;  %v3092_v58 = vld [vmem:[%s6177_s3 + $0x50] sm:$0xff] }
 0x2a8   : > { %2107 = vmatmul.f32.gmra.mxu0 %v3738_v53  ;;  %2909 = vrot.lane.b32.xlu2 %v1736_v31, %s3769_s11  ;;  %v5360_v53 = vpop.permute.xlu2 %2587 }
 0x2a9   : > { %v1886_v28 = vpop.f32.mrf.mxu2  ;;  %3634 = vmatmul.msk.f32.gmra.mxu3 %vm362_vm3, %v5293_v22  ;;  %3190 = vmatpush.msrb.mxu1 %v3094_v6 }
 0x2aa   : > { %v1887_v25 = vadd.f32 %v1886_v28, %v1809_v55 }
 0x2ab   : > { %3191 = vmatpush.msrb.mxu1 %v3093_v46  ;;  %v3085_v46 = vld [vmem:[%s6177_s3 + $0x18] sm:$0xff] }
 0x2ac   : > { %v1661_v33 = vpop.f32.mrf.mxu1 }
 0x2ad   : > { %v5301_v19 = vadd.f32 %v5191_v12, %v1661_v33  ;;  %v1815_v23 = vpop.f32.mrf.mxu0  ;;  %v5314_v12 = vpop.f32.mrf.mxu3  ;;  %3192 = vmatpush.msrb.mxu1 %v3092_v58  ;;  %v3742_v33 = vld [vmem:[%s6175_s1 + $0x100] sm:$0xff] }
 0x2ae   : > { %3649 = vmatmul.msk.f32.gmra.mxu2 %vm362_vm3, %v4998_v11  ;;  %v5319_v2 = vpop.permute.xlu0 %2754 }
 0x2af   : > { %1956 = vmatmul.f32.gmra.mxu1 %v3740_v49  ;;  %2768 = vrot.lane.b32.xlu1 %v1730_v9, %s3768_s18  ;;  %v3089_v9 = vld [vmem:[%s6177_s3 + $0x38] sm:$0xff] }
 0x2b0   : > { %2110 = vmatmul.f32.gmra.mxu0 %v3740_v49  ;;  %3193 = vmatpush.msrb.mxu1 %v3091_v3  ;;  %v3083_v3 = vld [vmem:[%s6177_s3 + $0x8] sm:$0xff] }
 0x2b1   : > { %v1889_v11 = vpop.f32.mrf.mxu2 }
 0x2b2   : > { %v5326_v5 = vadd.f32 %v1889_v11, %v1812_v34  ;;  %3194 = vmatpush.msrb.mxu1 %v3090_v56  ;;  %v3086_v34 = vld [vmem:[%s6177_s3 + $0x20] sm:$0xff] }
 0x2b4   : > { %v1664_v17 = vpop.f32.mrf.mxu1  ;;  %3195 = vmatpush.msrb.mxu1 %v3089_v9 }
 0x2b5   : > { %v1742_v55 = vadd.f32 %v5209_v41, %v1664_v17  ;;  %v1818_v16 = vpop.f32.mrf.mxu0  ;;  %v5346_v41 = vpop.f32.mrf.mxu3  ;;  %v3082_v17 = vld [vmem:[%s6177_s3] sm:$0xff] }
 0x2b6   : > { %3650 = vmatmul.msk.f32.gmra.mxu2 %vm362_vm3, %v5022_v48  ;;  %v5335_v62 = vadd.f32 %v5229_v60, %v1818_v16  ;;  %v3087_v48 = vld [vmem:[%s6177_s3 + $0x28] sm:$0xff]  ;;  %3196 = vmatpush.msrb.mxu1 %v3088_v35  ;;  %v5358_v21 = vpop.permute.xlu0 %2764 }
 0x2b7   : > { %1959 = vmatmul.f32.gmra.mxu1 %v3741_v13  ;;  %2933 = vrot.lane.b32.xlu0 %v1742_v55, %s3769_s11  ;;  %v3743_v55 = vld [vmem:[%s6175_s1 + $0x110] sm:$0xff] }
 0x2b8   : > { %2113 = vmatmul.f32.gmra.mxu0 %v3741_v13  ;;  %2734 = vrot.lane.b32.xlu1 %v5198_v43, %s3768_s18  ;;  %v2447_v13 = vsel %vm2446_vm5, %v5180_v18, %v5168_v27  ;;  %v3745_v18 = vld [vmem:[%s6175_s1 + $0x120] sm:$0xff] }
 0x2b9   : > { %v1892_v60 = vpop.f32.mrf.mxu2  ;;  %3197 = vmatpush.msrb.mxu1 %v3087_v48 }
 0x2ba   : > { %v5353_v31 = vadd.f32 %v1892_v60, %v1815_v23 }
 0x2bb   : > { %3198 = vmatpush.msrb.mxu1 %v3086_v34 }
 0x2bc   : > { %v1915_v6 = vpop.f32.mrf.mxu1 }
 0x2bd   : > { %v1993_v43 = vadd.f32 %v5251_v15, %v1915_v6  ;;  %v2069_v28 = vpop.f32.mrf.mxu0  ;;  %v5372_v23 = vpop.f32.mrf.mxu3  ;;  %3199 = vmatpush.msrb.mxu1 %v3085_v46  ;;  %v2612_v6 = vsel %vm2611_vm6, %v5324_v30, %v5176_v39 }
 0x2be   : > { %3651 = vmatmul.msk.f32.gmra.mxu2 %vm362_vm3, %v5043_v14  ;;  %v3084_v14 = vld [vmem:[%s6177_s3 + $0x10] sm:$0xff]  ;;  %v5379_v15 = vpop.permute.xlu1 %2907  ;;  %v5385_v56 = vpop.permute.xlu0 %2766 }
 0x2bf   : > { %2210 = vst [vmem:[#allocation3 + $0x20] sm:$0xff] %v1993_v43  ;;  %1962 = vmatmul.f32.gmra.mxu1 %v3742_v33  ;;  %2899 = vrot.lane.b32.xlu0 %v1887_v25, %s3769_s11  ;;  %v2741_v25 = vpop.permute.xlu2 %2740  ;;  %v3744_v43 = vld [vmem:[#allocation3] sm:$0xff] }
 0x2c0   : > { %2116 = vmatmul.f32.gmra.mxu0 %v3742_v33  ;;  %2897 = vrot.lane.b32.xlu1 %v5238_v50, %s3769_s11 }
 0x2c1   : > { %v2146_v58 = vpop.f32.mrf.mxu2  ;;  %3200 = vmatpush.msrb.mxu1 %v3084_v14 }
 0x2c2   : > { %v2147_v49 = vadd.f32 %v2146_v58, %v2069_v28  ;;  %v2491_v28 = vadd.f32 %v3744_v43, %v2447_v13 }
 0x2c3   : > { %3201 = vmatpush.msrb.mxu1 %v3083_v3 }
 0x2c4   : > { %2211 = vst.msk [vmem:[#allocation3 + $0x28] sm:$0xff] %vm362_vm3, %v2147_v49  ;;  %v1918_v11 = vpop.f32.mrf.mxu1  ;;  %v2656_v30 = vadd.f32 %v2612_v6, %v2491_v28 }
 0x2c5   : > { %v5388_v50 = vadd.f32 %v5280_v32, %v1918_v11  ;;  %v2072_v9 = vpop.f32.mrf.mxu0  ;;  %v5400_v32 = vpop.f32.mrf.mxu3  ;;  %3202 = vmatpush.msrb.mxu1 %v3082_v17 }
 0x2c6   : > { %3652 = vmatmul.msk.f32.gmra.mxu2 %vm362_vm3, %v5055_v40  ;;  %v5402_v35 = vpop.permute.xlu1 %2426  ;;  %v5416_v46 = vpop.permute.xlu0 %2895 }
 0x2c7   : > { %1965 = vmatmul.f32.gmra.mxu1 %v3743_v55  ;;  %v2894_v48 = vpop.permute.xlu2 %2893 }
 0x2c8   : > { %2119 = vmatmul.f32.gmra.mxu0 %v3743_v55  ;;  %2746 = vrot.lane.b32.xlu1 %v5215_v7, %s3768_s18  ;;  %v2942_v14 = vsel %vm2941_vm8, %v2894_v48, %v5416_v46  ;;  %v2782_v48 = vsel %vm2776_vm7, %v2741_v25, %v5268_v29  ;;  %v2457_v25 = vsel %vm2446_vm5, %v5217_v45, %v5159_v36 }
 0x2c9   : > { %v2149_v16 = vpop.f32.mrf.mxu2  ;;  %v2787_v45 = vsel %vm2776_vm7, %v5308_v4, %v5319_v2  ;;  %v2627_v4 = vsel %vm2611_vm6, %v5211_v37, %v5244_v1 }
 0x2ca   : > { %v2150_v40 = vadd.f32 %v2149_v16, %v2072_v9  ;;  %v2617_v16 = vsel %vm2611_vm6, %v5200_v54, %v5219_v47 }
 0x2cc   : > { %2217 = vst.msk [vmem:[#allocation3 + $0x58] sm:$0xff] %vm362_vm3, %v2150_v40  ;;  %v1921_v60 = vpop.f32.mrf.mxu1  ;;  %v3746_v40 = vld [vmem:[#allocation3 + $0x30] sm:$0xff] }
 0x2cd   : > { %v5409_v7 = vadd.f32 %v5314_v12, %v1921_v60  ;;  %v2075_v34 = vpop.f32.mrf.mxu0  ;;  %v2777_v12 = vsel %vm2776_vm7, %v5235_v10, %v5288_v57  ;;  %v5430_v49 = vpop.f32.mrf.mxu3  ;;  %v2452_v10 = vsel %vm2446_vm5, %v5142_v20, %v5196_v61  ;;  %v3747_v20 = vld [vmem:[%s6175_s1 + $0x130] sm:$0xff] }
 0x2ce   : > { %3653 = vmatmul.msk.f32.gmra.mxu2 %vm362_vm3, %v5256_v38  ;;  %v2821_v3 = vadd.f32 %v2777_v12, %v2656_v30  ;;  %v2497_v13 = vadd.f32 %v3746_v40, %v2452_v10  ;;  %v5463_v10 = vpop.permute.xlu0 %2919 }
 0x2cf   : > { %1968 = vmatmul.f32.gmra.mxu1 %v3745_v18  ;;  %v2918_v11 = vpop.permute.xlu2 %2917 }
 0x2d0   : > { %2122 = vmatmul.f32.gmra.mxu0 %v3745_v18  ;;  %2758 = vrot.lane.b32.xlu1 %v5233_v42, %s3768_s18  ;;  %v2986_v9 = vadd.f32 %v2942_v14, %v2821_v3  ;;  %v2622_v14 = vsel %vm2611_vm6, %v5360_v53, %v5185_v8  ;;  %v2462_v53 = vsel %vm2446_vm5, %v5240_v44, %v5282_v59 }
 0x2d1   : > { %v2152_v38 = vpop.f32.mrf.mxu2  ;;  %v5426_v33 = vpop.permute.xlu1 %2567  ;;  %v2792_v44 = vsel %vm2776_vm7, %v5358_v21, %v5385_v56 }
 0x2d2   : > { %v2153_v58 = vadd.f32 %v2152_v38, %v2075_v34  ;;  %v3034_v54 = vadd.f32 %v5117_v0, %v2986_v9  ;;  %v2947_v34 = vsel %vm2941_vm8, %v5340_v24, %v5379_v15 }
 0x2d4   : > { %2223 = vst.msk [vmem:[#allocation3 + $0x88] sm:$0xff] %vm362_vm3, %v2153_v58  ;;  %v1924_v42 = vpop.f32.mrf.mxu1  ;;  %v3058_v18 = vmax.f32 %v3034_v54, 0.0  ;;  %v3748_v58 = vld [vmem:[#allocation3 + $0x60] sm:$0xff] }
 0x2d5   : > { %v2002_v17 = vadd.f32 %v5346_v41, %v1924_v42  ;;  %v2078_v55 = vpop.f32.mrf.mxu0  ;;  %v2662_v41 = vadd.f32 %v2617_v16, %v2497_v13  ;;  %v2013_v28 = vpop.f32.mrf.mxu3  ;;  %v2503_v3 = vadd.f32 %v3748_v58, %v2457_v25  ;;  %v3749_v13 = vld [vmem:[#allocation3 + $0x90] sm:$0xff] }
 0x2d6   : > { %3654 = vmatmul.msk.f32.gmra.mxu2 %vm362_vm3, %v5293_v22 }
 0x2d7   : > { %2228 = vst [vmem:[#allocation3 + $0xb0] sm:$0xff] %v2002_v17  ;;  %1971 = vmatmul.f32.gmra.mxu1 %v3747_v20  ;;  %v2827_v43 = vadd.f32 %v2782_v48, %v2662_v41  ;;  %v2930_v24 = vpop.permute.xlu2 %2929  ;;  %v2668_v42 = vadd.f32 %v2622_v14, %v2503_v3 }
 0x2d8   : > { %2921 = vrot.lane.b32.xlu1 %v5301_v19, %s3769_s11  ;;  %2125 = vmatmul.f32.gmra.mxu0 %v3747_v20  ;;  %v2509_v20 = vadd.f32 %v3749_v13, %v2462_v53 }
 0x2d9   : > { %v2155_v60 = vpop.f32.mrf.mxu2  ;;  %v5450_v22 = vpop.permute.xlu1 %2416  ;;  %v2992_v12 = vadd.f32 %v2947_v34, %v2827_v43  ;;  %v2833_v40 = vadd.f32 %v2787_v45, %v2668_v42 }
 0x2da   : > { %v2156_v6 = vadd.f32 %v2155_v60, %v2078_v55  ;;  %v2952_v55 = vsel %vm2941_vm8, %v2918_v11, %v5463_v10  ;;  %v2674_v34 = vadd.f32 %v2627_v4, %v2509_v20 }
 0x2db   : > { %v3040_v9 = vadd.f32 %v5121_v52, %v2992_v12  ;;  %v2998_v48 = vadd.f32 %v2952_v55, %v2833_v40 }
 0x2dc   : > { %2229 = vst.msk [vmem:[#allocation3 + $0xb8] sm:$0xff] %vm362_vm3, %v2156_v6  ;;  %v1927_v19 = vpop.f32.mrf.mxu1  ;;  %v2839_v6 = vadd.f32 %v2792_v44, %v2674_v34  ;;  %v3128_v44 = vld [vmem:[%s6177_s3 + $0x170] sm:$0xff]  ;;  %v3111_v34 = vld [vmem:[%s6177_s3 + $0xe8] sm:$0xff] }
 0x2dd   : > { %v2005_v30 = vadd.f32 %v5372_v23, %v1927_v19  ;;  %v2081_v38 = vpop.f32.mrf.mxu0  ;;  %v3064_v54 = vmax.f32 %v3040_v9, 0.0  ;;  %v2016_v11 = vpop.f32.mrf.mxu3 }
 0x2df   : > { %3203 = vmatmul.f32.vlgmr.msrb.gmra.mxu1 %v3058_v18  ;;  %v5487_v37 = vpop.permute.xlu2 %2931 }
 0x2e0   : > { %2911 = vrot.lane.b32.xlu1 %v5326_v5, %s3769_s11  ;;  %v2957_v21 = vsel %vm2941_vm8, %v2930_v24, %v5487_v37 }
 0x2e1   : > { %v2158_v23 = vpop.f32.mrf.mxu2  ;;  %v5471_v17 = vpop.permute.xlu1 %2579  ;;  %v3004_v12 = vadd.f32 %v2957_v21, %v2839_v6  ;;  %v3126_v21 = vld [vmem:[%s6177_s3 + $0x160] sm:$0xff] }
 0x2e2   : > { %v2159_v16 = vadd.f32 %v2158_v23, %v2081_v38 }
 0x2e3   : > { %v3052_v45 = vadd.f32 %v5156_v51, %v3004_v12 }
 0x2e4   : > { %2235 = vst.msk [vmem:[#allocation3 + $0xe8] sm:$0xff] %vm362_vm3, %v2159_v16  ;;  %v1930_v5 = vpop.f32.mrf.mxu1 }
 0x2e5   : > { %v2008_v41 = vadd.f32 %v5400_v32, %v1930_v5  ;;  %v2084_v60 = vpop.f32.mrf.mxu0  ;;  %v3046_v32 = vadd.f32 %v5131_v63, %v2998_v48  ;;  %v3076_v53 = vmax.f32 %v3052_v45, 0.0  ;;  %v3129_v48 = vld [vmem:[%s6177_s3 + $0x178] sm:$0xff]  ;;  %v3108_v45 = vld [vmem:[%s6177_s3 + $0xd0] sm:$0xff] }
 0x2e6   : > { %3245 = vmatpush.msrb.mxu0 %v3129_v48 }
 0x2e7   : > { %3206 = vmatmul.f32.gmra.mxu1 %v3064_v54  ;;  %2418 = vrot.lane.b32.xlu2 %v2008_v41, %s3766_s22  ;;  %v3070_v14 = vmax.f32 %v3046_v32, 0.0 }
 0x2e8   : > { %2923 = vrot.lane.b32.xlu1 %v5353_v31, %s3769_s11  ;;  %v2019_v31 = vpop.f32.mrf.mxu3  ;;  %3246 = vmatpush.msrb.mxu0 %v3128_v44  ;;  %v3120_v44 = vld [vmem:[%s6177_s3 + $0x130] sm:$0xff] }
 0x2e9   : > { %v2161_v43 = vpop.f32.mrf.mxu2  ;;  %v5492_v25 = vpop.permute.xlu1 %2428 }
 0x2ea   : > { %v2162_v19 = vadd.f32 %v2161_v43, %v2084_v60  ;;  %v3112_v60 = vld [vmem:[%s6177_s3 + $0xf0] sm:$0xff] }
 0x2eb   : > { %v2355_v16 = vld [vmem:[#allocation3 + $0xe8] sm:$0xff] }
 0x2ec   : > { %2241 = vst.msk [vmem:[#allocation3 + $0x118] sm:$0xff] %vm362_vm3, %v2162_v19  ;;  %v1933_v18 = vpop.f32.mrf.mxu1  ;;  %v3110_v19 = vld [vmem:[%s6177_s3 + $0xe0] sm:$0xff] }
 0x2ed   : > { %v2011_v38 = vadd.f32 %v5430_v49, %v1933_v18  ;;  %v2087_v58 = vpop.f32.mrf.mxu0 }
 0x2ef   : > { %3209 = vmatmul.f32.gmra.mxu1 %v3070_v14  ;;  %2430 = vrot.lane.b32.xlu2 %v2011_v38, %s3766_s22  ;;  %v3109_v38 = vld [vmem:[%s6177_s3 + $0xd8] sm:$0xff] }
 0x2f0   : > { %2406 = vrot.lane.b32.xlu1 %v2005_v30, %s3766_s22  ;;  %v2022_v5 = vpop.f32.mrf.mxu3  ;;  %v3125_v14 = vld [vmem:[%s6177_s3 + $0x158] sm:$0xff] }
 0x2f1   : > { %v2164_v3 = vpop.f32.mrf.mxu2  ;;  %v5501_v42 = vpop.permute.xlu1 %2440 }
 0x2f2   : > { %v2165_v24 = vadd.f32 %v2164_v3, %v2087_v58 }
 0x2f3   : > { %v2361_v23 = vld [vmem:[#allocation3 + $0x118] sm:$0xff] }
 0x2f4   : > { %2247 = vst.msk [vmem:[#allocation3 + $0x148] sm:$0xff] %vm362_vm3, %v2165_v24  ;;  %2420 = vrot.lane.b32.xlu0 %v2361_v23, %s3766_s22  ;;  %v1936_v49 = vpop.f32.mrf.mxu1  ;;  %v3124_v24 = vld [vmem:[%s6177_s3 + $0x150] sm:$0xff]  ;;  %v3107_v23 = vld [vmem:[%s6177_s3 + $0xc8] sm:$0xff] }
 0x2f5   : > { %v2014_v9 = vadd.f32 %v2013_v28, %v1936_v49  ;;  %v2090_v55 = vpop.f32.mrf.mxu0  ;;  %v3113_v28 = vld [vmem:[%s6177_s3 + $0xf8] sm:$0xff] }
 0x2f6   : > { %3216 = vmatpush.msra.mxu3 %v3113_v28 }
 0x2f7   : > { %3212 = vmatmul.f32.gmra.mxu1 %v3076_v53  ;;  %2442 = vrot.lane.b32.xlu2 %v2014_v9, %s3766_s22 }
 0x2f8   : > { %2408 = vrot.lane.b32.xlu1 %v2355_v16, %s3766_s22  ;;  %3217 = vmatpush.msra.mxu3 %v3112_v60  ;;  %v2025_v12 = vpop.f32.mrf.mxu3  ;;  %v3122_v16 = vld [vmem:[%s6177_s3 + $0x140] sm:$0xff]  ;;  %v3104_v60 = vld [vmem:[%s6177_s3 + $0xb0] sm:$0xff] }
 0x2f9   : > { %v2167_v30 = vpop.f32.mrf.mxu2  ;;  %v5507_v40 = vpop.permute.xlu1 %2603 }
 0x2fa   : > { %v2168_v4 = vadd.f32 %v2167_v30, %v2090_v55  ;;  %3218 = vmatpush.msra.mxu3 %v3111_v34  ;;  %v3106_v55 = vld [vmem:[%s6177_s3 + $0xc0] sm:$0xff]  ;;  %v5583_v34 = vpop.permute.xlu2 %2402 }
 0x2fb   : > { %v2367_v13 = vld [vmem:[#allocation3 + $0x148] sm:$0xff] }
 0x2fc   : > { %2253 = vst.msk [vmem:[#allocation3 + $0x178] sm:$0xff] %vm362_vm3, %v2168_v4  ;;  %2432 = vrot.lane.b32.xlu0 %v2367_v13, %s3766_s22  ;;  %v1939_v20 = vpop.f32.mrf.mxu1  ;;  %3219 = vmatpush.msra.mxu3 %v3110_v19  ;;  %v3105_v13 = vld [vmem:[%s6177_s3 + $0xb8] sm:$0xff] }
 0x2fd   : > { %v2017_v41 = vadd.f32 %v2016_v11, %v1939_v20  ;;  %v2093_v54 = vpop.f32.mrf.mxu0  ;;  %v3127_v11 = vld [vmem:[%s6177_s3 + $0x168] sm:$0xff]  ;;  %v3121_v20 = vld [vmem:[%s6177_s3 + $0x138] sm:$0xff] }
 0x2fe   : > { %3247 = vmatpush.msrb.mxu0 %v3127_v11  ;;  %3220 = vmatpush.msra.mxu3 %v3109_v38  ;;  %v3119_v11 = vld [vmem:[%s6177_s3 + $0x128] sm:$0xff] }
 0x300   : > { %3248 = vmatpush.msrb.mxu0 %v3126_v21  ;;  %3221 = vmatpush.msra.mxu3 %v3108_v45  ;;  %v3102_v21 = vld [vmem:[%s6177_s3 + $0xa0] sm:$0xff] }
 0x301   : > { %v2170_v6 = vpop.f32.mrf.mxu2  ;;  %v5529_v43 = vpop.permute.xlu1 %2732 }
 0x302   : > { %v2171_v32 = vadd.f32 %v2170_v6, %v2093_v54  ;;  %3249 = vmatpush.msrb.mxu0 %v3125_v14  ;;  %3222 = vmatpush.msra.mxu3 %v3107_v23  ;;  %v2028_v54 = vpop.f32.mrf.mxu3 }
 0x304   : > { %2259 = vst.msk [vmem:[#allocation3 + $0x1a8] sm:$0xff] %vm362_vm3, %v2171_v32  ;;  %v1942_v18 = vpop.f32.mrf.mxu1  ;;  %2571 = vrot.lane.b32.xlu0 %v2017_v41, %s3767_s12  ;;  %3250 = vmatpush.msrb.mxu0 %v3124_v24  ;;  %v5574_v41 = vpop.permute.xlu0 %2414 }
 0x305   : > { %v2020_v58 = vadd.f32 %v2019_v31, %v1942_v18  ;;  %v2096_v3 = vpop.f32.mrf.mxu0  ;;  %v3123_v31 = vld [vmem:[%s6177_s3 + $0x148] sm:$0xff]  ;;  %3223 = vmatpush.msra.mxu3 %v3106_v55  ;;  %v3118_v18 = vld [vmem:[%s6177_s3 + $0x120] sm:$0xff] }
 0x306   : > { %3251 = vmatpush.msrb.mxu0 %v3123_v31  ;;  %v3100_v31 = vld [vmem:[%s6177_s3 + $0x90] sm:$0xff] }
 0x307   : > { %2583 = vrot.lane.b32.xlu2 %v2020_v58, %s3767_s12  ;;  %3224 = vmatpush.msra.mxu3 %v3105_v13  ;;  %v3101_v58 = vld [vmem:[%s6177_s3 + $0x98] sm:$0xff] }
 0x308   : > { %3252 = vmatpush.msrb.mxu0 %v3122_v16  ;;  %v3115_v16 = vld [vmem:[%s6177_s3 + $0x108] sm:$0xff] }
 0x309   : > { %v2173_v49 = vpop.f32.mrf.mxu2  ;;  %v5558_v9 = vpop.permute.xlu1 %2581  ;;  %3225 = vmatpush.msra.mxu3 %v3104_v60 }
 0x30a   : > { %v2174_v53 = vadd.f32 %v2173_v49, %v2096_v3  ;;  %3253 = vmatpush.msrb.mxu0 %v3121_v20  ;;  %v3117_v3 = vld [vmem:[%s6177_s3 + $0x118] sm:$0xff]  ;;  %v3116_v49 = vld [vmem:[%s6177_s3 + $0x110] sm:$0xff]  ;;  %v2031_v55 = vpop.f32.mrf.mxu3  ;;  %v3098_v20 = vld [vmem:[%s6177_s3 + $0x80] sm:$0xff] }
 0x30b   : > { %v2520_v30 = vld [vmem:[#allocation3 + $0x1a8] sm:$0xff] }
 0x30c   : > { %2265 = vst.msk [vmem:[#allocation3 + $0x1d8] sm:$0xff] %vm362_vm3, %v2174_v53  ;;  %v1945_v4 = vpop.f32.mrf.mxu1  ;;  %2573 = vrot.lane.b32.xlu0 %v2520_v30, %s3767_s12  ;;  %3254 = vmatpush.msrb.mxu0 %v3120_v44  ;;  %v5609_v23 = vpop.permute.xlu0 %2438 }
 0x30d   : > { %v2023_v28 = vadd.f32 %v2022_v5, %v1945_v4  ;;  %v2099_v48 = vpop.f32.mrf.mxu0  ;;  %v3103_v5 = vld [vmem:[%s6177_s3 + $0xa8] sm:$0xff]  ;;  %v5617_v53 = vpop.permute.xlu2 %2591 }
 0x30e   : > { %3226 = vmatpush.msra.mxu3 %v3103_v5  ;;  %3255 = vmatpush.msrb.mxu0 %v3119_v11 }
 0x30f   : > { %2595 = vrot.lane.b32.xlu2 %v2023_v28, %s3767_s12  ;;  %v3114_v28 = vld [vmem:[%s6177_s3 + $0x100] sm:$0xff] }
 0x310   : > { %3227 = vmatpush.msra.mxu3 %v3102_v21  ;;  %3256 = vmatpush.msrb.mxu0 %v3118_v18 }
 0x311   : > { %v2176_v6 = vpop.f32.mrf.mxu2  ;;  %v5591_v32 = vpop.permute.xlu1 %2593 }
 0x312   : > { %v2177_v19 = vadd.f32 %v2176_v6, %v2099_v48  ;;  %3228 = vmatpush.msra.mxu3 %v3101_v58  ;;  %3257 = vmatpush.msrb.mxu0 %v3117_v3 }
 0x313   : > { %v2526_v38 = vld [vmem:[#allocation3 + $0x1d8] sm:$0xff] }
 0x314   : > { %2271 = vst.msk [vmem:[#allocation3 + $0x208] sm:$0xff] %vm362_vm3, %v2177_v19  ;;  %v1948_v14 = vpop.f32.mrf.mxu1  ;;  %2585 = vrot.lane.b32.xlu0 %v2526_v38, %s3767_s12  ;;  %3229 = vmatpush.msra.mxu3 %v3100_v31  ;;  %v5636_v11 = vpop.permute.xlu0 %2404 }
 0x315   : > { %v5607_v45 = vadd.f32 %v2025_v12, %v1948_v14  ;;  %v2102_v24 = vpop.f32.mrf.mxu0  ;;  %3258 = vmatpush.msrb.mxu0 %v3116_v49  ;;  %v3099_v12 = vld [vmem:[%s6177_s3 + $0x88] sm:$0xff]  ;;  %v5640_v21 = vpop.permute.xlu2 %2569 }
 0x316   : > { %3230 = vmatpush.msra.mxu3 %v3099_v12  ;;  %v2034_v38 = vpop.f32.mrf.mxu3 }
 0x317   : > { %3259 = vmatpush.msrb.mxu0 %v3115_v16 }
 0x318   : > { %3231 = vmatpush.msra.mxu3 %v3098_v20 }
 0x319   : > { %v2179_v30 = vpop.f32.mrf.mxu2  ;;  %v5625_v4 = vpop.permute.xlu1 %2756  ;;  %3260 = vmatpush.msrb.mxu0 %v3114_v28 }
 0x31a   : > { %v2180_v13 = vadd.f32 %v2179_v30, %v2102_v24  ;;  %v2448_v30 = vsel %vm2446_vm5, %v5168_v27, %v5583_v34 }
 0x31b   : > { %v2532_v48 = vld [vmem:[#allocation3 + $0x208] sm:$0xff] }
 0x31c   : > { %2277 = vst.msk [vmem:[#allocation3 + $0x238] sm:$0xff] %vm362_vm3, %v2180_v13  ;;  %v1951_v60 = vpop.f32.mrf.mxu1  ;;  %2597 = vrot.lane.b32.xlu0 %v2532_v48, %s3767_s12  ;;  %v3750_v13 = vld [vmem:[#allocation3 + $0x10] sm:$0xff] }
 0x31d   : > { %v2029_v44 = vadd.f32 %v2028_v54, %v1951_v60  ;;  %v2105_v5 = vpop.f32.mrf.mxu0  ;;  %v2449_v54 = vsel %vm2446_vm5, %v5583_v34, %v5636_v11  ;;  %v5649_v49 = vpop.permute.xlu2 %2744  ;;  %v2327_v60 = vld [vmem:[#allocation3 + $0x8] sm:$0xff] }
 0x31e   : > { %v2493_v20 = vadd.f32 %v3750_v13, %v2449_v54  ;;  %v2037_v48 = vpop.f32.mrf.mxu3  ;;  %v2492_v34 = vadd.f32 %v2448_v30, %v2327_v60 }
 0x31f   : > { %2736 = vrot.lane.b32.xlu2 %v2029_v44, %s3768_s18  ;;  %v2453_v44 = vsel %vm2446_vm5, %v5196_v61, %v5574_v41  ;;  %v2778_v61 = vsel %vm2776_vm7, %v5288_v57, %v5529_v43 }
 0x321   : > { %v2182_v6 = vpop.f32.mrf.mxu2  ;;  %v5638_v19 = vpop.permute.xlu1 %2768 }
 0x322   : > { %v2183_v18 = vadd.f32 %v2182_v6, %v2105_v5  ;;  %v2613_v5 = vsel %vm2611_vm6, %v5176_v39, %v5426_v33 }
 0x324   : > { %2283 = vst.msk [vmem:[#allocation3 + $0x268] sm:$0xff] %vm362_vm3, %v2183_v18  ;;  %v1954_v14 = vpop.f32.mrf.mxu1  ;;  %v2614_v18 = vsel %vm2611_vm6, %v5426_v33, %v5640_v21 }
 0x325   : > { %v2032_v58 = vadd.f32 %v2031_v55, %v1954_v14  ;;  %v2108_v3 = vpop.f32.mrf.mxu0  ;;  %v2333_v14 = vld [vmem:[#allocation3 + $0x38] sm:$0xff]  ;;  %v2658_v54 = vadd.f32 %v2614_v18, %v2493_v20 }
 0x327   : > { %2748 = vrot.lane.b32.xlu2 %v2032_v58, %s3768_s18  ;;  %v2618_v58 = vsel %vm2611_vm6, %v5219_v47, %v5471_v17 }
 0x329   : > { %v2185_v24 = vpop.f32.mrf.mxu2  ;;  %v5647_v31 = vpop.permute.xlu0 %2933 }
 0x32a   : > { %v2186_v12 = vadd.f32 %v2185_v24, %v2108_v3  ;;  %v5651_v16 = vpop.permute.xlu1 %2734  ;;  %v2657_v3 = vadd.f32 %v2613_v5, %v2492_v34 }
 0x32b   : > { %v2685_v55 = vld [vmem:[#allocation3 + $0x268] sm:$0xff]  ;;  %v2779_v39 = vsel %vm2776_vm7, %v5529_v43, %v5651_v16 }
 0x32c   : > { %2289 = vst.msk [vmem:[#allocation3 + $0x298] sm:$0xff] %vm362_vm3, %v2186_v12  ;;  %2738 = vrot.lane.b32.xlu0 %v2685_v55, %s3768_s18  ;;  %v1957_v28 = vpop.f32.mrf.mxu1  ;;  %v2822_v30 = vadd.f32 %v2778_v61, %v2657_v3  ;;  %v5679_v55 = vpop.permute.xlu2 %2909  ;;  %v2823_v13 = vadd.f32 %v2779_v39, %v2658_v54 }
 0x32d   : > { %v2035_v6 = vadd.f32 %v2034_v38, %v1957_v28  ;;  %v2111_v27 = vpop.f32.mrf.mxu0  ;;  %v2498_v38 = vadd.f32 %v2453_v44, %v2333_v14  ;;  %v2040_v61 = vpop.f32.mrf.mxu3 }
 0x32f   : > { %2760 = vrot.lane.b32.xlu2 %v2035_v6, %s3768_s18  ;;  %v2663_v12 = vadd.f32 %v2618_v58, %v2498_v38  ;;  %v2783_v6 = vsel %vm2776_vm7, %v5268_v29, %v5649_v49 }
 0x331   : > { %v2188_v24 = vpop.f32.mrf.mxu2  ;;  %v5677_v33 = vpop.permute.xlu0 %2899  ;;  %v2828_v18 = vadd.f32 %v2783_v6, %v2663_v12  ;;  %v2623_v6 = vsel %vm2611_vm6, %v5185_v8, %v5617_v53  ;;  %v3145_v8 = vld [vmem:[%s6177_s3 + $0x1f8] sm:$0xff] }
 0x332   : > { %v2189_v47 = vadd.f32 %v2188_v24, %v2111_v27  ;;  %v2898_v28 = vpop.permute.xlu1 %2897  ;;  %v2948_v27 = vsel %vm2941_vm8, %v5379_v15, %v5679_v55  ;;  %3274 = vmatpush.msrb.mxu2 %v3145_v8 }
 0x333   : > { %v2691_v57 = vld [vmem:[#allocation3 + $0x298] sm:$0xff]  ;;  %v2943_v60 = vsel %vm2941_vm8, %v5416_v46, %v2898_v28  ;;  %v2944_v43 = vsel %vm2941_vm8, %v2898_v28, %v5677_v33  ;;  %v2993_v39 = vadd.f32 %v2948_v27, %v2828_v18  ;;  %v2536_v18 = vld [vmem:[#allocation3 + $0x228] sm:$0xff] }
 0x334   : > { %2295 = vst.msk [vmem:[#allocation3 + $0x2c8] sm:$0xff] %vm362_vm3, %v2189_v47  ;;  %2750 = vrot.lane.b32.xlu0 %v2691_v57, %s3768_s18  ;;  %v1960_v20 = vpop.f32.mrf.mxu1  ;;  %v2987_v44 = vadd.f32 %v2943_v60, %v2822_v30  ;;  %v2988_v5 = vadd.f32 %v2944_v43, %v2823_v13  ;;  %v2458_v43 = vsel %vm2446_vm5, %v5159_v36, %v5402_v35 }
 0x335   : > { %v2038_v34 = vadd.f32 %v2037_v48, %v1960_v20  ;;  %v2114_v46 = vpop.f32.mrf.mxu0  ;;  %v3041_v12 = vadd.f32 %v5121_v52, %v2993_v39  ;;  %v2373_v20 = vld [vmem:[#allocation3 + $0x178] sm:$0xff]  ;;  %v2788_v36 = vsel %vm2776_vm7, %v5319_v2, %v5625_v4  ;;  %v2628_v39 = vsel %vm2611_vm6, %v5244_v1, %v5507_v40 }
 0x336   : > { %v3035_v14 = vadd.f32 %v5117_v0, %v2987_v44  ;;  %v3036_v58 = vadd.f32 %v5117_v0, %v2988_v5  ;;  %v2339_v5 = vld [vmem:[#allocation3 + $0x68] sm:$0xff] }
 0x337   : > { %2607 = vrot.lane.b32.xlu2 %v5607_v45, %s3767_s12  ;;  %v2043_v45 = vpop.f32.mrf.mxu3  ;;  %v3065_v13 = vmax.f32 %v3041_v12, 0.0 }
 0x338   : > { %v3059_v38 = vmax.f32 %v3035_v14, 0.0  ;;  %v3060_v3 = vmax.f32 %v3036_v58, 0.0  ;;  %v2463_v14 = vsel %vm2446_vm5, %v5282_v59, %v5609_v23 }
 0x339   : > { %v2191_v54 = vpop.f32.mrf.mxu2 }
 0x33a   : > { %v2192_v29 = vadd.f32 %v2191_v54, %v2114_v46  ;;  %v5697_v24 = vpop.permute.xlu1 %2746  ;;  %3232 = vmatmul.f32.vlgmr.msra.gmra.mxu3 %v3059_v38  ;;  %3261 = vmatmul.f32.vlgmr.msrb.gmra.mxu0 %v3060_v3  ;;  %v2504_v46 = vadd.f32 %v2458_v43, %v2339_v5 }
 0x33b   : > { %v2697_v15 = vld [vmem:[#allocation3 + $0x2c8] sm:$0xff] }
 0x33c   : > { %2301 = vst.msk [vmem:[#allocation3 + $0x2f8] sm:$0xff] %vm362_vm3, %v2192_v29  ;;  %2762 = vrot.lane.b32.xlu0 %v2697_v15, %s3768_s18  ;;  %v1963_v48 = vpop.f32.mrf.mxu1  ;;  %v2669_v58 = vadd.f32 %v2623_v6, %v2504_v46  ;;  %v2454_v15 = vsel %vm2446_vm5, %v5574_v41, %v5450_v22  ;;  %v2619_v41 = vsel %vm2611_vm6, %v5471_v17, %v5558_v9 }
 0x33d   : > { %v2041_v30 = vadd.f32 %v2040_v61, %v1963_v48  ;;  %v2117_v47 = vpop.f32.mrf.mxu0  ;;  %v2345_v61 = vld [vmem:[#allocation3 + $0x98] sm:$0xff]  ;;  %v2793_v48 = vsel %vm2776_vm7, %v5385_v56, %v5638_v19  ;;  %v2958_v56 = vsel %vm2941_vm8, %v5487_v37, %v5647_v31 }
 0x33e   : > { %v2510_v59 = vadd.f32 %v2463_v14, %v2345_v61  ;;  %v2834_v3 = vadd.f32 %v2788_v36, %v2669_v58 }
 0x33f   : > { %2901 = vrot.lane.b32.xlu1 %v2041_v30, %s3769_s11  ;;  %2772 = vrot.lane.b32.xlu2 %v2038_v34, %s3768_s18  ;;  %v2046_v2 = vpop.f32.mrf.mxu3 }
 0x340   : > { %v2675_v30 = vadd.f32 %v2628_v39, %v2510_v59  ;;  %v2340_v39 = vld [vmem:[#allocation3 + $0x70] sm:$0xff] }
 0x341   : > { %v2194_v28 = vpop.f32.mrf.mxu2 }
 0x342   : > { %v2195_v57 = vadd.f32 %v2194_v28, %v2117_v47  ;;  %v5704_v60 = vpop.permute.xlu1 %2758  ;;  %3235 = vmatmul.f32.gmra.mxu3 %v3065_v13  ;;  %v3751_v28 = vld [vmem:[#allocation3 + $0x40] sm:$0xff]  ;;  %v2840_v43 = vadd.f32 %v2793_v48, %v2675_v30 }
 0x344   : > { %2307 = vst.msk [vmem:[#allocation3 + $0x328] sm:$0xff] %vm362_vm3, %v2195_v57  ;;  %2444 = vrot.lane.b32.xlu0 %v2373_v20, %s3766_s22  ;;  %v1966_v44 = vpop.f32.mrf.mxu1  ;;  %v2499_v57 = vadd.f32 %v3751_v28, %v2454_v15  ;;  %v2784_v20 = vsel %vm2776_vm7, %v5649_v49, %v5697_v24  ;;  %v3005_v37 = vadd.f32 %v2958_v56, %v2840_v43  ;;  %v3142_v43 = vld [vmem:[%s6177_s3 + $0x1e0] sm:$0xff] }
 0x345   : > { %v2044_v27 = vadd.f32 %v2043_v45, %v1966_v44  ;;  %v2120_v34 = vpop.f32.mrf.mxu0  ;;  %v5751_v44 = vpop.permute.xlu2 %2418  ;;  %v2459_v49 = vsel %vm2446_vm5, %v5402_v35, %v5492_v25  ;;  %v3144_v35 = vld [vmem:[%s6177_s3 + $0x1f0] sm:$0xff] }
 0x346   : > { %v2664_v17 = vadd.f32 %v2619_v41, %v2499_v57  ;;  %v3053_v61 = vadd.f32 %v5156_v51, %v3005_v37  ;;  %3275 = vmatpush.msrb.mxu2 %v3144_v35  ;;  %v3139_v35 = vld [vmem:[%s6177_s3 + $0x1c8] sm:$0xff] }
 0x347   : > { %2605 = vrot.lane.b32.xlu1 %v2536_v18, %s3767_s12  ;;  %2913 = vrot.lane.b32.xlu2 %v2044_v27, %s3769_s11  ;;  %v2049_v14 = vpop.f32.mrf.mxu3 }
 0x348   : > { %v3077_v15 = vmax.f32 %v3053_v61, 0.0 }
 0x349   : > { %v2197_v38 = vpop.f32.mrf.mxu2 }
 0x34a   : > { %v2198_v54 = vadd.f32 %v2197_v38, %v2120_v34  ;;  %v5728_v29 = vpop.permute.xlu1 %2921  ;;  %v2829_v34 = vadd.f32 %v2784_v20, %v2664_v17  ;;  %v2624_v38 = vsel %vm2611_vm6, %v5617_v53, %v5591_v32 }
 0x34b   : > { %v2850_v12 = vld [vmem:[#allocation3 + $0x328] sm:$0xff]  ;;  %v2953_v1 = vsel %vm2941_vm8, %v5463_v10, %v5728_v29 }
 0x34c   : > { %2313 = vst.msk [vmem:[#allocation3 + $0x358] sm:$0xff] %vm362_vm3, %v2198_v54  ;;  %2903 = vrot.lane.b32.xlu0 %v2850_v12, %s3769_s11  ;;  %v1969_v47 = vpop.f32.mrf.mxu1  ;;  %v2999_v45 = vadd.f32 %v2953_v1, %v2834_v3  ;;  %v2505_v3 = vadd.f32 %v2459_v49, %v2340_v39  ;;  %v2789_v54 = vsel %vm2776_vm7, %v5625_v4, %v5704_v60  ;;  %v3143_v12 = vld [vmem:[%s6177_s3 + $0x1e8] sm:$0xff] }
 0x34d   : > { %v2047_v13 = vadd.f32 %v2046_v2, %v1969_v47  ;;  %v2123_v5 = vpop.f32.mrf.mxu0  ;;  %v5783_v1 = vpop.permute.xlu2 %2430  ;;  %3276 = vmatpush.msrb.mxu2 %v3143_v12 }
 0x34e   : > { %v3047_v10 = vadd.f32 %v5131_v63, %v2999_v45  ;;  %v2670_v53 = vadd.f32 %v2624_v38, %v2505_v3  ;;  %v3159_v3 = vld [vmem:[%s6177_s3 + $0x268] sm:$0xff] }
 0x34f   : > { %2770 = vrot.lane.b32.xlu1 %v5260_v26, %s3768_s18  ;;  %2925 = vrot.lane.b32.xlu2 %v2047_v13, %s3769_s11  ;;  %v2703_v13 = vld [vmem:[#allocation3 + $0x2f8] sm:$0xff] }
 0x350   : > { %v3071_v6 = vmax.f32 %v3047_v10, 0.0  ;;  %v2835_v47 = vadd.f32 %v2789_v54, %v2670_v53  ;;  %3277 = vmatpush.msrb.mxu2 %v3142_v43  ;;  %v3158_v54 = vld [vmem:[%s6177_s3 + $0x260] sm:$0xff]  ;;  %v3153_v43 = vld [vmem:[%s6177_s3 + $0x238] sm:$0xff] }
 0x351   : > { %v2200_v27 = vpop.f32.mrf.mxu2 }
 0x352   : > { %v2201_v46 = vadd.f32 %v2200_v27, %v2123_v5  ;;  %v5756_v18 = vpop.permute.xlu1 %2911  ;;  %3238 = vmatmul.f32.gmra.mxu3 %v3071_v6 }
 0x353   : > { %v2856_v36 = vld [vmem:[#allocation3 + $0x358] sm:$0xff]  ;;  %v2949_v26 = vsel %vm2941_vm8, %v5679_v55, %v5756_v18 }
 0x354   : > { %2319 = vst.msk [vmem:[#allocation3 + $0x388] sm:$0xff] %vm362_vm3, %v2201_v46  ;;  %2915 = vrot.lane.b32.xlu0 %v2856_v36, %s3769_s11  ;;  %v1972_v58 = vpop.f32.mrf.mxu1  ;;  %v2994_v8 = vadd.f32 %v2949_v26, %v2829_v34  ;;  %v3141_v34 = vld [vmem:[%s6177_s3 + $0x1d8] sm:$0xff]  ;;  %v3140_v46 = vld [vmem:[%s6177_s3 + $0x1d0] sm:$0xff] }
 0x355   : > { %v2050_v59 = vadd.f32 %v2049_v14, %v1972_v58  ;;  %v2126_v2 = vpop.f32.mrf.mxu0  ;;  %v5797_v10 = vpop.permute.xlu2 %2442  ;;  %3278 = vmatpush.msrb.mxu2 %v3141_v34  ;;  %v3130_v34 = vld [vmem:[%s6177_s3 + $0x180] sm:$0xff] }
 0x356   : > { %v3042_v55 = vadd.f32 %v5121_v52, %v2994_v8 }
 0x357   : > { %2935 = vrot.lane.b32.xlu1 %v5335_v62, %s3769_s11  ;;  %2937 = vrot.lane.b32.xlu2 %v2050_v59, %s3769_s11  ;;  %v3161_v59 = vld [vmem:[%s6177_s3 + $0x278] sm:$0xff] }
 0x358   : > { %v3066_v48 = vmax.f32 %v3042_v55, 0.0  ;;  %3279 = vmatpush.msrb.mxu2 %v3140_v46  ;;  %3303 = vmatpush.msra.mxu1 %v3161_v59  ;;  %v3138_v55 = vld [vmem:[%s6177_s3 + $0x1c0] sm:$0xff] }
 0x359   : > { %v2203_v30 = vpop.f32.mrf.mxu2 }
 0x35a   : > { %v5785_v45 = vpop.permute.xlu1 %2923  ;;  %3241 = vmatmul.f32.gmra.mxu3 %v3077_v15  ;;  %3264 = vmatmul.f32.gmra.mxu0 %v3066_v48  ;;  %v2204_v62 = vadd.f32 %v2203_v30, %v2126_v2  ;;  %v3137_v2 = vld [vmem:[%s6177_s3 + $0x1b8] sm:$0xff]  ;;  %v3136_v48 = vld [vmem:[%s6177_s3 + $0x1b0] sm:$0xff] }
 0x35b   : > { %v2862_v4 = vld [vmem:[#allocation3 + $0x388] sm:$0xff]  ;;  %v2954_v41 = vsel %vm2941_vm8, %v5728_v29, %v5785_v45  ;;  %v2538_v29 = vld [vmem:[#allocation3 + $0x238] sm:$0xff]  ;;  %3280 = vmatpush.msrb.mxu2 %v3139_v35 }
 0x35c   : > { %2927 = vrot.lane.b32.xlu0 %v2862_v4, %s3769_s11  ;;  %v3000_v56 = vadd.f32 %v2954_v41, %v2835_v47  ;;  %2325 = vst.msk [vmem:[#allocation3 + $0x3b8] sm:$0xff] %vm362_vm3, %v2204_v62  ;;  %v3157_v47 = vld [vmem:[%s6177_s3 + $0x258] sm:$0xff]  ;;  %v3135_v4 = vld [vmem:[%s6177_s3 + $0x1a8] sm:$0xff] }
 0x35d   : > { %3281 = vmatpush.msrb.mxu2 %v3138_v55  ;;  %v3155_v41 = vld [vmem:[%s6177_s3 + $0x248] sm:$0xff]  ;;  %v3149_v35 = vld [vmem:[%s6177_s3 + $0x218] sm:$0xff] }
 0x35e   : > { %v3048_v28 = vadd.f32 %v5131_v63, %v3000_v56  ;;  %v3134_v56 = vld [vmem:[%s6177_s3 + $0x1a0] sm:$0xff]  ;;  %v3163_v55 = vld [vmem:[%s6177_s3 + $0x288] sm:$0xff] }
 0x35f   : > { %2774 = vrot.lane.b32.xlu1 %v2703_v13, %s3768_s18  ;;  %3282 = vmatpush.msrb.mxu2 %v3137_v2  ;;  %v3154_v13 = vld [vmem:[%s6177_s3 + $0x240] sm:$0xff] }
 0x360   : > { %v3072_v57 = vmax.f32 %v3048_v28, 0.0  ;;  %v3133_v28 = vld [vmem:[%s6177_s3 + $0x198] sm:$0xff]  ;;  %v3162_v2 = vld [vmem:[%s6177_s3 + $0x280] sm:$0xff] }
 0x361   : > { %v5806_v37 = vpop.permute.xlu2 %2583  ;;  %3283 = vmatpush.msrb.mxu2 %v3136_v48 }
 0x362   : > { %3267 = vmatmul.f32.gmra.mxu0 %v3072_v57  ;;  %v3132_v57 = vld [vmem:[%s6177_s3 + $0x190] sm:$0xff]  ;;  %v2407_v59 = vpop.permute.xlu1 %2406 }
 0x363   : > { %v2868_v20 = vld [vmem:[#allocation3 + $0x3b8] sm:$0xff]  ;;  %3284 = vmatpush.msrb.mxu2 %v3135_v4 }
 0x364   : > { %2609 = vrot.lane.b32.xlu0 %v2538_v29, %s3767_s12  ;;  %2939 = vrot.lane.b32.xlu2 %v2868_v20, %s3769_s11  ;;  %v3152_v29 = vld [vmem:[%s6177_s3 + $0x230] sm:$0xff]  ;;  %v3165_v20 = vld [vmem:[%s6177_s3 + $0x298] sm:$0xf] }
 0x365   : > { %3285 = vmatpush.msrb.mxu2 %v3134_v56  ;;  %3655 = vmatpush.msk.msrb.mxu3 %vm3183_vm9, %v3165_v20  ;;  %v2329_v4 = vld [vmem:[#allocation3 + $0x18] sm:$0xff]  ;;  %v2620_v20 = vsel %vm2611_vm6, %v5558_v9, %v5806_v37  ;;  %v2460_v9 = vsel %vm2446_vm5, %v5492_v25, %v5783_v1 }
 0x366   : > { %v5801_v5 = vpop.permute.xlu0 %2420 }
 0x367   : > { %v2456_v17 = vsel %vm2446_vm5, %v5751_v44, %v5801_v5  ;;  %3286 = vmatpush.msrb.mxu2 %v3133_v28 }
 0x368   : > { %v2501_v58 = vadd.f32 %v2456_v17, %v5388_v50  ;;  %v3160_v50 = vld [vmem:[%s6177_s3 + $0x270] sm:$0xff]  ;;  %v3131_v17 = vld [vmem:[%s6177_s3 + $0x188] sm:$0xff] }
 0x369   : > { %v5819_v14 = vpop.permute.xlu2 %2595  ;;  %3304 = vmatpush.msra.mxu1 %v3160_v50  ;;  %3287 = vmatpush.msrb.mxu2 %v3132_v57  ;;  %v3164_v50 = vld [vmem:[%s6177_s3 + $0x290] sm:$0xff] }
 0x36a   : > { %3345 = vmatpush.msrb.mxu3 %v3164_v50 }
 0x36b   : > { %3305 = vmatpush.msra.mxu1 %v3159_v3  ;;  %3288 = vmatpush.msrb.mxu2 %v3131_v17  ;;  %v3148_v3 = vld [vmem:[%s6177_s3 + $0x210] sm:$0xff] }
 0x36c   : > { %3346 = vmatpush.msrb.mxu3 %v3163_v55 }
 0x36d   : > { %3306 = vmatpush.msra.mxu1 %v3158_v54  ;;  %3289 = vmatpush.msrb.mxu2 %v3130_v34  ;;  %v3147_v54 = vld [vmem:[%s6177_s3 + $0x208] sm:$0xff] }
 0x36e   : > { %v5808_v6 = vpop.permute.xlu0 %2432  ;;  %3347 = vmatpush.msrb.mxu3 %v3162_v2  ;;  %v2625_v2 = vsel %vm2611_vm6, %v5591_v32, %v5819_v14 }
 0x36f   : > { %v2461_v27 = vsel %vm2446_vm5, %v5783_v1, %v5808_v6  ;;  %3307 = vmatpush.msra.mxu1 %v3157_v47  ;;  %v2409_v47 = vpop.permute.xlu1 %2408  ;;  %v3752_v1 = vld [vmem:[#allocation3 + $0x20] sm:$0xff] }
 0x370   : > { %v2507_v53 = vadd.f32 %v2461_v27, %v5409_v7  ;;  %v3156_v7 = vld [vmem:[%s6177_s3 + $0x250] sm:$0xff]  ;;  %v3151_v27 = vld [vmem:[%s6177_s3 + $0x228] sm:$0xff] }
 0x371   : > { %3308 = vmatpush.msra.mxu1 %v3156_v7  ;;  %v2450_v7 = vsel %vm2446_vm5, %v5636_v11, %v2407_v59  ;;  %v2335_v11 = vld [vmem:[#allocation3 + $0x48] sm:$0xff] }
 0x372   : > { %v2494_v56 = vadd.f32 %v2450_v7, %v2329_v4 }
 0x373   : > { %3309 = vmatpush.msra.mxu1 %v3155_v41 }
 0x375   : > { %3310 = vmatpush.msra.mxu1 %v3154_v13  ;;  %v2455_v13 = vsel %vm2446_vm5, %v5450_v22, %v5751_v44 }
 0x376   : > { %v5821_v49 = vpop.permute.xlu0 %2571 }
 0x377   : > { %3311 = vmatpush.msra.mxu1 %v3153_v43  ;;  %v2615_v41 = vsel %vm2611_vm6, %v5640_v21, %v5821_v49  ;;  %v2500_v21 = vadd.f32 %v2455_v13, %v2335_v11 }
 0x378   : > { %v2659_v43 = vadd.f32 %v2615_v41, %v2494_v56 }
 0x379   : > { %v5823_v36 = vpop.permute.xlu2 %2736  ;;  %3312 = vmatpush.msra.mxu1 %v3152_v29  ;;  %v2665_v44 = vadd.f32 %v2620_v20, %v2500_v21 }
 0x37a   : > { %v2780_v28 = vsel %vm2776_vm7, %v5651_v16, %v5823_v36 }
 0x37b   : > { %3313 = vmatpush.msra.mxu1 %v3151_v27  ;;  %v2824_v17 = vadd.f32 %v2780_v28, %v2659_v43 }
 0x37e   : > { %v5825_v26 = vpop.permute.xlu0 %2573 }
 0x37f   : > { %v2616_v7 = vsel %vm2611_vm6, %v5821_v49, %v5825_v26 }
 0x381   : > { %v5833_v39 = vpop.permute.xlu2 %2748 }
 0x382   : > { %v2785_v22 = vsel %vm2776_vm7, %v5697_v24, %v5833_v39  ;;  %v2451_v24 = vsel %vm2446_vm5, %v2407_v59, %v2409_v47 }
 0x383   : > { %v2495_v59 = vadd.f32 %v3752_v1, %v2451_v24  ;;  %v2347_v24 = vld [vmem:[#allocation3 + $0xa8] sm:$0xff] }
 0x384   : > { %v2343_v1 = vld [vmem:[#allocation3 + $0x88] sm:$0xff] }
 0x385   : > { %v2660_v49 = vadd.f32 %v2616_v7, %v2495_v59 }
 0x386   : > { %v5828_v8 = vpop.permute.xlu0 %2585 }
 0x387   : > { %v2621_v61 = vsel %vm2611_vm6, %v5806_v37, %v5828_v8 }
 0x388   : > { %v5835_v38 = vadd.f32 %v2621_v61, %v2501_v58  ;;  %v3150_v58 = vld [vmem:[%s6177_s3 + $0x220] sm:$0xff] }
 0x389   : > { %v5875_v62 = vpop.permute.xlu2 %2760  ;;  %3314 = vmatpush.msra.mxu1 %v3150_v58 }
 0x38a   : > { %v2790_v41 = vsel %vm2776_vm7, %v5704_v60, %v5875_v62  ;;  %v2337_v60 = vld [vmem:[#allocation3 + $0x58] sm:$0xff] }
 0x38b   : > { %3315 = vmatpush.msra.mxu1 %v3149_v35  ;;  %v2830_v35 = vadd.f32 %v2785_v22, %v2665_v44  ;;  %v2464_v44 = vsel %vm2446_vm5, %v5609_v23, %v5501_v42  ;;  %v3379_v23 = vld [vmem:[%s6179_s5 + $0x70] sm:$0xff] }
 0x38d   : > { %3316 = vmatpush.msra.mxu1 %v3148_v3 }
 0x38e   : > { %v5859_v15 = vpop.permute.xlu0 %2597 }
 0x38f   : > { %v2626_v12 = vsel %vm2611_vm6, %v5819_v14, %v5859_v15  ;;  %3317 = vmatpush.msra.mxu1 %v3147_v54  ;;  %v2331_v54 = vld [vmem:[#allocation3 + $0x28] sm:$0xff] }
 0x390   : > { %v5867_v30 = vadd.f32 %v2626_v12, %v2507_v53  ;;  %v3146_v53 = vld [vmem:[%s6177_s3 + $0x200] sm:$0xff] }
 0x391   : > { %v5913_v46 = vpop.permute.xlu2 %2607  ;;  %3318 = vmatpush.msra.mxu1 %v3146_v53  ;;  %v2496_v53 = vadd.f32 %v2409_v47, %v2331_v54 }
 0x393   : > { %v2661_v13 = vadd.f32 %v5825_v26, %v2496_v53 }
 0x399   : > { %v5941_v48 = vpop.permute.xlu2 %2772 }
 0x39e   : > { %v5918_v61 = vpop.permute.xlu0 %2738 }
 0x39f   : > { %v2781_v32 = vsel %vm2776_vm7, %v5823_v36, %v5918_v61  ;;  %v2826_v43 = vadd.f32 %v5918_v61, %v2661_v13  ;;  %v2502_v36 = vadd.f32 %v5801_v5, %v2337_v60  ;;  %v2465_v61 = vsel %vm2446_vm5, %v5501_v42, %v5797_v10  ;;  %v3380_v5 = vld [vmem:[%s6179_s5 + $0x78] sm:$0xff] }
 0x3a0   : > { %v2825_v11 = vadd.f32 %v2781_v32, %v2660_v49  ;;  %3385 = vmatpush.msra.mxu0 %v3380_v5  ;;  %3667 = vmatpush.msrb.mxu1 %v3380_v5  ;;  %v2512_v54 = vadd.f32 %v2465_v61, %v2347_v24  ;;  %v3376_v32 = vld [vmem:[%s6179_s5 + $0x58] sm:$0xff] }
 0x3a1   : > { %v5958_v29 = vpop.permute.xlu2 %2913 }
 0x3a2   : > { %v2950_v58 = vsel %vm2941_vm8, %v5756_v18, %v5958_v29  ;;  %3386 = vmatpush.msra.mxu0 %v3379_v23  ;;  %3668 = vmatpush.msrb.mxu1 %v3379_v23 }
 0x3a3   : > { %v2995_v3 = vadd.f32 %v2950_v58, %v2830_v35  ;;  %v2667_v58 = vadd.f32 %v5828_v8, %v2502_v36  ;;  %v2346_v35 = vld [vmem:[#allocation3 + $0xa0] sm:$0xff] }
 0x3a4   : > { %v2511_v8 = vadd.f32 %v2464_v44, %v2346_v35  ;;  %v3371_v35 = vld [vmem:[%s6179_s5 + $0x30] sm:$0xff] }
 0x3a5   : > { %v3043_v14 = vadd.f32 %v5121_v52, %v2995_v3 }
 0x3a6   : > { %v5943_v12 = vpop.permute.xlu0 %2750 }
 0x3a7   : > { %v3067_v22 = vmax.f32 %v3043_v14, 0.0 }
 0x3a9   : > { %v5984_v4 = vpop.permute.xlu2 %2925 }
 0x3aa   : > { %v2955_v47 = vsel %vm2941_vm8, %v5785_v45, %v5984_v4 }
 0x3ae   : > { %v5956_v57 = vpop.permute.xlu0 %2762 }
 0x3af   : > { %v2791_v60 = vsel %vm2776_vm7, %v5875_v62, %v5956_v57 }
 0x3b0   : > { %v2837_v62 = vadd.f32 %v2791_v60, %v5867_v30  ;;  %v3372_v30 = vld [vmem:[%s6179_s5 + $0x38] sm:$0xff] }
 0x3b1   : > { %v2902_v27 = vpop.permute.xlu1 %2901 }
 0x3b2   : > { %v2945_v16 = vsel %vm2941_vm8, %v5677_v33, %v2902_v27  ;;  %v2341_v33 = vld [vmem:[#allocation3 + $0x78] sm:$0xff] }
 0x3b3   : > { %v2989_v34 = vadd.f32 %v2945_v16, %v2824_v17  ;;  %v2506_v18 = vadd.f32 %v2460_v9, %v2341_v33  ;;  %v3378_v33 = vld [vmem:[%s6179_s5 + $0x68] sm:$0xff] }
 0x3b4   : > { %3387 = vmatpush.msra.mxu0 %v3378_v33  ;;  %3669 = vmatpush.msrb.mxu1 %v3378_v33 }
 0x3b5   : > { %v3037_v50 = vadd.f32 %v5117_v0, %v2989_v34  ;;  %v2671_v56 = vadd.f32 %v2625_v2, %v2506_v18 }
 0x3b6   : > { %v5975_v37 = vpop.permute.xlu0 %2444 }
 0x3b7   : > { %v3061_v55 = vmax.f32 %v3037_v50, 0.0  ;;  %v2836_v28 = vadd.f32 %v2790_v41, %v2671_v56  ;;  %v2786_v50 = vsel %vm2776_vm7, %v5833_v39, %v5943_v12  ;;  %v2832_v39 = vadd.f32 %v5943_v12, %v2667_v58  ;;  %v6038_v56 = vpop.permute.xlu2 %2937 }
 0x3b8   : > { %v2466_v5 = vsel %vm2446_vm5, %v5797_v10, %v5975_v37 }
 0x3b9   : > { %v2606_v25 = vpop.permute.xlu1 %2605  ;;  %3290 = vmatmul.f32.vlgmr.msrb.gmra.mxu2 %v3061_v55  ;;  %v3001_v21 = vadd.f32 %v2955_v47, %v2836_v28 }
 0x3ba   : > { %v2629_v42 = vsel %vm2611_vm6, %v5507_v40, %v2606_v25  ;;  %v2630_v55 = vsel %vm2611_vm6, %v2606_v25, %v5913_v46  ;;  %v2831_v40 = vadd.f32 %v2786_v50, %v5835_v38  ;;  %v3377_v25 = vld [vmem:[%s6179_s5 + $0x60] sm:$0xff]  ;;  %v2349_v50 = vld [vmem:[#allocation3 + $0xb8] sm:$0xff] }
 0x3bb   : > { %v2676_v2 = vadd.f32 %v2629_v42, %v2511_v8  ;;  %v2677_v12 = vadd.f32 %v2630_v55, %v2512_v54  ;;  %3388 = vmatpush.msra.mxu0 %v3377_v25  ;;  %3670 = vmatpush.msrb.mxu1 %v3377_v25  ;;  %v2348_v42 = vld [vmem:[#allocation3 + $0xb0] sm:$0xff] }
 0x3bd   : > { %3389 = vmatpush.msra.mxu0 %v3376_v32  ;;  %3671 = vmatpush.msrb.mxu1 %v3376_v32 }
 0x3be   : > { %v2904_v20 = vpop.permute.xlu0 %2903 }
 0x3bf   : > { %v2946_v26 = vsel %vm2941_vm8, %v2902_v27, %v2904_v20  ;;  %v2991_v17 = vadd.f32 %v2904_v20, %v2826_v43  ;;  %v3375_v20 = vld [vmem:[%s6179_s5 + $0x50] sm:$0xff]  ;;  %v2940_v33 = vpop.permute.xlu2 %2939 }
 0x3c0   : > { %v2990_v16 = vadd.f32 %v2946_v26, %v2825_v11  ;;  %3390 = vmatpush.msra.mxu0 %v3375_v20  ;;  %3672 = vmatpush.msrb.mxu1 %v3375_v20 }
 0x3c1   : > { %v3039_v45 = vadd.f32 %v5117_v0, %v2991_v17  ;;  %v2771_v34 = vpop.permute.xlu1 %2770  ;;  %3293 = vmatmul.f32.gmra.mxu2 %v3067_v22 }
 0x3c2   : > { %v3038_v27 = vadd.f32 %v5117_v0, %v2990_v16  ;;  %v3049_v0 = vadd.f32 %v5131_v63, %v3001_v21  ;;  %v2794_v53 = vsel %vm2776_vm7, %v5638_v19, %v2771_v34  ;;  %v2795_v7 = vsel %vm2776_vm7, %v2771_v34, %v5941_v48 }
 0x3c3   : > { %v3063_v9 = vmax.f32 %v3039_v45, 0.0  ;;  %v2508_v19 = vadd.f32 %v5808_v6, %v2343_v1  ;;  %v2841_v49 = vadd.f32 %v2794_v53, %v2676_v2  ;;  %v2842_v47 = vadd.f32 %v2795_v7, %v2677_v12  ;;  %v3204_v1 = vpop.f32.mrf.mxu1  ;;  %v3369_v12 = vld [vmem:[%s6179_s5 + $0x20] sm:$0xff] }
 0x3c4   : > { %v3062_v3 = vmax.f32 %v3038_v27, 0.0  ;;  %v3073_v38 = vmax.f32 %v3049_v0, 0.0  ;;  %v2514_v0 = vadd.f32 %v5975_v37, %v2349_v50 }
 0x3c5   : > { %3656 = vmatmul.msk.f32.vlgmr.msrb.gmra.mxu3 %vm3170_vm10, %v3063_v9 }
 0x3c6   : > { %v2916_v18 = vpop.permute.xlu0 %2915  ;;  %3319 = vmatmul.f32.vlgmr.msra.gmra.mxu1 %v3062_v3 }
 0x3c7   : > { %v2951_v59 = vsel %vm2941_vm8, %v5958_v29, %v2916_v18  ;;  %v2997_v41 = vadd.f32 %v2916_v18, %v2832_v39  ;;  %v2673_v29 = vadd.f32 %v5859_v15, %v2508_v19  ;;  %v3365_v19 = vld [vmem:[%s6179_s5] sm:$0xff] }
 0x3c8   : > { %v2996_v13 = vadd.f32 %v2951_v59, %v2831_v40  ;;  %v2961_v40 = vsel %vm2941_vm8, %v6038_v56, %v2940_v33  ;;  %v3233_v59 = vpop.f32.mrf.mxu3 }
 0x3c9   : > { %v3045_v14 = vadd.f32 %v5121_v52, %v2997_v41  ;;  %v2936_v28 = vpop.permute.xlu1 %2935  ;;  %3296 = vmatmul.f32.gmra.mxu2 %v3073_v38  ;;  %v2838_v17 = vadd.f32 %v5956_v57, %v2673_v29  ;;  %v3373_v57 = vld [vmem:[%s6179_s5 + $0x40] sm:$0xff]  ;;  %v3367_v38 = vld [vmem:[%s6179_s5 + $0x10] sm:$0xff]  ;;  %v3262_v29 = vpop.f32.mrf.mxu0 }
 0x3ca   : > { %v3044_v43 = vadd.f32 %v5121_v52, %v2996_v13  ;;  %v2959_v11 = vsel %vm2941_vm8, %v5647_v31, %v2936_v28  ;;  %v2960_v6 = vsel %vm2941_vm8, %v2936_v28, %v6038_v56  ;;  %v3374_v31 = vld [vmem:[%s6179_s5 + $0x48] sm:$0xff] }
 0x3cb   : > { %v3069_v21 = vmax.f32 %v3045_v14, 0.0  ;;  %v3006_v26 = vadd.f32 %v2959_v11, %v2841_v49  ;;  %v3007_v15 = vadd.f32 %v2960_v6, %v2842_v47  ;;  %3391 = vmatpush.msra.mxu0 %v3374_v31  ;;  %3673 = vmatpush.msrb.mxu1 %v3374_v31  ;;  %v3207_v41 = vpop.f32.mrf.mxu1  ;;  %v3366_v56 = vld [vmem:[%s6179_s5 + $0x8] sm:$0xff]  ;;  %v3703_v49 = vld [vmem:[%s6178_s4] ss:$0 sm:$0xff] }
 0x3cc   : > { %v3068_v52 = vmax.f32 %v3044_v43, 0.0  ;;  %v3205_v28 = vadd.f32 %v3703_v49, %v3204_v1 }
 0x3cd   : > { %3657 = vmatmul.msk.f32.gmra.mxu3 %vm3170_vm10, %v3069_v21  ;;  %v3054_v22 = vadd.f32 %v5156_v51, %v3006_v26  ;;  %v3055_v36 = vadd.f32 %v5156_v51, %v3007_v15  ;;  %3392 = vmatpush.msra.mxu0 %v3373_v57  ;;  %v3208_v15 = vadd.f32 %v3703_v49, %v3207_v41 }
 0x3ce   : > { %v2928_v16 = vpop.permute.xlu0 %2927  ;;  %3322 = vmatmul.f32.gmra.mxu1 %v3068_v52  ;;  %v3234_v11 = vadd.f32 %v3233_v59, %v3205_v28 }
 0x3cf   : > { %v2956_v44 = vsel %vm2941_vm8, %v5984_v4, %v2928_v16  ;;  %v3003_v45 = vadd.f32 %v2928_v16, %v2838_v17  ;;  %v3078_v34 = vmax.f32 %v3054_v22, 0.0  ;;  %v3079_v61 = vmax.f32 %v3055_v36, 0.0  ;;  %3393 = vmatpush.msra.mxu0 %v3372_v30  ;;  %3674 = vmatpush.msrb.mxu1 %v3373_v57  ;;  %v3432_v16 = vld [vmem:[%s6181_s7 + $0x70] sm:$0xff] }
 0x3d0   : > { %v3002_v58 = vadd.f32 %v2956_v44, %v2837_v62  ;;  %v3236_v13 = vpop.f32.mrf.mxu3  ;;  %v3263_v60 = vadd.f32 %v3262_v29, %v3234_v11  ;;  %v3433_v62 = vld [vmem:[%s6181_s7 + $0x78] sm:$0xff] }
 0x3d1   : > { %v3051_v27 = vadd.f32 %v5131_v63, %v3003_v45  ;;  %3270 = vmatmul.f32.gmra.mxu0 %v3078_v34  ;;  %3299 = vmatmul.f32.gmra.mxu2 %v3079_v61  ;;  %v2775_v24 = vpop.permute.xlu1 %2774  ;;  %v3237_v22 = vadd.f32 %v3236_v13, %v3208_v15  ;;  %v3431_v61 = vld [vmem:[%s6181_s7 + $0x68] sm:$0xff] }
 0x3d2   : > { %v3050_v4 = vadd.f32 %v5131_v63, %v3002_v58  ;;  %v2513_v63 = vadd.f32 %v2466_v5, %v2348_v42  ;;  %3394 = vmatpush.msra.mxu0 %v3371_v35  ;;  %v2796_v54 = vsel %vm2776_vm7, %v5941_v48, %v2775_v24  ;;  %3675 = vmatpush.msrb.mxu1 %v3372_v30  ;;  %v3370_v48 = vld [vmem:[%s6179_s5 + $0x28] sm:$0xff]  ;;  %v3430_v58 = vld [vmem:[%s6181_s7 + $0x60] sm:$0xff] }
 0x3d3   : > { %v3075_v23 = vmax.f32 %v3051_v27, 0.0  ;;  %v3210_v32 = vpop.f32.mrf.mxu1  ;;  %3438 = vmatpush.msra.mxu2 %v3433_v62  ;;  %v3419_v13 = vld [vmem:[%s6181_s7 + $0x8] sm:$0xff] }
 0x3d4   : > { %v3074_v9 = vmax.f32 %v3050_v4, 0.0  ;;  %3676 = vmatpush.msrb.mxu1 %v3371_v35  ;;  %3395 = vmatpush.msra.mxu0 %v3370_v48  ;;  %v3211_v27 = vadd.f32 %v3703_v49, %v3210_v32  ;;  %v3429_v4 = vld [vmem:[%s6181_s7 + $0x58] sm:$0xff]  ;;  %v3418_v32 = vld [vmem:[%s6181_s7] sm:$0xff] }
 0x3d5   : > { %3658 = vmatmul.msk.f32.gmra.mxu3 %vm3170_vm10, %v3075_v23  ;;  %3439 = vmatpush.msra.mxu2 %v3432_v16 }
 0x3d6   : > { %v2610_v8 = vpop.permute.xlu0 %2609  ;;  %3325 = vmatmul.f32.gmra.mxu1 %v3074_v9  ;;  %3396 = vmatpush.msra.mxu0 %v3369_v12  ;;  %v3428_v9 = vld [vmem:[%s6181_s7 + $0x50] sm:$0xff] }
 0x3d7   : > { %v2631_v10 = vsel %vm2611_vm6, %v5913_v46, %v2610_v8  ;;  %v2679_v3 = vadd.f32 %v2610_v8, %v2514_v0  ;;  %3677 = vmatpush.msrb.mxu1 %v3370_v48  ;;  %v3265_v26 = vpop.f32.mrf.mxu0  ;;  %3440 = vmatpush.msra.mxu2 %v3431_v61  ;;  %v3427_v8 = vld [vmem:[%s6181_s7 + $0x48] sm:$0xff]  ;;  %v3421_v48 = vld [vmem:[%s6181_s7 + $0x18] sm:$0xff] }
 0x3d8   : > { %v2678_v55 = vadd.f32 %v2631_v10, %v2513_v63  ;;  %v3239_v14 = vpop.f32.mrf.mxu3  ;;  %v3266_v44 = vadd.f32 %v3265_v26, %v3237_v22 }
 0x3d9   : > { %v2844_v39 = vadd.f32 %v2775_v24, %v2679_v3  ;;  %3678 = vmatpush.msrb.mxu1 %v3369_v12  ;;  %3441 = vmatpush.msra.mxu2 %v3430_v58  ;;  %v3240_v35 = vadd.f32 %v3239_v14, %v3211_v27  ;;  %v3426_v3 = vld [vmem:[%s6181_s7 + $0x40] sm:$0xff] }
 0x3da   : > { %v2843_v37 = vadd.f32 %v2796_v54, %v2678_v55  ;;  %v3704_v14 = vld [vmem:[%s6180_s6] ss:$0 sm:$0xff] }
 0x3db   : > { %v3009_v2 = vadd.f32 %v2940_v33, %v2844_v39  ;;  %v3213_v47 = vpop.f32.mrf.mxu1  ;;  %3442 = vmatpush.msra.mxu2 %v3429_v4  ;;  %v3425_v33 = vld [vmem:[%s6181_s7 + $0x38] sm:$0xff] }
 0x3dc   : > { %v3008_v18 = vadd.f32 %v2961_v40, %v2843_v37  ;;  %v3424_v37 = vld [vmem:[%s6181_s7 + $0x30] sm:$0xff]  ;;  %v3214_v40 = vadd.f32 %v3703_v49, %v3213_v47 }
 0x3dd   : > { %v3057_v53 = vadd.f32 %v5156_v51, %v3009_v2  ;;  %3443 = vmatpush.msra.mxu2 %v3428_v9 }
 0x3de   : > { %v3056_v46 = vadd.f32 %v5156_v51, %v3008_v18  ;;  %v3368_v51 = vld [vmem:[%s6179_s5 + $0x18] sm:$0xff]  ;;  %v3423_v18 = vld [vmem:[%s6181_s7 + $0x28] sm:$0xff] }
 0x3df   : > { %v3081_v7 = vmax.f32 %v3057_v53, 0.0  ;;  %3397 = vmatpush.msra.mxu0 %v3368_v51  ;;  %3679 = vmatpush.msrb.mxu1 %v3368_v51  ;;  %v3268_v5 = vpop.f32.mrf.mxu0 }
 0x3e0   : > { %v3080_v25 = vmax.f32 %v3056_v46, 0.0  ;;  %v3242_v6 = vpop.f32.mrf.mxu3  ;;  %v3269_v0 = vadd.f32 %v3268_v5, %v3240_v35  ;;  %3444 = vmatpush.msra.mxu2 %v3427_v8 }
 0x3e1   : > { %3659 = vmatmul.msk.f32.gmra.mxu3 %vm3170_vm10, %v3081_v7  ;;  %3398 = vmatpush.msra.mxu0 %v3367_v38  ;;  %v3243_v46 = vadd.f32 %v3242_v6, %v3214_v40  ;;  %v3422_v7 = vld [vmem:[%s6181_s7 + $0x20] sm:$0xff] }
 0x3e2   : > { %3328 = vmatmul.f32.gmra.mxu1 %v3080_v25  ;;  %3445 = vmatpush.msra.mxu2 %v3426_v3 }
 0x3e3   : > { %3680 = vmatpush.msrb.mxu1 %v3367_v38  ;;  %3399 = vmatpush.msra.mxu0 %v3366_v56 }
 0x3e4   : > { %3446 = vmatpush.msra.mxu2 %v3425_v33 }
 0x3e5   : > { %3681 = vmatpush.msrb.mxu1 %v3366_v56  ;;  %3400 = vmatpush.msra.mxu0 %v3365_v19 }
 0x3e6   : > { %3447 = vmatpush.msra.mxu2 %v3424_v37 }
 0x3e7   : > { %3682 = vmatpush.msrb.mxu1 %v3365_v19  ;;  %v3420_v19 = vld [vmem:[%s6181_s7 + $0x10] sm:$0xff] }
 0x3e8   : > { %3448 = vmatpush.msra.mxu2 %v3423_v18 }
 0x3ea   : > { %3449 = vmatpush.msra.mxu2 %v3422_v7 }
 0x3ec   : > { %3450 = vmatpush.msra.mxu2 %v3421_v48 }
 0x3ee   : > { %3451 = vmatpush.msra.mxu2 %v3420_v19 }
 0x3f0   : > { %3452 = vmatpush.msra.mxu2 %v3419_v13 }
 0x3f2   : > { %3453 = vmatpush.msra.mxu2 %v3418_v32 }
 0x43c   : > { %v3291_v43 = vpop.f32.mrf.mxu2 }
 0x43d   : > { %v3292_v21 = vadd.f32 %v3291_v43, %v3263_v60 }
 0x443   : > { %v3320_v20 = vpop.f32.mrf.mxu1 }
 0x444   : > { %v3321_v52 = vadd.f32 %v3320_v20, %v3292_v21  ;;  %v3294_v17 = vpop.f32.mrf.mxu2 }
 0x445   : > { %v3295_v57 = vadd.f32 %v3294_v17, %v3266_v44 }
 0x448   : > { %v3349_v31 = vpop.f32.mrf.mxu3 }
 0x449   : > { %v3350_v36 = vadd.f32 %v3349_v31, %v3321_v52  ;;  %v3705_v52 = vld [vmem:[%s6182_s8] ss:$0 sm:$0xff] }
 0x44b   : > { %v3361_v45 = vmax.f32 %v3350_v36, 0.0  ;;  %v3323_v34 = vpop.f32.mrf.mxu1 }
 0x44c   : > { %v3324_v30 = vadd.f32 %v3323_v34, %v3295_v57  ;;  %v3297_v42 = vpop.f32.mrf.mxu2 }
 0x44d   : > { %3401 = vmatmul.f32.vlgmr.msra.gmra.mxu0 %v3361_v45  ;;  %v3298_v10 = vadd.f32 %v3297_v42, %v3269_v0 }
 0x44e   : > { %v3271_v53 = vpop.f32.mrf.mxu0 }
 0x44f   : > { %v3272_v1 = vadd.f32 %v3271_v53, %v3243_v46 }
 0x450   : > { %v3352_v23 = vpop.f32.mrf.mxu3 }
 0x451   : > { %v3353_v50 = vadd.f32 %v3352_v23, %v3324_v30 }
 0x453   : > { %v3362_v63 = vmax.f32 %v3353_v50, 0.0  ;;  %v3326_v24 = vpop.f32.mrf.mxu1 }
 0x454   : > { %v3327_v55 = vadd.f32 %v3326_v24, %v3298_v10  ;;  %v3300_v25 = vpop.f32.mrf.mxu2 }
 0x455   : > { %3404 = vmatmul.f32.gmra.mxu0 %v3362_v63  ;;  %v3301_v59 = vadd.f32 %v3300_v25, %v3272_v1 }
 0x458   : > { %v3355_v54 = vpop.f32.mrf.mxu3 }
 0x459   : > { %v3356_v39 = vadd.f32 %v3355_v54, %v3327_v55 }
 0x45b   : > { %v3363_v2 = vmax.f32 %v3356_v39, 0.0 }
 0x45d   : > { %3407 = vmatmul.f32.gmra.mxu0 %v3363_v2 }
 0x45f   : > { %v3329_v12 = vpop.f32.mrf.mxu1 }
 0x460   : > { %v3330_v51 = vadd.f32 %v3329_v12, %v3301_v59 }
 0x464   : > { %v3358_v41 = vpop.f32.mrf.mxu3 }
 0x465   : > { %v3359_v38 = vadd.f32 %v3358_v41, %v3330_v51 }
 0x467   : > { %v3364_v56 = vmax.f32 %v3359_v38, 0.0 }
 0x469   : > { %3410 = vmatmul.f32.vlgmr.msrb.gmra.mxu1 %v3364_v56 }
 0x4ca   : > { %v3402_v49 = vpop.f32.mrf.mxu0 }
 0x4cb   : > { %v3403_v47 = vadd.f32 %v3704_v14, %v3402_v49 }
 0x4cd   : > { %v3414_v28 = vmax.f32 %v3403_v47, 0.0 }
 0x4cf   : > { %3454 = vmatmul.f32.vlgmr.msra.gmra.mxu2 %v3414_v28 }
 0x4d2   : > { %v3405_v29 = vpop.f32.mrf.mxu0 }
 0x4d3   : > { %v3406_v43 = vadd.f32 %v3704_v14, %v3405_v29 }
 0x4d5   : > { %v3415_v11 = vmax.f32 %v3406_v43, 0.0 }
 0x4d7   : > { %3457 = vmatmul.f32.gmra.mxu2 %v3415_v11 }
 0x4da   : > { %v3408_v6 = vpop.f32.mrf.mxu0 }
 0x4db   : > { %v3409_v20 = vadd.f32 %v3704_v14, %v3408_v6 }
 0x4dd   : > { %v3416_v60 = vmax.f32 %v3409_v20, 0.0 }
 0x4df   : > { %3460 = vmatmul.f32.gmra.mxu2 %v3416_v60 }
 0x4e6   : > { %v3411_v21 = vpop.f32.mrf.mxu1 }
 0x4e7   : > { %v3412_v26 = vadd.f32 %v3704_v14, %v3411_v21 }
 0x4e9   : > { %v3417_v15 = vmax.f32 %v3412_v26, 0.0 }
 0x4eb   : > { %3463 = vmatmul.f32.gmra.mxu2 %v3417_v15 }
 0x552   : > { %v3455_v31 = vpop.f32.mrf.mxu2 }
 0x553   : > { %v3456_v17 = vadd.f32 %v3705_v52, %v3455_v31 }
 0x555   : > { %3468 = vst.msk [vmem:[%s332_s26] sm:$0xff] %vm3467_vm11, %v3456_v17 }
 0x55a   : > { %v3458_v22 = vpop.f32.mrf.mxu2 }
 0x55b   : > { %v3459_v36 = vadd.f32 %v3705_v52, %v3458_v22 }
 0x55d   : > { %3469 = vst.msk [vmem:[%s332_s26 + $0x8] sm:$0xff] %vm3467_vm11, %v3459_v36 }
 0x562   : > { %v3461_v62 = vpop.f32.mrf.mxu2 }
 0x563   : > { %v3462_v16 = vadd.f32 %v3705_v52, %v3461_v62 }
 0x565   : > { %3470 = vst.msk [vmem:[%s332_s26 + $0x10] sm:$0xff] %vm3467_vm11, %v3462_v16 }
 0x56e   : > { %v3464_v44 = vpop.f32.mrf.mxu2 }
 0x56f   : > { %v3465_v45 = vadd.f32 %v3705_v52, %v3464_v44 }
 0x571   : > { %3471 = vst.msk [vmem:[%s332_s26 + $0x18] sm:$0xff] %vm3467_vm11, %v3465_v45 }
 0x572 PF: > { %s19_s30 = sadd.s32 1, %s3759_s30  }
 0x573   : > { %p16_p4 = scmp.ge.s32.totalorder %s19_s30, 6  }
 0x575   :  { %18 = sbr.rel (!%p16_p4) target bundleno = 1 (0x1), region = 86 }

</bundles_post_ra>
